<compile_context>
chip_gen: v5e
topology: v5e:2x2
jax: 0.10.0
libtpu: 0.0.40
codegen_flags: <defaults>
</compile_context>

<pallas_src>
import functools

import numpy as np
import jax
import jax.numpy as jnp
from jax import lax
from jax.experimental import pallas as pl
from jax.experimental.pallas import tpu as pltpu

# ---------------- small config consistent with the MLAE forward ----------------
BATCH        = 2
INPUT_LEN    = 8                                  # T
OUTPUT_LEN   = 4
NUM_STATIONS = 4                                  # lstm input dim
NUM_FEATURES = 2
INPUT_SIZE   = NUM_FEATURES * NUM_STATIONS        # AE input dim = 8
ENC          = (16, 16, 32)                       # encoder widths, latent = 32
H1, H2       = 16, 32                             # lstm hidden sizes (H2 + latent = 64)
MIX          = (32, 16)                           # mix block widths
MULTITASK    = 32

_VMEM = functools.partial(pl.BlockSpec, memory_space=pltpu.MemorySpace.VMEM)

# ------------- packed parameter buffer layout (single (384,128) f32) -------------
P_COLS = 128
R_WPRE = 0      # (12, 80): rows 0:4  -> wi1 (4,64) in cols 0:64
                #           rows 4:12 -> we1 (8,16) in cols 64:80   (block-diag)
R_WH1  = 16     # (16, 64)
R_W2   = 32     # (48,128): rows 0:16 -> wi2, rows 16:48 -> wh2 (gate-fused)
R_WE2  = 80     # (16, 16)
R_WE3  = 96     # (16, 32)
R_WM1  = 112    # (64, 32)   unsplit mix layer-1 weight ([lstm|latent] rows)
R_WM2  = 176    # (32, 16)
R_WP1  = 208    # (128,32)   head layer-1 weight over the lane-packed (T*M1) rep
R_WP2  = 336    # (32, 4)
R_BIAS = 368    # one bias per row: b1,be1,b2,be2,be3,bm1,bm2,bp1,bp2
P_ROWS = 384


# ------------------------------ fused Pallas kernel ------------------------------
def _mlae_kernel(x_ref, xm_ref, p_ref, out_ref):
    def mm(a, b):
        # default MXU precision (bf16 passes) -- f32 accumulate
        return jnp.dot(a, b, preferred_element_type=jnp.float32)

    B = x_ref.shape[0]
    T = x_ref.shape[1]

    # ---- weights: static, 8-row-aligned slices of the single packed buffer ----
    wpre = p_ref[R_WPRE:R_WPRE + 12, 0:80]          # blockdiag(wi1, we1)
    wh1  = p_ref[R_WH1:R_WH1 + 16, 0:64]
    w2   = p_ref[R_W2:R_W2 + 48, 0:128]             # vstack(wi2, wh2)
    we2  = p_ref[R_WE2:R_WE2 + 16, 0:16]
    we3  = p_ref[R_WE3:R_WE3 + 16, 0:32]
    wm1  = p_ref[R_WM1:R_WM1 + 64, 0:32]
    wm2  = p_ref[R_WM2:R_WM2 + 32, 0:16]
    wp1  = p_ref[R_WP1:R_WP1 + 128, 0:32]
    wp2  = p_ref[R_WP2:R_WP2 + 32, 0:4]

    b1  = p_ref[R_BIAS + 0:R_BIAS + 1, 0:64]
    be1 = p_ref[R_BIAS + 1:R_BIAS + 2, 0:16]
    b2  = p_ref[R_BIAS + 2:R_BIAS + 3, 0:128]
    be2 = p_ref[R_BIAS + 3:R_BIAS + 4, 0:16]
    be3 = p_ref[R_BIAS + 4:R_BIAS + 5, 0:32]
    bm1 = p_ref[R_BIAS + 5:R_BIAS + 6, 0:32]
    bm2 = p_ref[R_BIAS + 6:R_BIAS + 7, 0:16]
    bp1 = p_ref[R_BIAS + 7:R_BIAS + 8, 0:32]
    bp2 = p_ref[R_BIAS + 8:R_BIAS + 9, 0:4]

    # ---- pre-loop: fused (LSTM-1 input projection | AE encoder layer 1) ----
    x  = x_ref[...].reshape(B * T, NUM_STATIONS)          # batch-major rows b*T+t
    xm = xm_ref[...].reshape(B * T, INPUT_SIZE)
    xin = jnp.concatenate([x, xm], axis=-1)                # (B*T, 12)
    pre = mm(xin, wpre)                                    # (B*T, 80)

    xproj = (pre[:, 0:64] + b1).reshape(B, T, 4 * H1)      # layer-1 gate pre-acts
    z = jax.nn.relu(pre[:, 64:80] + be1)                   # AE encoder
    z = jax.nn.relu(mm(z, we2) + be2)
    lat = jax.nn.relu(mm(z, we3) + be3).reshape(B, T, ENC[2])   # (B, T, 32)

    # ---- hoisted broadcasts (avoid per-iteration broadcast_in_dim) ----
    b2b  = jnp.broadcast_to(b2,  (B, 4 * H2))
    bm1b = jnp.broadcast_to(bm1, (B, MIX[0]))
    bm2b = jnp.broadcast_to(bm2, (B, MIX[1]))

    h1 = jnp.zeros((B, H1), jnp.float32)
    c1 = jnp.zeros((B, H1), jnp.float32)
    h2 = jnp.zeros((B, H2), jnp.float32)
    c2 = jnp.zeros((B, H2), jnp.float32)
    reps = []

    # Static unroll over T=8: state stays in vregs, full LLO visibility.
    for t in range(T):
        # -- LSTM layer 1 (input projection hoisted; gate order i|f|g|o) --
        z1 = xproj[:, t, :] + mm(h1, wh1)                          # (B, 64)
        s1 = jax.nn.sigmoid(z1)                                    # 1 EUP pass
        g1 = jnp.tanh(z1[:, 2 * H1:3 * H1])                        # 1 EUP pass
        c1 = s1[:, H1:2 * H1] * c1 + s1[:, 0:H1] * g1
        h1 = s1[:, 3 * H1:4 * H1] * jnp.tanh(c1)

        # -- LSTM layer 2: single fused GEMM over [h1 | h2] --
        z2 = mm(jnp.concatenate([h1, h2], axis=-1), w2) + b2b      # (B, 128)
        s2 = jax.nn.sigmoid(z2)
        g2 = jnp.tanh(z2[:, 2 * H2:3 * H2])
        c2 = s2[:, H2:2 * H2] * c2 + s2[:, 0:H2] * g2
        h2 = s2[:, 3 * H2:4 * H2] * jnp.tanh(c2)

        # -- mix block: single GEMM over concat(lstm, latent) --
        enc = jnp.concatenate([h2, lat[:, t, :]], axis=-1)         # (B, 64)
        m1 = jax.nn.relu(mm(enc, wm1) + bm1b)                      # (B, 32)
        reps.append(jax.nn.relu(mm(m1, wm2) + bm2b))               # (B, 16)

    # ---- shared multitask head: lane-pack rep over time, then ONE GEMM ----
    rep = jnp.concatenate(reps, axis=-1)                           # (B, T*M1 = 128)
    hh = jax.nn.relu(mm(rep, wp1) + bp1)                           # (B, 32)
    pred = mm(hh, wp2) + bp2                                       # (B, OUTPUT_LEN)

    # ModuleList repeats the SAME prediction block -> identical per-station preds.
    out_ref[...] = jnp.broadcast_to(pred[:, None, :],
                                    (B, NUM_STATIONS, OUTPUT_LEN))


# ------------------------------ JAX wrapper ------------------------------------
def mlae_forward(x_pm, x_meteo, packed_params):
    B = x_pm.shape[0]
    return pl.pallas_call(
        _mlae_kernel,
        out_shape=jax.ShapeDtypeStruct((B, NUM_STATIONS, OUTPUT_LEN), jnp.float32),
        in_specs=[_VMEM(), _VMEM(), _VMEM()],
        out_specs=_VMEM(),
    )(x_pm, x_meteo, packed_params)


# ------------------------------ parameters --------------------------------------
def init_params(key):
    keys = iter(jax.random.split(key, 40))
    scale = 0.1

    def dense(din, dout):
        w = jax.random.normal(next(keys), (din, dout), jnp.float32) * scale
        b = jax.random.normal(next(keys), (1, dout), jnp.float32) * scale
        return w, b

    def lstm(din, dh):
        # gate-fused weights, PyTorch gate order (i, f, g, o) along the out dim;
        # single combined bias (= b_ih + b_hh when importing real torch weights).
        wi = jax.random.normal(next(keys), (din, 4 * dh), jnp.float32) * scale
        wh = jax.random.normal(next(keys), (dh, 4 * dh), jnp.float32) * scale
        b = jax.random.normal(next(keys), (1, 4 * dh), jnp.float32) * scale
        return wi, wh, b

    p = {}
    p["wi1"], p["wh1"], p["b1"] = lstm(NUM_STATIONS, H1)
    p["wi2"], p["wh2"], p["b2"] = lstm(H1, H2)
    p["we1"], p["be1"] = dense(INPUT_SIZE, ENC[0])
    p["we2"], p["be2"] = dense(ENC[0], ENC[1])
    p["we3"], p["be3"] = dense(ENC[1], ENC[2])
    p["wm1"], p["bm1"] = dense(H2 + ENC[2], MIX[0])      # Linear(64, MIX[0])
    p["wm2"], p["bm2"] = dense(MIX[0], MIX[1])
    p["wp1"], p["bp1"] = dense(INPUT_LEN * MIX[1], MULTITASK)
    p["wp2"], p["bp2"] = dense(MULTITASK, OUTPUT_LEN)
    return p


def pack_params(p):
    """Pack all weights/biases into one (384, 128) f32 buffer (done once, off-jit)."""
    buf = np.zeros((P_ROWS, P_COLS), np.float32)
    # block-diagonal fused pre-loop weight: [x|xm] @ blockdiag(wi1, we1)
    buf[R_WPRE + 0:R_WPRE + 4, 0:64]  = np.asarray(p["wi1"])
    buf[R_WPRE + 4:R_WPRE + 12, 64:80] = np.asarray(p["we1"])
    buf[R_WH1:R_WH1 + 16, 0:64]   = np.asarray(p["wh1"])
    buf[R_W2:R_W2 + 16, 0:128]    = np.asarray(p["wi2"])
    buf[R_W2 + 16:R_W2 + 48, 0:128] = np.asarray(p["wh2"])
    buf[R_WE2:R_WE2 + 16, 0:16]   = np.asarray(p["we2"])
    buf[R_WE3:R_WE3 + 16, 0:32]   = np.asarray(p["we3"])
    buf[R_WM1:R_WM1 + 64, 0:32]   = np.asarray(p["wm1"])
    buf[R_WM2:R_WM2 + 32, 0:16]   = np.asarray(p["wm2"])
    buf[R_WP1:R_WP1 + 128, 0:32]  = np.asarray(p["wp1"])
    buf[R_WP2:R_WP2 + 32, 0:4]    = np.asarray(p["wp2"])
    for r, name in enumerate(
            ["b1", "be1", "b2", "be2", "be3", "bm1", "bm2", "bp1", "bp2"]):
        flat = np.asarray(p[name]).reshape(-1)
        buf[R_BIAS + r, 0:flat.shape[0]] = flat
    return jnp.asarray(buf)


# ------------------------------ pure-JAX reference -------------------------------
def reference_forward(x_pm, x_meteo, p):
    hp = jax.lax.Precision.HIGHEST
    B, T, _ = x_pm.shape

    def lstm_layer(x, wi, wh, b, dh):
        def cell(carry, xt):
            h, c = carry
            z = jnp.dot(xt, wi, precision=hp) + jnp.dot(h, wh, precision=hp) + b
            i = jax.nn.sigmoid(z[:, 0 * dh:1 * dh])
            f = jax.nn.sigmoid(z[:, 1 * dh:2 * dh])
            g = jnp.tanh(z[:, 2 * dh:3 * dh])
            o = jax.nn.sigmoid(z[:, 3 * dh:4 * dh])
            c = f * c + i * g
            h = o * jnp.tanh(c)
            return (h, c), h

        init = (jnp.zeros((B, dh)), jnp.zeros((B, dh)))
        _, hs = lax.scan(cell, init, jnp.swapaxes(x, 0, 1))
        return jnp.swapaxes(hs, 0, 1)

    out1 = lstm_layer(x_pm, p["wi1"], p["wh1"], p["b1"], H1)
    out2 = lstm_layer(out1, p["wi2"], p["wh2"], p["b2"], H2)     # (B, T, H2)

    def dense_relu(x, w, b):
        return jax.nn.relu(jnp.dot(x, w, precision=hp) + b)

    z = dense_relu(x_meteo, p["we1"], p["be1"])
    z = dense_relu(z, p["we2"], p["be2"])
    lat = dense_relu(z, p["we3"], p["be3"])                      # (B, T, E2)

    enc = jnp.concatenate([out2, lat], axis=-1)                  # (B, T, 64)
    rep = dense_relu(enc, p["wm1"], p["bm1"])
    rep = dense_relu(rep, p["wm2"], p["bm2"])                    # (B, T, M1)
    rep = rep.reshape(B, T * MIX[1])

    h = jax.nn.relu(jnp.dot(rep, p["wp1"], precision=hp) + p["bp1"])
    pred = jnp.dot(h, p["wp2"], precision=hp) + p["bp2"]         # (B, OUT)
    return jnp.broadcast_to(pred[:, None, :], (B, NUM_STATIONS, OUTPUT_LEN))


# ---------------------------------- main -----------------------------------------
if __name__ == "__main__":
    key = jax.random.PRNGKey(0)
    kp, kx1, kx2 = jax.random.split(key, 3)
    params = init_params(kp)
    packed = pack_params(params)              # one-time packing, outside jit

    x_pm = jax.random.normal(kx1, (BATCH, INPUT_LEN, NUM_STATIONS), jnp.float32)
    x_meteo = jax.random.normal(kx2, (BATCH, INPUT_LEN, INPUT_SIZE), jnp.float32)

    out = jax.block_until_ready(jax.jit(mlae_forward)(x_pm, x_meteo, packed))
    ref = jax.block_until_ready(reference_forward(x_pm, x_meteo, params))

    assert out.shape == (BATCH, NUM_STATIONS, OUTPUT_LEN), out.shape
    max_err = float(jnp.max(jnp.abs(out - ref)))
    assert jnp.allclose(out, ref, rtol=1e-2, atol=1e-2), max_err
    print("KERNEL_OK")
</pallas_src>

<mosaic_0001>
module attributes {stable_mosaic.version = 11 : i64} {
  func.func @_mlae_kernel(%arg0: memref<2x8x4xf32, #tpu.memory_space<vmem>>, %arg1: memref<2x8x8xf32, #tpu.memory_space<vmem>>, %arg2: memref<384x128xf32, #tpu.memory_space<vmem>>, %arg3: memref<2x4x4xf32, #tpu.memory_space<vmem>>) attributes {dimension_semantics = [], scalar_prefetch = 0 : i64, scratch_operands = 0 : i64, tpu.core_type = #tpu.core_type<tc>} {
    %c0 = arith.constant 0 : index
    %c0_0 = arith.constant 0 : index
    %0 = vector.load %arg2[%c0, %c0_0] : memref<384x128xf32, #tpu.memory_space<vmem>>, vector<12x80xf32>
    %c16 = arith.constant 16 : index
    %c0_1 = arith.constant 0 : index
    %1 = vector.load %arg2[%c16, %c0_1] : memref<384x128xf32, #tpu.memory_space<vmem>>, vector<16x64xf32>
    %c32 = arith.constant 32 : index
    %c0_2 = arith.constant 0 : index
    %2 = vector.load %arg2[%c32, %c0_2] : memref<384x128xf32, #tpu.memory_space<vmem>>, vector<48x128xf32>
    %c80 = arith.constant 80 : index
    %c0_3 = arith.constant 0 : index
    %3 = vector.load %arg2[%c80, %c0_3] : memref<384x128xf32, #tpu.memory_space<vmem>>, vector<16x16xf32>
    %c96 = arith.constant 96 : index
    %c0_4 = arith.constant 0 : index
    %4 = vector.load %arg2[%c96, %c0_4] : memref<384x128xf32, #tpu.memory_space<vmem>>, vector<16x32xf32>
    %c112 = arith.constant 112 : index
    %c0_5 = arith.constant 0 : index
    %5 = vector.load %arg2[%c112, %c0_5] : memref<384x128xf32, #tpu.memory_space<vmem>>, vector<64x32xf32>
    %c176 = arith.constant 176 : index
    %c0_6 = arith.constant 0 : index
    %6 = vector.load %arg2[%c176, %c0_6] : memref<384x128xf32, #tpu.memory_space<vmem>>, vector<32x16xf32>
    %c208 = arith.constant 208 : index
    %c0_7 = arith.constant 0 : index
    %7 = vector.load %arg2[%c208, %c0_7] : memref<384x128xf32, #tpu.memory_space<vmem>>, vector<128x32xf32>
    %c336 = arith.constant 336 : index
    %c0_8 = arith.constant 0 : index
    %8 = vector.load %arg2[%c336, %c0_8] : memref<384x128xf32, #tpu.memory_space<vmem>>, vector<32x4xf32>
    %c368 = arith.constant 368 : index
    %c0_9 = arith.constant 0 : index
    %9 = vector.load %arg2[%c368, %c0_9] : memref<384x128xf32, #tpu.memory_space<vmem>>, vector<1x64xf32>
    %c369 = arith.constant 369 : index
    %c0_10 = arith.constant 0 : index
    %10 = vector.load %arg2[%c369, %c0_10] : memref<384x128xf32, #tpu.memory_space<vmem>>, vector<1x16xf32>
    %c370 = arith.constant 370 : index
    %c0_11 = arith.constant 0 : index
    %11 = vector.load %arg2[%c370, %c0_11] : memref<384x128xf32, #tpu.memory_space<vmem>>, vector<1x128xf32>
    %c371 = arith.constant 371 : index
    %c0_12 = arith.constant 0 : index
    %12 = vector.load %arg2[%c371, %c0_12] : memref<384x128xf32, #tpu.memory_space<vmem>>, vector<1x16xf32>
    %c372 = arith.constant 372 : index
    %c0_13 = arith.constant 0 : index
    %13 = vector.load %arg2[%c372, %c0_13] : memref<384x128xf32, #tpu.memory_space<vmem>>, vector<1x32xf32>
    %c373 = arith.constant 373 : index
    %c0_14 = arith.constant 0 : index
    %14 = vector.load %arg2[%c373, %c0_14] : memref<384x128xf32, #tpu.memory_space<vmem>>, vector<1x32xf32>
    %c374 = arith.constant 374 : index
    %c0_15 = arith.constant 0 : index
    %15 = vector.load %arg2[%c374, %c0_15] : memref<384x128xf32, #tpu.memory_space<vmem>>, vector<1x16xf32>
    %c375 = arith.constant 375 : index
    %c0_16 = arith.constant 0 : index
    %16 = vector.load %arg2[%c375, %c0_16] : memref<384x128xf32, #tpu.memory_space<vmem>>, vector<1x32xf32>
    %c376 = arith.constant 376 : index
    %c0_17 = arith.constant 0 : index
    %17 = vector.load %arg2[%c376, %c0_17] : memref<384x128xf32, #tpu.memory_space<vmem>>, vector<1x4xf32>
    %c0_18 = arith.constant 0 : index
    %c0_19 = arith.constant 0 : index
    %c0_20 = arith.constant 0 : index
    %18 = vector.load %arg0[%c0_18, %c0_19, %c0_20] : memref<2x8x4xf32, #tpu.memory_space<vmem>>, vector<2x8x4xf32>
    %19 = vector.shape_cast %18 : vector<2x8x4xf32> to vector<16x4xf32>
    %c0_21 = arith.constant 0 : index
    %c0_22 = arith.constant 0 : index
    %c0_23 = arith.constant 0 : index
    %20 = vector.load %arg1[%c0_21, %c0_22, %c0_23] : memref<2x8x8xf32, #tpu.memory_space<vmem>>, vector<2x8x8xf32>
    %21 = vector.shape_cast %20 : vector<2x8x8xf32> to vector<16x8xf32>
    %22 = tpu.concatenate %19, %21 in 1 : vector<16x4xf32>, vector<16x8xf32> -> vector<16x12xf32>
    %cst = arith.constant dense<0.000000e+00> : vector<16x80xf32>
    %23 = tpu.matmul %22, %0, %cst {dimension_numbers = #tpu.dot_dimension_numbers<[1], [0], [0], [1], [0, 0, 1, 1], [], []>} : vector<16x12xf32>, vector<12x80xf32>, vector<16x80xf32> -> vector<16x80xf32>
    %24 = vector.extract_strided_slice %23 {offsets = [0, 0], sizes = [16, 64], strides = [1, 1]} : vector<16x80xf32> to vector<16x64xf32>
    %25 = vector.broadcast %9 : vector<1x64xf32> to vector<16x64xf32>
    %26 = arith.addf %24, %25 : vector<16x64xf32>
    %27 = vector.shape_cast %26 : vector<16x64xf32> to vector<2x8x64xf32>
    %28 = vector.extract_strided_slice %23 {offsets = [0, 64], sizes = [16, 16], strides = [1, 1]} : vector<16x80xf32> to vector<16x16xf32>
    %29 = vector.broadcast %10 : vector<1x16xf32> to vector<16x16xf32>
    %30 = arith.addf %28, %29 : vector<16x16xf32>
    %cst_24 = arith.constant 0.000000e+00 : f32
    %31 = vector.broadcast %cst_24 : f32 to vector<16x16xf32>
    %32 = arith.maximumf %30, %31 : vector<16x16xf32>
    %cst_25 = arith.constant dense<0.000000e+00> : vector<16x16xf32>
    %33 = tpu.matmul %32, %3, %cst_25 {dimension_numbers = #tpu.dot_dimension_numbers<[1], [0], [0], [1], [0, 0, 1, 1], [], []>} : vector<16x16xf32>, vector<16x16xf32>, vector<16x16xf32> -> vector<16x16xf32>
    %34 = vector.broadcast %12 : vector<1x16xf32> to vector<16x16xf32>
    %35 = arith.addf %33, %34 : vector<16x16xf32>
    %cst_26 = arith.constant 0.000000e+00 : f32
    %36 = vector.broadcast %cst_26 : f32 to vector<16x16xf32>
    %37 = arith.maximumf %35, %36 : vector<16x16xf32>
    %cst_27 = arith.constant dense<0.000000e+00> : vector<16x32xf32>
    %38 = tpu.matmul %37, %4, %cst_27 {dimension_numbers = #tpu.dot_dimension_numbers<[1], [0], [0], [1], [0, 0, 1, 1], [], []>} : vector<16x16xf32>, vector<16x32xf32>, vector<16x32xf32> -> vector<16x32xf32>
    %39 = vector.broadcast %13 : vector<1x32xf32> to vector<16x32xf32>
    %40 = arith.addf %38, %39 : vector<16x32xf32>
    %cst_28 = arith.constant 0.000000e+00 : f32
    %41 = vector.broadcast %cst_28 : f32 to vector<16x32xf32>
    %42 = arith.maximumf %40, %41 : vector<16x32xf32>
    %43 = vector.shape_cast %42 : vector<16x32xf32> to vector<2x8x32xf32>
    %44 = vector.shape_cast %11 : vector<1x128xf32> to vector<1x128xf32>
    %45 = vector.broadcast %44 : vector<1x128xf32> to vector<2x128xf32>
    %46 = vector.shape_cast %14 : vector<1x32xf32> to vector<1x32xf32>
    %47 = vector.broadcast %46 : vector<1x32xf32> to vector<2x32xf32>
    %48 = vector.shape_cast %15 : vector<1x16xf32> to vector<1x16xf32>
    %49 = vector.broadcast %48 : vector<1x16xf32> to vector<2x16xf32>
    %cst_29 = arith.constant 0.000000e+00 : f32
    %50 = vector.broadcast %cst_29 : f32 to vector<2x16xf32>
    %cst_30 = arith.constant 0.000000e+00 : f32
    %51 = vector.broadcast %cst_30 : f32 to vector<2x16xf32>
    %cst_31 = arith.constant 0.000000e+00 : f32
    %52 = vector.broadcast %cst_31 : f32 to vector<2x32xf32>
    %cst_32 = arith.constant 0.000000e+00 : f32
    %53 = vector.broadcast %cst_32 : f32 to vector<2x32xf32>
    %54 = vector.extract_strided_slice %27 {offsets = [0, 0, 0], sizes = [2, 1, 64], strides = [1, 1, 1]} : vector<2x8x64xf32> to vector<2x1x64xf32>
    %55 = vector.shape_cast %54 : vector<2x1x64xf32> to vector<2x64xf32>
    %cst_33 = arith.constant dense<0.000000e+00> : vector<2x64xf32>
    %56 = tpu.matmul %50, %1, %cst_33 {dimension_numbers = #tpu.dot_dimension_numbers<[1], [0], [0], [1], [0, 0, 1, 1], [], []>} : vector<2x16xf32>, vector<16x64xf32>, vector<2x64xf32> -> vector<2x64xf32>
    %57 = arith.addf %55, %56 : vector<2x64xf32>
    %58 = arith.negf %57 : vector<2x64xf32>
    %59 = math.exp %58 : vector<2x64xf32>
    %cst_34 = arith.constant 1.000000e+00 : f32
    %60 = vector.broadcast %cst_34 : f32 to vector<2x64xf32>
    %61 = arith.addf %60, %59 : vector<2x64xf32>
    %62 = arith.divf %60, %61 : vector<2x64xf32>
    %63 = vector.extract_strided_slice %57 {offsets = [0, 32], sizes = [2, 16], strides = [1, 1]} : vector<2x64xf32> to vector<2x16xf32>
    %64 = math.tanh %63 : vector<2x16xf32>
    %65 = vector.extract_strided_slice %62 {offsets = [0, 16], sizes = [2, 16], strides = [1, 1]} : vector<2x64xf32> to vector<2x16xf32>
    %66 = arith.mulf %65, %51 : vector<2x16xf32>
    %67 = vector.extract_strided_slice %62 {offsets = [0, 0], sizes = [2, 16], strides = [1, 1]} : vector<2x64xf32> to vector<2x16xf32>
    %68 = arith.mulf %67, %64 : vector<2x16xf32>
    %69 = arith.addf %66, %68 : vector<2x16xf32>
    %70 = vector.extract_strided_slice %62 {offsets = [0, 48], sizes = [2, 16], strides = [1, 1]} : vector<2x64xf32> to vector<2x16xf32>
    %71 = math.tanh %69 : vector<2x16xf32>
    %72 = arith.mulf %70, %71 : vector<2x16xf32>
    %73 = tpu.concatenate %72, %52 in 1 : vector<2x16xf32>, vector<2x32xf32> -> vector<2x48xf32>
    %cst_35 = arith.constant dense<0.000000e+00> : vector<2x128xf32>
    %74 = tpu.matmul %73, %2, %cst_35 {dimension_numbers = #tpu.dot_dimension_numbers<[1], [0], [0], [1], [0, 0, 1, 1], [], []>} : vector<2x48xf32>, vector<48x128xf32>, vector<2x128xf32> -> vector<2x128xf32>
    %75 = arith.addf %74, %45 : vector<2x128xf32>
    %76 = arith.negf %75 : vector<2x128xf32>
    %77 = math.exp %76 : vector<2x128xf32>
    %cst_36 = arith.constant 1.000000e+00 : f32
    %78 = vector.broadcast %cst_36 : f32 to vector<2x128xf32>
    %79 = arith.addf %78, %77 : vector<2x128xf32>
    %80 = arith.divf %78, %79 : vector<2x128xf32>
    %81 = vector.extract_strided_slice %75 {offsets = [0, 64], sizes = [2, 32], strides = [1, 1]} : vector<2x128xf32> to vector<2x32xf32>
    %82 = math.tanh %81 : vector<2x32xf32>
    %83 = vector.extract_strided_slice %80 {offsets = [0, 32], sizes = [2, 32], strides = [1, 1]} : vector<2x128xf32> to vector<2x32xf32>
    %84 = arith.mulf %83, %53 : vector<2x32xf32>
    %85 = vector.extract_strided_slice %80 {offsets = [0, 0], sizes = [2, 32], strides = [1, 1]} : vector<2x128xf32> to vector<2x32xf32>
    %86 = arith.mulf %85, %82 : vector<2x32xf32>
    %87 = arith.addf %84, %86 : vector<2x32xf32>
    %88 = vector.extract_strided_slice %80 {offsets = [0, 96], sizes = [2, 32], strides = [1, 1]} : vector<2x128xf32> to vector<2x32xf32>
    %89 = math.tanh %87 : vector<2x32xf32>
    %90 = arith.mulf %88, %89 : vector<2x32xf32>
    %91 = vector.extract_strided_slice %43 {offsets = [0, 0, 0], sizes = [2, 1, 32], strides = [1, 1, 1]} : vector<2x8x32xf32> to vector<2x1x32xf32>
    %92 = vector.shape_cast %91 : vector<2x1x32xf32> to vector<2x32xf32>
    %93 = tpu.concatenate %90, %92 in 1 : vector<2x32xf32>, vector<2x32xf32> -> vector<2x64xf32>
    %cst_37 = arith.constant dense<0.000000e+00> : vector<2x32xf32>
    %94 = tpu.matmul %93, %5, %cst_37 {dimension_numbers = #tpu.dot_dimension_numbers<[1], [0], [0], [1], [0, 0, 1, 1], [], []>} : vector<2x64xf32>, vector<64x32xf32>, vector<2x32xf32> -> vector<2x32xf32>
    %95 = arith.addf %94, %47 : vector<2x32xf32>
    %cst_38 = arith.constant 0.000000e+00 : f32
    %96 = vector.broadcast %cst_38 : f32 to vector<2x32xf32>
    %97 = arith.maximumf %95, %96 : vector<2x32xf32>
    %cst_39 = arith.constant dense<0.000000e+00> : vector<2x16xf32>
    %98 = tpu.matmul %97, %6, %cst_39 {dimension_numbers = #tpu.dot_dimension_numbers<[1], [0], [0], [1], [0, 0, 1, 1], [], []>} : vector<2x32xf32>, vector<32x16xf32>, vector<2x16xf32> -> vector<2x16xf32>
    %99 = arith.addf %98, %49 : vector<2x16xf32>
    %cst_40 = arith.constant 0.000000e+00 : f32
    %100 = vector.broadcast %cst_40 : f32 to vector<2x16xf32>
    %101 = arith.maximumf %99, %100 : vector<2x16xf32>
    %102 = vector.extract_strided_slice %27 {offsets = [0, 1, 0], sizes = [2, 1, 64], strides = [1, 1, 1]} : vector<2x8x64xf32> to vector<2x1x64xf32>
    %103 = vector.shape_cast %102 : vector<2x1x64xf32> to vector<2x64xf32>
    %cst_41 = arith.constant dense<0.000000e+00> : vector<2x64xf32>
    %104 = tpu.matmul %72, %1, %cst_41 {dimension_numbers = #tpu.dot_dimension_numbers<[1], [0], [0], [1], [0, 0, 1, 1], [], []>} : vector<2x16xf32>, vector<16x64xf32>, vector<2x64xf32> -> vector<2x64xf32>
    %105 = arith.addf %103, %104 : vector<2x64xf32>
    %106 = arith.negf %105 : vector<2x64xf32>
    %107 = math.exp %106 : vector<2x64xf32>
    %cst_42 = arith.constant 1.000000e+00 : f32
    %108 = vector.broadcast %cst_42 : f32 to vector<2x64xf32>
    %109 = arith.addf %108, %107 : vector<2x64xf32>
    %110 = arith.divf %108, %109 : vector<2x64xf32>
    %111 = vector.extract_strided_slice %105 {offsets = [0, 32], sizes = [2, 16], strides = [1, 1]} : vector<2x64xf32> to vector<2x16xf32>
    %112 = math.tanh %111 : vector<2x16xf32>
    %113 = vector.extract_strided_slice %110 {offsets = [0, 16], sizes = [2, 16], strides = [1, 1]} : vector<2x64xf32> to vector<2x16xf32>
    %114 = arith.mulf %113, %69 : vector<2x16xf32>
    %115 = vector.extract_strided_slice %110 {offsets = [0, 0], sizes = [2, 16], strides = [1, 1]} : vector<2x64xf32> to vector<2x16xf32>
    %116 = arith.mulf %115, %112 : vector<2x16xf32>
    %117 = arith.addf %114, %116 : vector<2x16xf32>
    %118 = vector.extract_strided_slice %110 {offsets = [0, 48], sizes = [2, 16], strides = [1, 1]} : vector<2x64xf32> to vector<2x16xf32>
    %119 = math.tanh %117 : vector<2x16xf32>
    %120 = arith.mulf %118, %119 : vector<2x16xf32>
    %121 = tpu.concatenate %120, %90 in 1 : vector<2x16xf32>, vector<2x32xf32> -> vector<2x48xf32>
    %cst_43 = arith.constant dense<0.000000e+00> : vector<2x128xf32>
    %122 = tpu.matmul %121, %2, %cst_43 {dimension_numbers = #tpu.dot_dimension_numbers<[1], [0], [0], [1], [0, 0, 1, 1], [], []>} : vector<2x48xf32>, vector<48x128xf32>, vector<2x128xf32> -> vector<2x128xf32>
    %123 = arith.addf %122, %45 : vector<2x128xf32>
    %124 = arith.negf %123 : vector<2x128xf32>
    %125 = math.exp %124 : vector<2x128xf32>
    %cst_44 = arith.constant 1.000000e+00 : f32
    %126 = vector.broadcast %cst_44 : f32 to vector<2x128xf32>
    %127 = arith.addf %126, %125 : vector<2x128xf32>
    %128 = arith.divf %126, %127 : vector<2x128xf32>
    %129 = vector.extract_strided_slice %123 {offsets = [0, 64], sizes = [2, 32], strides = [1, 1]} : vector<2x128xf32> to vector<2x32xf32>
    %130 = math.tanh %129 : vector<2x32xf32>
    %131 = vector.extract_strided_slice %128 {offsets = [0, 32], sizes = [2, 32], strides = [1, 1]} : vector<2x128xf32> to vector<2x32xf32>
    %132 = arith.mulf %131, %87 : vector<2x32xf32>
    %133 = vector.extract_strided_slice %128 {offsets = [0, 0], sizes = [2, 32], strides = [1, 1]} : vector<2x128xf32> to vector<2x32xf32>
    %134 = arith.mulf %133, %130 : vector<2x32xf32>
    %135 = arith.addf %132, %134 : vector<2x32xf32>
    %136 = vector.extract_strided_slice %128 {offsets = [0, 96], sizes = [2, 32], strides = [1, 1]} : vector<2x128xf32> to vector<2x32xf32>
    %137 = math.tanh %135 : vector<2x32xf32>
    %138 = arith.mulf %136, %137 : vector<2x32xf32>
    %139 = vector.extract_strided_slice %43 {offsets = [0, 1, 0], sizes = [2, 1, 32], strides = [1, 1, 1]} : vector<2x8x32xf32> to vector<2x1x32xf32>
    %140 = vector.shape_cast %139 : vector<2x1x32xf32> to vector<2x32xf32>
    %141 = tpu.concatenate %138, %140 in 1 : vector<2x32xf32>, vector<2x32xf32> -> vector<2x64xf32>
    %cst_45 = arith.constant dense<0.000000e+00> : vector<2x32xf32>
    %142 = tpu.matmul %141, %5, %cst_45 {dimension_numbers = #tpu.dot_dimension_numbers<[1], [0], [0], [1], [0, 0, 1, 1], [], []>} : vector<2x64xf32>, vector<64x32xf32>, vector<2x32xf32> -> vector<2x32xf32>
    %143 = arith.addf %142, %47 : vector<2x32xf32>
    %cst_46 = arith.constant 0.000000e+00 : f32
    %144 = vector.broadcast %cst_46 : f32 to vector<2x32xf32>
    %145 = arith.maximumf %143, %144 : vector<2x32xf32>
    %cst_47 = arith.constant dense<0.000000e+00> : vector<2x16xf32>
    %146 = tpu.matmul %145, %6, %cst_47 {dimension_numbers = #tpu.dot_dimension_numbers<[1], [0], [0], [1], [0, 0, 1, 1], [], []>} : vector<2x32xf32>, vector<32x16xf32>, vector<2x16xf32> -> vector<2x16xf32>
    %147 = arith.addf %146, %49 : vector<2x16xf32>
    %cst_48 = arith.constant 0.000000e+00 : f32
    %148 = vector.broadcast %cst_48 : f32 to vector<2x16xf32>
    %149 = arith.maximumf %147, %148 : vector<2x16xf32>
    %150 = vector.extract_strided_slice %27 {offsets = [0, 2, 0], sizes = [2, 1, 64], strides = [1, 1, 1]} : vector<2x8x64xf32> to vector<2x1x64xf32>
    %151 = vector.shape_cast %150 : vector<2x1x64xf32> to vector<2x64xf32>
    %cst_49 = arith.constant dense<0.000000e+00> : vector<2x64xf32>
    %152 = tpu.matmul %120, %1, %cst_49 {dimension_numbers = #tpu.dot_dimension_numbers<[1], [0], [0], [1], [0, 0, 1, 1], [], []>} : vector<2x16xf32>, vector<16x64xf32>, vector<2x64xf32> -> vector<2x64xf32>
    %153 = arith.addf %151, %152 : vector<2x64xf32>
    %154 = arith.negf %153 : vector<2x64xf32>
    %155 = math.exp %154 : vector<2x64xf32>
    %cst_50 = arith.constant 1.000000e+00 : f32
    %156 = vector.broadcast %cst_50 : f32 to vector<2x64xf32>
    %157 = arith.addf %156, %155 : vector<2x64xf32>
    %158 = arith.divf %156, %157 : vector<2x64xf32>
    %159 = vector.extract_strided_slice %153 {offsets = [0, 32], sizes = [2, 16], strides = [1, 1]} : vector<2x64xf32> to vector<2x16xf32>
    %160 = math.tanh %159 : vector<2x16xf32>
    %161 = vector.extract_strided_slice %158 {offsets = [0, 16], sizes = [2, 16], strides = [1, 1]} : vector<2x64xf32> to vector<2x16xf32>
    %162 = arith.mulf %161, %117 : vector<2x16xf32>
    %163 = vector.extract_strided_slice %158 {offsets = [0, 0], sizes = [2, 16], strides = [1, 1]} : vector<2x64xf32> to vector<2x16xf32>
    %164 = arith.mulf %163, %160 : vector<2x16xf32>
    %165 = arith.addf %162, %164 : vector<2x16xf32>
    %166 = vector.extract_strided_slice %158 {offsets = [0, 48], sizes = [2, 16], strides = [1, 1]} : vector<2x64xf32> to vector<2x16xf32>
    %167 = math.tanh %165 : vector<2x16xf32>
    %168 = arith.mulf %166, %167 : vector<2x16xf32>
    %169 = tpu.concatenate %168, %138 in 1 : vector<2x16xf32>, vector<2x32xf32> -> vector<2x48xf32>
    %cst_51 = arith.constant dense<0.000000e+00> : vector<2x128xf32>
    %170 = tpu.matmul %169, %2, %cst_51 {dimension_numbers = #tpu.dot_dimension_numbers<[1], [0], [0], [1], [0, 0, 1, 1], [], []>} : vector<2x48xf32>, vector<48x128xf32>, vector<2x128xf32> -> vector<2x128xf32>
    %171 = arith.addf %170, %45 : vector<2x128xf32>
    %172 = arith.negf %171 : vector<2x128xf32>
    %173 = math.exp %172 : vector<2x128xf32>
    %cst_52 = arith.constant 1.000000e+00 : f32
    %174 = vector.broadcast %cst_52 : f32 to vector<2x128xf32>
    %175 = arith.addf %174, %173 : vector<2x128xf32>
    %176 = arith.divf %174, %175 : vector<2x128xf32>
    %177 = vector.extract_strided_slice %171 {offsets = [0, 64], sizes = [2, 32], strides = [1, 1]} : vector<2x128xf32> to vector<2x32xf32>
    %178 = math.tanh %177 : vector<2x32xf32>
    %179 = vector.extract_strided_slice %176 {offsets = [0, 32], sizes = [2, 32], strides = [1, 1]} : vector<2x128xf32> to vector<2x32xf32>
    %180 = arith.mulf %179, %135 : vector<2x32xf32>
    %181 = vector.extract_strided_slice %176 {offsets = [0, 0], sizes = [2, 32], strides = [1, 1]} : vector<2x128xf32> to vector<2x32xf32>
    %182 = arith.mulf %181, %178 : vector<2x32xf32>
    %183 = arith.addf %180, %182 : vector<2x32xf32>
    %184 = vector.extract_strided_slice %176 {offsets = [0, 96], sizes = [2, 32], strides = [1, 1]} : vector<2x128xf32> to vector<2x32xf32>
    %185 = math.tanh %183 : vector<2x32xf32>
    %186 = arith.mulf %184, %185 : vector<2x32xf32>
    %187 = vector.extract_strided_slice %43 {offsets = [0, 2, 0], sizes = [2, 1, 32], strides = [1, 1, 1]} : vector<2x8x32xf32> to vector<2x1x32xf32>
    %188 = vector.shape_cast %187 : vector<2x1x32xf32> to vector<2x32xf32>
    %189 = tpu.concatenate %186, %188 in 1 : vector<2x32xf32>, vector<2x32xf32> -> vector<2x64xf32>
    %cst_53 = arith.constant dense<0.000000e+00> : vector<2x32xf32>
    %190 = tpu.matmul %189, %5, %cst_53 {dimension_numbers = #tpu.dot_dimension_numbers<[1], [0], [0], [1], [0, 0, 1, 1], [], []>} : vector<2x64xf32>, vector<64x32xf32>, vector<2x32xf32> -> vector<2x32xf32>
    %191 = arith.addf %190, %47 : vector<2x32xf32>
    %cst_54 = arith.constant 0.000000e+00 : f32
    %192 = vector.broadcast %cst_54 : f32 to vector<2x32xf32>
    %193 = arith.maximumf %191, %192 : vector<2x32xf32>
    %cst_55 = arith.constant dense<0.000000e+00> : vector<2x16xf32>
    %194 = tpu.matmul %193, %6, %cst_55 {dimension_numbers = #tpu.dot_dimension_numbers<[1], [0], [0], [1], [0, 0, 1, 1], [], []>} : vector<2x32xf32>, vector<32x16xf32>, vector<2x16xf32> -> vector<2x16xf32>
    %195 = arith.addf %194, %49 : vector<2x16xf32>
    %cst_56 = arith.constant 0.000000e+00 : f32
    %196 = vector.broadcast %cst_56 : f32 to vector<2x16xf32>
    %197 = arith.maximumf %195, %196 : vector<2x16xf32>
    %198 = vector.extract_strided_slice %27 {offsets = [0, 3, 0], sizes = [2, 1, 64], strides = [1, 1, 1]} : vector<2x8x64xf32> to vector<2x1x64xf32>
    %199 = vector.shape_cast %198 : vector<2x1x64xf32> to vector<2x64xf32>
    %cst_57 = arith.constant dense<0.000000e+00> : vector<2x64xf32>
    %200 = tpu.matmul %168, %1, %cst_57 {dimension_numbers = #tpu.dot_dimension_numbers<[1], [0], [0], [1], [0, 0, 1, 1], [], []>} : vector<2x16xf32>, vector<16x64xf32>, vector<2x64xf32> -> vector<2x64xf32>
    %201 = arith.addf %199, %200 : vector<2x64xf32>
    %202 = arith.negf %201 : vector<2x64xf32>
    %203 = math.exp %202 : vector<2x64xf32>
    %cst_58 = arith.constant 1.000000e+00 : f32
    %204 = vector.broadcast %cst_58 : f32 to vector<2x64xf32>
    %205 = arith.addf %204, %203 : vector<2x64xf32>
    %206 = arith.divf %204, %205 : vector<2x64xf32>
    %207 = vector.extract_strided_slice %201 {offsets = [0, 32], sizes = [2, 16], strides = [1, 1]} : vector<2x64xf32> to vector<2x16xf32>
    %208 = math.tanh %207 : vector<2x16xf32>
    %209 = vector.extract_strided_slice %206 {offsets = [0, 16], sizes = [2, 16], strides = [1, 1]} : vector<2x64xf32> to vector<2x16xf32>
    %210 = arith.mulf %209, %165 : vector<2x16xf32>
    %211 = vector.extract_strided_slice %206 {offsets = [0, 0], sizes = [2, 16], strides = [1, 1]} : vector<2x64xf32> to vector<2x16xf32>
    %212 = arith.mulf %211, %208 : vector<2x16xf32>
    %213 = arith.addf %210, %212 : vector<2x16xf32>
    %214 = vector.extract_strided_slice %206 {offsets = [0, 48], sizes = [2, 16], strides = [1, 1]} : vector<2x64xf32> to vector<2x16xf32>
    %215 = math.tanh %213 : vector<2x16xf32>
    %216 = arith.mulf %214, %215 : vector<2x16xf32>
    %217 = tpu.concatenate %216, %186 in 1 : vector<2x16xf32>, vector<2x32xf32> -> vector<2x48xf32>
    %cst_59 = arith.constant dense<0.000000e+00> : vector<2x128xf32>
    %218 = tpu.matmul %217, %2, %cst_59 {dimension_numbers = #tpu.dot_dimension_numbers<[1], [0], [0], [1], [0, 0, 1, 1], [], []>} : vector<2x48xf32>, vector<48x128xf32>, vector<2x128xf32> -> vector<2x128xf32>
    %219 = arith.addf %218, %45 : vector<2x128xf32>
    %220 = arith.negf %219 : vector<2x128xf32>
    %221 = math.exp %220 : vector<2x128xf32>
    %cst_60 = arith.constant 1.000000e+00 : f32
    %222 = vector.broadcast %cst_60 : f32 to vector<2x128xf32>
    %223 = arith.addf %222, %221 : vector<2x128xf32>
    %224 = arith.divf %222, %223 : vector<2x128xf32>
    %225 = vector.extract_strided_slice %219 {offsets = [0, 64], sizes = [2, 32], strides = [1, 1]} : vector<2x128xf32> to vector<2x32xf32>
    %226 = math.tanh %225 : vector<2x32xf32>
    %227 = vector.extract_strided_slice %224 {offsets = [0, 32], sizes = [2, 32], strides = [1, 1]} : vector<2x128xf32> to vector<2x32xf32>
    %228 = arith.mulf %227, %183 : vector<2x32xf32>
    %229 = vector.extract_strided_slice %224 {offsets = [0, 0], sizes = [2, 32], strides = [1, 1]} : vector<2x128xf32> to vector<2x32xf32>
    %230 = arith.mulf %229, %226 : vector<2x32xf32>
    %231 = arith.addf %228, %230 : vector<2x32xf32>
    %232 = vector.extract_strided_slice %224 {offsets = [0, 96], sizes = [2, 32], strides = [1, 1]} : vector<2x128xf32> to vector<2x32xf32>
    %233 = math.tanh %231 : vector<2x32xf32>
    %234 = arith.mulf %232, %233 : vector<2x32xf32>
    %235 = vector.extract_strided_slice %43 {offsets = [0, 3, 0], sizes = [2, 1, 32], strides = [1, 1, 1]} : vector<2x8x32xf32> to vector<2x1x32xf32>
    %236 = vector.shape_cast %235 : vector<2x1x32xf32> to vector<2x32xf32>
    %237 = tpu.concatenate %234, %236 in 1 : vector<2x32xf32>, vector<2x32xf32> -> vector<2x64xf32>
    %cst_61 = arith.constant dense<0.000000e+00> : vector<2x32xf32>
    %238 = tpu.matmul %237, %5, %cst_61 {dimension_numbers = #tpu.dot_dimension_numbers<[1], [0], [0], [1], [0, 0, 1, 1], [], []>} : vector<2x64xf32>, vector<64x32xf32>, vector<2x32xf32> -> vector<2x32xf32>
    %239 = arith.addf %238, %47 : vector<2x32xf32>
    %cst_62 = arith.constant 0.000000e+00 : f32
    %240 = vector.broadcast %cst_62 : f32 to vector<2x32xf32>
    %241 = arith.maximumf %239, %240 : vector<2x32xf32>
    %cst_63 = arith.constant dense<0.000000e+00> : vector<2x16xf32>
    %242 = tpu.matmul %241, %6, %cst_63 {dimension_numbers = #tpu.dot_dimension_numbers<[1], [0], [0], [1], [0, 0, 1, 1], [], []>} : vector<2x32xf32>, vector<32x16xf32>, vector<2x16xf32> -> vector<2x16xf32>
    %243 = arith.addf %242, %49 : vector<2x16xf32>
    %cst_64 = arith.constant 0.000000e+00 : f32
    %244 = vector.broadcast %cst_64 : f32 to vector<2x16xf32>
    %245 = arith.maximumf %243, %244 : vector<2x16xf32>
    %246 = vector.extract_strided_slice %27 {offsets = [0, 4, 0], sizes = [2, 1, 64], strides = [1, 1, 1]} : vector<2x8x64xf32> to vector<2x1x64xf32>
    %247 = vector.shape_cast %246 : vector<2x1x64xf32> to vector<2x64xf32>
    %cst_65 = arith.constant dense<0.000000e+00> : vector<2x64xf32>
    %248 = tpu.matmul %216, %1, %cst_65 {dimension_numbers = #tpu.dot_dimension_numbers<[1], [0], [0], [1], [0, 0, 1, 1], [], []>} : vector<2x16xf32>, vector<16x64xf32>, vector<2x64xf32> -> vector<2x64xf32>
    %249 = arith.addf %247, %248 : vector<2x64xf32>
    %250 = arith.negf %249 : vector<2x64xf32>
    %251 = math.exp %250 : vector<2x64xf32>
    %cst_66 = arith.constant 1.000000e+00 : f32
    %252 = vector.broadcast %cst_66 : f32 to vector<2x64xf32>
    %253 = arith.addf %252, %251 : vector<2x64xf32>
    %254 = arith.divf %252, %253 : vector<2x64xf32>
    %255 = vector.extract_strided_slice %249 {offsets = [0, 32], sizes = [2, 16], strides = [1, 1]} : vector<2x64xf32> to vector<2x16xf32>
    %256 = math.tanh %255 : vector<2x16xf32>
    %257 = vector.extract_strided_slice %254 {offsets = [0, 16], sizes = [2, 16], strides = [1, 1]} : vector<2x64xf32> to vector<2x16xf32>
    %258 = arith.mulf %257, %213 : vector<2x16xf32>
    %259 = vector.extract_strided_slice %254 {offsets = [0, 0], sizes = [2, 16], strides = [1, 1]} : vector<2x64xf32> to vector<2x16xf32>
    %260 = arith.mulf %259, %256 : vector<2x16xf32>
    %261 = arith.addf %258, %260 : vector<2x16xf32>
    %262 = vector.extract_strided_slice %254 {offsets = [0, 48], sizes = [2, 16], strides = [1, 1]} : vector<2x64xf32> to vector<2x16xf32>
    %263 = math.tanh %261 : vector<2x16xf32>
    %264 = arith.mulf %262, %263 : vector<2x16xf32>
    %265 = tpu.concatenate %264, %234 in 1 : vector<2x16xf32>, vector<2x32xf32> -> vector<2x48xf32>
    %cst_67 = arith.constant dense<0.000000e+00> : vector<2x128xf32>
    %266 = tpu.matmul %265, %2, %cst_67 {dimension_numbers = #tpu.dot_dimension_numbers<[1], [0], [0], [1], [0, 0, 1, 1], [], []>} : vector<2x48xf32>, vector<48x128xf32>, vector<2x128xf32> -> vector<2x128xf32>
    %267 = arith.addf %266, %45 : vector<2x128xf32>
    %268 = arith.negf %267 : vector<2x128xf32>
    %269 = math.exp %268 : vector<2x128xf32>
    %cst_68 = arith.constant 1.000000e+00 : f32
    %270 = vector.broadcast %cst_68 : f32 to vector<2x128xf32>
    %271 = arith.addf %270, %269 : vector<2x128xf32>
    %272 = arith.divf %270, %271 : vector<2x128xf32>
    %273 = vector.extract_strided_slice %267 {offsets = [0, 64], sizes = [2, 32], strides = [1, 1]} : vector<2x128xf32> to vector<2x32xf32>
    %274 = math.tanh %273 : vector<2x32xf32>
    %275 = vector.extract_strided_slice %272 {offsets = [0, 32], sizes = [2, 32], strides = [1, 1]} : vector<2x128xf32> to vector<2x32xf32>
    %276 = arith.mulf %275, %231 : vector<2x32xf32>
    %277 = vector.extract_strided_slice %272 {offsets = [0, 0], sizes = [2, 32], strides = [1, 1]} : vector<2x128xf32> to vector<2x32xf32>
    %278 = arith.mulf %277, %274 : vector<2x32xf32>
    %279 = arith.addf %276, %278 : vector<2x32xf32>
    %280 = vector.extract_strided_slice %272 {offsets = [0, 96], sizes = [2, 32], strides = [1, 1]} : vector<2x128xf32> to vector<2x32xf32>
    %281 = math.tanh %279 : vector<2x32xf32>
    %282 = arith.mulf %280, %281 : vector<2x32xf32>
    %283 = vector.extract_strided_slice %43 {offsets = [0, 4, 0], sizes = [2, 1, 32], strides = [1, 1, 1]} : vector<2x8x32xf32> to vector<2x1x32xf32>
    %284 = vector.shape_cast %283 : vector<2x1x32xf32> to vector<2x32xf32>
    %285 = tpu.concatenate %282, %284 in 1 : vector<2x32xf32>, vector<2x32xf32> -> vector<2x64xf32>
    %cst_69 = arith.constant dense<0.000000e+00> : vector<2x32xf32>
    %286 = tpu.matmul %285, %5, %cst_69 {dimension_numbers = #tpu.dot_dimension_numbers<[1], [0], [0], [1], [0, 0, 1, 1], [], []>} : vector<2x64xf32>, vector<64x32xf32>, vector<2x32xf32> -> vector<2x32xf32>
    %287 = arith.addf %286, %47 : vector<2x32xf32>
    %cst_70 = arith.constant 0.000000e+00 : f32
    %288 = vector.broadcast %cst_70 : f32 to vector<2x32xf32>
    %289 = arith.maximumf %287, %288 : vector<2x32xf32>
    %cst_71 = arith.constant dense<0.000000e+00> : vector<2x16xf32>
    %290 = tpu.matmul %289, %6, %cst_71 {dimension_numbers = #tpu.dot_dimension_numbers<[1], [0], [0], [1], [0, 0, 1, 1], [], []>} : vector<2x32xf32>, vector<32x16xf32>, vector<2x16xf32> -> vector<2x16xf32>
    %291 = arith.addf %290, %49 : vector<2x16xf32>
    %cst_72 = arith.constant 0.000000e+00 : f32
    %292 = vector.broadcast %cst_72 : f32 to vector<2x16xf32>
    %293 = arith.maximumf %291, %292 : vector<2x16xf32>
    %294 = vector.extract_strided_slice %27 {offsets = [0, 5, 0], sizes = [2, 1, 64], strides = [1, 1, 1]} : vector<2x8x64xf32> to vector<2x1x64xf32>
    %295 = vector.shape_cast %294 : vector<2x1x64xf32> to vector<2x64xf32>
    %cst_73 = arith.constant dense<0.000000e+00> : vector<2x64xf32>
    %296 = tpu.matmul %264, %1, %cst_73 {dimension_numbers = #tpu.dot_dimension_numbers<[1], [0], [0], [1], [0, 0, 1, 1], [], []>} : vector<2x16xf32>, vector<16x64xf32>, vector<2x64xf32> -> vector<2x64xf32>
    %297 = arith.addf %295, %296 : vector<2x64xf32>
    %298 = arith.negf %297 : vector<2x64xf32>
    %299 = math.exp %298 : vector<2x64xf32>
    %cst_74 = arith.constant 1.000000e+00 : f32
    %300 = vector.broadcast %cst_74 : f32 to vector<2x64xf32>
    %301 = arith.addf %300, %299 : vector<2x64xf32>
    %302 = arith.divf %300, %301 : vector<2x64xf32>
    %303 = vector.extract_strided_slice %297 {offsets = [0, 32], sizes = [2, 16], strides = [1, 1]} : vector<2x64xf32> to vector<2x16xf32>
    %304 = math.tanh %303 : vector<2x16xf32>
    %305 = vector.extract_strided_slice %302 {offsets = [0, 16], sizes = [2, 16], strides = [1, 1]} : vector<2x64xf32> to vector<2x16xf32>
    %306 = arith.mulf %305, %261 : vector<2x16xf32>
    %307 = vector.extract_strided_slice %302 {offsets = [0, 0], sizes = [2, 16], strides = [1, 1]} : vector<2x64xf32> to vector<2x16xf32>
    %308 = arith.mulf %307, %304 : vector<2x16xf32>
    %309 = arith.addf %306, %308 : vector<2x16xf32>
    %310 = vector.extract_strided_slice %302 {offsets = [0, 48], sizes = [2, 16], strides = [1, 1]} : vector<2x64xf32> to vector<2x16xf32>
    %311 = math.tanh %309 : vector<2x16xf32>
    %312 = arith.mulf %310, %311 : vector<2x16xf32>
    %313 = tpu.concatenate %312, %282 in 1 : vector<2x16xf32>, vector<2x32xf32> -> vector<2x48xf32>
    %cst_75 = arith.constant dense<0.000000e+00> : vector<2x128xf32>
    %314 = tpu.matmul %313, %2, %cst_75 {dimension_numbers = #tpu.dot_dimension_numbers<[1], [0], [0], [1], [0, 0, 1, 1], [], []>} : vector<2x48xf32>, vector<48x128xf32>, vector<2x128xf32> -> vector<2x128xf32>
    %315 = arith.addf %314, %45 : vector<2x128xf32>
    %316 = arith.negf %315 : vector<2x128xf32>
    %317 = math.exp %316 : vector<2x128xf32>
    %cst_76 = arith.constant 1.000000e+00 : f32
    %318 = vector.broadcast %cst_76 : f32 to vector<2x128xf32>
    %319 = arith.addf %318, %317 : vector<2x128xf32>
    %320 = arith.divf %318, %319 : vector<2x128xf32>
    %321 = vector.extract_strided_slice %315 {offsets = [0, 64], sizes = [2, 32], strides = [1, 1]} : vector<2x128xf32> to vector<2x32xf32>
    %322 = math.tanh %321 : vector<2x32xf32>
    %323 = vector.extract_strided_slice %320 {offsets = [0, 32], sizes = [2, 32], strides = [1, 1]} : vector<2x128xf32> to vector<2x32xf32>
    %324 = arith.mulf %323, %279 : vector<2x32xf32>
    %325 = vector.extract_strided_slice %320 {offsets = [0, 0], sizes = [2, 32], strides = [1, 1]} : vector<2x128xf32> to vector<2x32xf32>
    %326 = arith.mulf %325, %322 : vector<2x32xf32>
    %327 = arith.addf %324, %326 : vector<2x32xf32>
    %328 = vector.extract_strided_slice %320 {offsets = [0, 96], sizes = [2, 32], strides = [1, 1]} : vector<2x128xf32> to vector<2x32xf32>
    %329 = math.tanh %327 : vector<2x32xf32>
    %330 = arith.mulf %328, %329 : vector<2x32xf32>
    %331 = vector.extract_strided_slice %43 {offsets = [0, 5, 0], sizes = [2, 1, 32], strides = [1, 1, 1]} : vector<2x8x32xf32> to vector<2x1x32xf32>
    %332 = vector.shape_cast %331 : vector<2x1x32xf32> to vector<2x32xf32>
    %333 = tpu.concatenate %330, %332 in 1 : vector<2x32xf32>, vector<2x32xf32> -> vector<2x64xf32>
    %cst_77 = arith.constant dense<0.000000e+00> : vector<2x32xf32>
    %334 = tpu.matmul %333, %5, %cst_77 {dimension_numbers = #tpu.dot_dimension_numbers<[1], [0], [0], [1], [0, 0, 1, 1], [], []>} : vector<2x64xf32>, vector<64x32xf32>, vector<2x32xf32> -> vector<2x32xf32>
    %335 = arith.addf %334, %47 : vector<2x32xf32>
    %cst_78 = arith.constant 0.000000e+00 : f32
    %336 = vector.broadcast %cst_78 : f32 to vector<2x32xf32>
    %337 = arith.maximumf %335, %336 : vector<2x32xf32>
    %cst_79 = arith.constant dense<0.000000e+00> : vector<2x16xf32>
    %338 = tpu.matmul %337, %6, %cst_79 {dimension_numbers = #tpu.dot_dimension_numbers<[1], [0], [0], [1], [0, 0, 1, 1], [], []>} : vector<2x32xf32>, vector<32x16xf32>, vector<2x16xf32> -> vector<2x16xf32>
    %339 = arith.addf %338, %49 : vector<2x16xf32>
    %cst_80 = arith.constant 0.000000e+00 : f32
    %340 = vector.broadcast %cst_80 : f32 to vector<2x16xf32>
    %341 = arith.maximumf %339, %340 : vector<2x16xf32>
    %342 = vector.extract_strided_slice %27 {offsets = [0, 6, 0], sizes = [2, 1, 64], strides = [1, 1, 1]} : vector<2x8x64xf32> to vector<2x1x64xf32>
    %343 = vector.shape_cast %342 : vector<2x1x64xf32> to vector<2x64xf32>
    %cst_81 = arith.constant dense<0.000000e+00> : vector<2x64xf32>
    %344 = tpu.matmul %312, %1, %cst_81 {dimension_numbers = #tpu.dot_dimension_numbers<[1], [0], [0], [1], [0, 0, 1, 1], [], []>} : vector<2x16xf32>, vector<16x64xf32>, vector<2x64xf32> -> vector<2x64xf32>
    %345 = arith.addf %343, %344 : vector<2x64xf32>
    %346 = arith.negf %345 : vector<2x64xf32>
    %347 = math.exp %346 : vector<2x64xf32>
    %cst_82 = arith.constant 1.000000e+00 : f32
    %348 = vector.broadcast %cst_82 : f32 to vector<2x64xf32>
    %349 = arith.addf %348, %347 : vector<2x64xf32>
    %350 = arith.divf %348, %349 : vector<2x64xf32>
    %351 = vector.extract_strided_slice %345 {offsets = [0, 32], sizes = [2, 16], strides = [1, 1]} : vector<2x64xf32> to vector<2x16xf32>
    %352 = math.tanh %351 : vector<2x16xf32>
    %353 = vector.extract_strided_slice %350 {offsets = [0, 16], sizes = [2, 16], strides = [1, 1]} : vector<2x64xf32> to vector<2x16xf32>
    %354 = arith.mulf %353, %309 : vector<2x16xf32>
    %355 = vector.extract_strided_slice %350 {offsets = [0, 0], sizes = [2, 16], strides = [1, 1]} : vector<2x64xf32> to vector<2x16xf32>
    %356 = arith.mulf %355, %352 : vector<2x16xf32>
    %357 = arith.addf %354, %356 : vector<2x16xf32>
    %358 = vector.extract_strided_slice %350 {offsets = [0, 48], sizes = [2, 16], strides = [1, 1]} : vector<2x64xf32> to vector<2x16xf32>
    %359 = math.tanh %357 : vector<2x16xf32>
    %360 = arith.mulf %358, %359 : vector<2x16xf32>
    %361 = tpu.concatenate %360, %330 in 1 : vector<2x16xf32>, vector<2x32xf32> -> vector<2x48xf32>
    %cst_83 = arith.constant dense<0.000000e+00> : vector<2x128xf32>
    %362 = tpu.matmul %361, %2, %cst_83 {dimension_numbers = #tpu.dot_dimension_numbers<[1], [0], [0], [1], [0, 0, 1, 1], [], []>} : vector<2x48xf32>, vector<48x128xf32>, vector<2x128xf32> -> vector<2x128xf32>
    %363 = arith.addf %362, %45 : vector<2x128xf32>
    %364 = arith.negf %363 : vector<2x128xf32>
    %365 = math.exp %364 : vector<2x128xf32>
    %cst_84 = arith.constant 1.000000e+00 : f32
    %366 = vector.broadcast %cst_84 : f32 to vector<2x128xf32>
    %367 = arith.addf %366, %365 : vector<2x128xf32>
    %368 = arith.divf %366, %367 : vector<2x128xf32>
    %369 = vector.extract_strided_slice %363 {offsets = [0, 64], sizes = [2, 32], strides = [1, 1]} : vector<2x128xf32> to vector<2x32xf32>
    %370 = math.tanh %369 : vector<2x32xf32>
    %371 = vector.extract_strided_slice %368 {offsets = [0, 32], sizes = [2, 32], strides = [1, 1]} : vector<2x128xf32> to vector<2x32xf32>
    %372 = arith.mulf %371, %327 : vector<2x32xf32>
    %373 = vector.extract_strided_slice %368 {offsets = [0, 0], sizes = [2, 32], strides = [1, 1]} : vector<2x128xf32> to vector<2x32xf32>
    %374 = arith.mulf %373, %370 : vector<2x32xf32>
    %375 = arith.addf %372, %374 : vector<2x32xf32>
    %376 = vector.extract_strided_slice %368 {offsets = [0, 96], sizes = [2, 32], strides = [1, 1]} : vector<2x128xf32> to vector<2x32xf32>
    %377 = math.tanh %375 : vector<2x32xf32>
    %378 = arith.mulf %376, %377 : vector<2x32xf32>
    %379 = vector.extract_strided_slice %43 {offsets = [0, 6, 0], sizes = [2, 1, 32], strides = [1, 1, 1]} : vector<2x8x32xf32> to vector<2x1x32xf32>
    %380 = vector.shape_cast %379 : vector<2x1x32xf32> to vector<2x32xf32>
    %381 = tpu.concatenate %378, %380 in 1 : vector<2x32xf32>, vector<2x32xf32> -> vector<2x64xf32>
    %cst_85 = arith.constant dense<0.000000e+00> : vector<2x32xf32>
    %382 = tpu.matmul %381, %5, %cst_85 {dimension_numbers = #tpu.dot_dimension_numbers<[1], [0], [0], [1], [0, 0, 1, 1], [], []>} : vector<2x64xf32>, vector<64x32xf32>, vector<2x32xf32> -> vector<2x32xf32>
    %383 = arith.addf %382, %47 : vector<2x32xf32>
    %cst_86 = arith.constant 0.000000e+00 : f32
    %384 = vector.broadcast %cst_86 : f32 to vector<2x32xf32>
    %385 = arith.maximumf %383, %384 : vector<2x32xf32>
    %cst_87 = arith.constant dense<0.000000e+00> : vector<2x16xf32>
    %386 = tpu.matmul %385, %6, %cst_87 {dimension_numbers = #tpu.dot_dimension_numbers<[1], [0], [0], [1], [0, 0, 1, 1], [], []>} : vector<2x32xf32>, vector<32x16xf32>, vector<2x16xf32> -> vector<2x16xf32>
    %387 = arith.addf %386, %49 : vector<2x16xf32>
    %cst_88 = arith.constant 0.000000e+00 : f32
    %388 = vector.broadcast %cst_88 : f32 to vector<2x16xf32>
    %389 = arith.maximumf %387, %388 : vector<2x16xf32>
    %390 = vector.extract_strided_slice %27 {offsets = [0, 7, 0], sizes = [2, 1, 64], strides = [1, 1, 1]} : vector<2x8x64xf32> to vector<2x1x64xf32>
    %391 = vector.shape_cast %390 : vector<2x1x64xf32> to vector<2x64xf32>
    %cst_89 = arith.constant dense<0.000000e+00> : vector<2x64xf32>
    %392 = tpu.matmul %360, %1, %cst_89 {dimension_numbers = #tpu.dot_dimension_numbers<[1], [0], [0], [1], [0, 0, 1, 1], [], []>} : vector<2x16xf32>, vector<16x64xf32>, vector<2x64xf32> -> vector<2x64xf32>
    %393 = arith.addf %391, %392 : vector<2x64xf32>
    %394 = arith.negf %393 : vector<2x64xf32>
    %395 = math.exp %394 : vector<2x64xf32>
    %cst_90 = arith.constant 1.000000e+00 : f32
    %396 = vector.broadcast %cst_90 : f32 to vector<2x64xf32>
    %397 = arith.addf %396, %395 : vector<2x64xf32>
    %398 = arith.divf %396, %397 : vector<2x64xf32>
    %399 = vector.extract_strided_slice %393 {offsets = [0, 32], sizes = [2, 16], strides = [1, 1]} : vector<2x64xf32> to vector<2x16xf32>
    %400 = math.tanh %399 : vector<2x16xf32>
    %401 = vector.extract_strided_slice %398 {offsets = [0, 16], sizes = [2, 16], strides = [1, 1]} : vector<2x64xf32> to vector<2x16xf32>
    %402 = arith.mulf %401, %357 : vector<2x16xf32>
    %403 = vector.extract_strided_slice %398 {offsets = [0, 0], sizes = [2, 16], strides = [1, 1]} : vector<2x64xf32> to vector<2x16xf32>
    %404 = arith.mulf %403, %400 : vector<2x16xf32>
    %405 = arith.addf %402, %404 : vector<2x16xf32>
    %406 = vector.extract_strided_slice %398 {offsets = [0, 48], sizes = [2, 16], strides = [1, 1]} : vector<2x64xf32> to vector<2x16xf32>
    %407 = math.tanh %405 : vector<2x16xf32>
    %408 = arith.mulf %406, %407 : vector<2x16xf32>
    %409 = tpu.concatenate %408, %378 in 1 : vector<2x16xf32>, vector<2x32xf32> -> vector<2x48xf32>
    %cst_91 = arith.constant dense<0.000000e+00> : vector<2x128xf32>
    %410 = tpu.matmul %409, %2, %cst_91 {dimension_numbers = #tpu.dot_dimension_numbers<[1], [0], [0], [1], [0, 0, 1, 1], [], []>} : vector<2x48xf32>, vector<48x128xf32>, vector<2x128xf32> -> vector<2x128xf32>
    %411 = arith.addf %410, %45 : vector<2x128xf32>
    %412 = arith.negf %411 : vector<2x128xf32>
    %413 = math.exp %412 : vector<2x128xf32>
    %cst_92 = arith.constant 1.000000e+00 : f32
    %414 = vector.broadcast %cst_92 : f32 to vector<2x128xf32>
    %415 = arith.addf %414, %413 : vector<2x128xf32>
    %416 = arith.divf %414, %415 : vector<2x128xf32>
    %417 = vector.extract_strided_slice %411 {offsets = [0, 64], sizes = [2, 32], strides = [1, 1]} : vector<2x128xf32> to vector<2x32xf32>
    %418 = math.tanh %417 : vector<2x32xf32>
    %419 = vector.extract_strided_slice %416 {offsets = [0, 32], sizes = [2, 32], strides = [1, 1]} : vector<2x128xf32> to vector<2x32xf32>
    %420 = arith.mulf %419, %375 : vector<2x32xf32>
    %421 = vector.extract_strided_slice %416 {offsets = [0, 0], sizes = [2, 32], strides = [1, 1]} : vector<2x128xf32> to vector<2x32xf32>
    %422 = arith.mulf %421, %418 : vector<2x32xf32>
    %423 = arith.addf %420, %422 : vector<2x32xf32>
    %424 = vector.extract_strided_slice %416 {offsets = [0, 96], sizes = [2, 32], strides = [1, 1]} : vector<2x128xf32> to vector<2x32xf32>
    %425 = math.tanh %423 : vector<2x32xf32>
    %426 = arith.mulf %424, %425 : vector<2x32xf32>
    %427 = vector.extract_strided_slice %43 {offsets = [0, 7, 0], sizes = [2, 1, 32], strides = [1, 1, 1]} : vector<2x8x32xf32> to vector<2x1x32xf32>
    %428 = vector.shape_cast %427 : vector<2x1x32xf32> to vector<2x32xf32>
    %429 = tpu.concatenate %426, %428 in 1 : vector<2x32xf32>, vector<2x32xf32> -> vector<2x64xf32>
    %cst_93 = arith.constant dense<0.000000e+00> : vector<2x32xf32>
    %430 = tpu.matmul %429, %5, %cst_93 {dimension_numbers = #tpu.dot_dimension_numbers<[1], [0], [0], [1], [0, 0, 1, 1], [], []>} : vector<2x64xf32>, vector<64x32xf32>, vector<2x32xf32> -> vector<2x32xf32>
    %431 = arith.addf %430, %47 : vector<2x32xf32>
    %cst_94 = arith.constant 0.000000e+00 : f32
    %432 = vector.broadcast %cst_94 : f32 to vector<2x32xf32>
    %433 = arith.maximumf %431, %432 : vector<2x32xf32>
    %cst_95 = arith.constant dense<0.000000e+00> : vector<2x16xf32>
    %434 = tpu.matmul %433, %6, %cst_95 {dimension_numbers = #tpu.dot_dimension_numbers<[1], [0], [0], [1], [0, 0, 1, 1], [], []>} : vector<2x32xf32>, vector<32x16xf32>, vector<2x16xf32> -> vector<2x16xf32>
    %435 = arith.addf %434, %49 : vector<2x16xf32>
    %cst_96 = arith.constant 0.000000e+00 : f32
    %436 = vector.broadcast %cst_96 : f32 to vector<2x16xf32>
    %437 = arith.maximumf %435, %436 : vector<2x16xf32>
    %438 = tpu.concatenate %101, %149, %197, %245, %293, %341, %389, %437 in 1 : vector<2x16xf32>, vector<2x16xf32>, vector<2x16xf32>, vector<2x16xf32>, vector<2x16xf32>, vector<2x16xf32>, vector<2x16xf32>, vector<2x16xf32> -> vector<2x128xf32>
    %cst_97 = arith.constant dense<0.000000e+00> : vector<2x32xf32>
    %439 = tpu.matmul %438, %7, %cst_97 {dimension_numbers = #tpu.dot_dimension_numbers<[1], [0], [0], [1], [0, 0, 1, 1], [], []>} : vector<2x128xf32>, vector<128x32xf32>, vector<2x32xf32> -> vector<2x32xf32>
    %440 = vector.broadcast %16 : vector<1x32xf32> to vector<2x32xf32>
    %441 = arith.addf %439, %440 : vector<2x32xf32>
    %cst_98 = arith.constant 0.000000e+00 : f32
    %442 = vector.broadcast %cst_98 : f32 to vector<2x32xf32>
    %443 = arith.maximumf %441, %442 : vector<2x32xf32>
    %cst_99 = arith.constant dense<0.000000e+00> : vector<2x4xf32>
    %444 = tpu.matmul %443, %8, %cst_99 {dimension_numbers = #tpu.dot_dimension_numbers<[1], [0], [0], [1], [0, 0, 1, 1], [], []>} : vector<2x32xf32>, vector<32x4xf32>, vector<2x4xf32> -> vector<2x4xf32>
    %445 = vector.broadcast %17 : vector<1x4xf32> to vector<2x4xf32>
    %446 = arith.addf %444, %445 : vector<2x4xf32>
    %447 = vector.shape_cast %446 : vector<2x4xf32> to vector<2x1x4xf32>
    %448 = vector.shape_cast %447 : vector<2x1x4xf32> to vector<2x1x4xf32>
    %449 = vector.broadcast %448 : vector<2x1x4xf32> to vector<2x4x4xf32>
    %c0_100 = arith.constant 0 : index
    %c0_101 = arith.constant 0 : index
    %c0_102 = arith.constant 0 : index
    %450 = vector.load %arg3[%c0_100, %c0_101, %c0_102] : memref<2x4x4xf32, #tpu.memory_space<vmem>>, vector<2x4x4xf32>
    tpu.vector_store %arg3[%c0_100, %c0_101, %c0_102], %449 {strides = array<i32>} : memref<2x4x4xf32, #tpu.memory_space<vmem>>, vector<2x4x4xf32>,
    return
  }
}

</mosaic_0001>

<bundles_post_ra>
// kernel: mlae_forward.1
= control target key start
LH: loop header
LB: loop body
LE: loop exit
PB: predicated region body
PF: predicated region fallthrough
CT: control target
= control target key end

     0   :  { %8 = vsyncpa [#allocation3], 0  ;;  %s3333_s0 = inlined_call_operand.vmem [shape: f32[2,8,4], index: 0, kind: input, shape index: {}]   ;;  %s3334_s1 = inlined_call_operand.vmem [shape: f32[2,8,8], index: 1, kind: input, shape index: {}]   ;;  %s3335_s2 = inlined_call_operand.hbm [shape: f32[384,128], index: 2, kind: input, shape index: {}]   ;;  %s3336_s3 = inlined_call_operand.hbm [shape: f32[2,4,4], index: 3, kind: output, shape index: {}]  }
   0x1   :  { %9 = vsyncpa [#allocation4], 0  ;;  %s18_s14 = sshll.u32 %s3335_s2, 4  ;;  %s2645_s15 = smov [#allocation2]   ;;  %s19_s14 = int_to_ptr.hbm [resolvable:$true] %s18_s14 }
   0x2   :  { %s20_s16 = sshll.u32 %s2645_s15, 4  ;;  %s2646_s17 = smov 128   ;;  %s21_s16 = int_to_ptr.vmem [resolvable:$true] %s20_s16 }
   0x3   :  { %s2647_s18 = smov 8  }
   0x4   :  { %26 = dma.hbm_to_vmem [thread:$0]  %s19_s14, 6144, %s21_s16, [#allocation3], %s2646_s17, %s2646_s17, %s2647_s18  }
   0x5   :  { %2641 = dma.done.wait [#allocation3], 6144  }
   0x6   :  { %2642 = vsyncadd [#allocation3], 4294961152  ;;  %vm108_vm0 = vcmask 1043456   ;;  %v88_v0 = vld [vmem:[%s3334_s1] sm:$0xff]  ;;  %v2684_v1 = vld [vmem:[#allocation2 + $0x18] sm:$0xff]  ;;  %s2648_s21 = smov 4  }
   0x7   :  { %92 = vrot.lane.b32.xlu0 %v88_v0, %s2648_s21  ;;  %236 = vmatpush.msra.mxu3 %v2684_v1  ;;  %v2688_v2 = vld [vmem:[#allocation2 + $0x10] sm:$0xff]  ;;  %v32_v3 = vld [vmem:[#allocation2 + $0x8] sm:$0xf]  ;;  %v2649_v4 = vmov 0.0   ;;  %v31_v6 = vld [vmem:[#allocation2] sm:$0xff]  ;;  %s2650_s23 = smov 64  }
   0x8   :  { %2293 = vmatpush.msk.msra.mxu0 %vm108_vm0, %v32_v3  ;;  %v89_v5 = vld [vmem:[%s3334_s1 + $0x8] sm:$0xff]  ;;  %v2369_v7 = vld [vmem:[#allocation2 + $0x171] ss:$0 sm:$0xff]  ;;  %v86_v8 = vld [vmem:[%s3333_s0] sm:$0xff]  ;;  %vm98_vm1 = vcmask 31744   ;;  %vm101_vm2 = vcmask 97280  }
   0x9   :  { %237 = vmatpush.msra.mxu3 %v2688_v2  ;;  %140 = vrot.lane.b32.xlu1 %v2369_v7, %s2650_s23  ;;  %v87_v11 = vld [vmem:[%s3333_s0 + $0x8] sm:$0xff]  ;;  %v2370_v14 = vld [vmem:[#allocation2 + $0x170] ss:$0 sm:$0xff]  ;;  %s2651_s0 = smov 96   ;;  %v42_v34 = vld [vmem:[#allocation2 + $0x58] sm:$0xff]  ;;  %s2652_s1 = smov 16  }
   0xa   :  { %238 = vmatmul.f32.vlgmr.msra.gmra.mxu3 %v2649_v4  ;;  %127 = vmatpush.msra.mxu0 %v31_v6  ;;  %v41_v35 = vld [vmem:[#allocation2 + $0x50] sm:$0xff]  ;;  %vm154_vm7 = vcmask 130048   ;;  %v44_v0 = vld [vmem:[#allocation2 + $0x68] sm:$0xff]  ;;  %v43_v3 = vld [vmem:[#allocation2 + $0x60] sm:$0xff]  ;;  %s2653_s28 = smov 32   ;;  %vm325_vm12 = vcmask 1041409  }
   0xb   :  { %173 = vmatpush.msra.mxu1 %v42_v34  ;;  %205 = vmatpush.msra.mxu2 %v44_v0  ;;  %s2654_s29 = smov 80   ;;  %vm331_vm13 = vcmask 392192   ;;  %s2655_s30 = smov 48  }
   0xc   :  { %s2656_s4 = smov 112   ;;  %s2657_s5 = smov [#allocation5]  }
   0xd   :  { %174 = vmatpush.msra.mxu1 %v41_v35  ;;  %206 = vmatpush.msra.mxu2 %v43_v3  ;;  %s2278_s6 = sshll.u32 %s2657_s5, 4  ;;  %s2280_s9 = sshll.u32 %s3336_s3, 4  ;;  %s2279_s6 = int_to_ptr.vmem [resolvable:$true] %s2278_s6  ;;  %s2281_s9 = int_to_ptr.hbm [resolvable:$true] %s2280_s9 }
   0xf   :  { %94 = vrot.lane.b32.xlu0 %v89_v5, %s2648_s21  ;;  %470 = vmatpush.msrb.mxu2 %v2684_v1 }
  0x11   :  { %471 = vmatpush.msrb.mxu2 %v2688_v2 }
  0x79   :  { %v93_v9 = vpop.permute.xlu0 %92 }
  0x7a   :  { %v99_v10 = vsel %vm98_vm1, %v86_v8, %v93_v9 }
  0x7b   :  { %2294 = vmatmul.msk.f32.vlgmr.msra.gmra.mxu0 %vm101_vm2, %v99_v10  ;;  %v141_v15 = vpop.permute.xlu1 %140 }
  0x81   :  { %v95_v12 = vpop.permute.xlu0 %94 }
  0x82   :  { %v100_v13 = vsel %vm98_vm1, %v87_v11, %v95_v12  ;;  %v2371_v12 = vld [vmem:[#allocation2 + $0x173] ss:$0 sm:$0xff] }
  0x83   :  { %2295 = vmatmul.msk.f32.gmra.mxu0 %vm101_vm2, %v100_v13 }
  0x8d   :  { %v239_v17 = vpop.f32.mrf.mxu3 }
  0x8e   :  { %v243_v22 = vrot.slane %v239_v17, 1 }
  0xf8   :  { %v129_v16 = vpop.f32.mrf.mxu0 }
  0xf9   :  { %v2702_v18 = vadd.f32 %v2370_v14, %v129_v16  ;;  %v143_v19 = vadd.f32 %v141_v15, %v129_v16 }
  0xfb   :  { %v145_v20 = vmax.f32 %v143_v19, 0.0  ;;  %v246_v21 = vadd.f32 %v239_v17, %v2702_v18 }
  0xfd   :  { %2378 = vtanh.f32 %v246_v21  ;;  %150 = vrot.lane.b32.xlu1 %v145_v20, %s2650_s23  ;;  %v2300_v33 = vmul.f32 -1.442695, %v246_v21 }
 0x100   :  { %v132_v23 = vpop.f32.mrf.mxu0 }
 0x101   :  { %v2706_v24 = vadd.f32 %v2370_v14, %v132_v23  ;;  %v144_v25 = vadd.f32 %v141_v15, %v132_v23 }
 0x103   :  { %v2379_v26 = vpop.eup %2378  ;;  %v146_v27 = vmax.f32 %v144_v25, 0.0  ;;  %v247_v28 = vadd.f32 %v243_v22, %v2706_v24 }
 0x104   :  { %292 = vrot.lane.b32.xlu0 %v2379_v26, %s2651_s0 }
 0x105   :  { %152 = vrot.lane.b32.xlu2 %v146_v27, %s2650_s23  ;;  %2380 = vtanh.f32 %v247_v28  ;;  %v2301_v30 = vmul.f32 -1.442695, %v247_v28  ;;  %v2732_v27 = vld [vmem:[#allocation2 + $0x48] sm:$0xff]  ;;  %v2734_v28 = vld [vmem:[#allocation2 + $0x40] sm:$0xff] }
 0x106   :  { %345 = vmatpush.msrb.mxu3 %v2732_v27 }
 0x107   :  { %2382 = vpow2.f32 %v2301_v30  ;;  %v2740_v30 = vld [vmem:[#allocation2 + $0x30] sm:$0xff] }
 0x108   :  { %346 = vmatpush.msrb.mxu3 %v2734_v28 }
 0x10b   :  { %v2381_v29 = vpop.eup %2380 }
 0x10d   :  { %294 = vrot.lane.b32.xlu2 %v2381_v29, %s2651_s0  ;;  %v2383_v31 = vpop.eup %2382  ;;  %v2737_v29 = vld [vmem:[#allocation2 + $0x38] sm:$0xff] }
 0x10e   :  { %v255_v32 = vadd.f32 1.0, %v2383_v31  ;;  %347 = vmatpush.msrb.mxu3 %v2737_v29  ;;  %v2743_v31 = vld [vmem:[#allocation2 + $0x28] sm:$0xff] }
 0x110   :  { %2384 = vrcp.f32 %v255_v32  ;;  %v282_v45 = vand.u32 2147483648, %v255_v32  ;;  %vm276_vm4 = vweird.f32 %v255_v32  ;;  %v280_v46 = vand.u32 2147483647, %v255_v32  ;;  %348 = vmatpush.msrb.mxu3 %v2740_v30 }
 0x111   :  { %2386 = vpow2.f32 %v2300_v33 }
 0x112   :  { %v283_v49 = vor.u32 1.1754944e-38, %v282_v45  ;;  %vm281_vm6 = vcmp.eq.f32.partialorder %v280_v46, 8.507059e+37  ;;  %349 = vmatpush.msrb.mxu3 %v2743_v31 }
 0x116   :  { %v2385_v36 = vpop.eup %2384 }
 0x117   :  { %v2387_v37 = vpop.eup %2386  ;;  %v272_v38 = vmul.f32 %v2385_v36, %v255_v32  ;;  %vm277_vm3 = vweird.f32 %v2385_v36  ;;  %v2372_v32 = vld [vmem:[#allocation2 + $0x174] ss:$0 sm:$0xff] }
 0x118   :  { %v254_v39 = vadd.f32 1.0, %v2387_v37  ;;  %vm278_vm5 = vmor %vm276_vm4, %vm277_vm3 }
 0x119   :  { %v273_v40 = vsub.f32 1.0, %v272_v38 }
 0x11a   :  { %2388 = vrcp.f32 %v254_v39  ;;  %v267_v57 = vand.u32 2147483648, %v254_v39  ;;  %vm261_vm9 = vweird.f32 %v254_v39  ;;  %v265_v58 = vand.u32 2147483647, %v254_v39 }
 0x11b   :  { %v274_v41 = vmul.f32 %v2385_v36, %v273_v40 }
 0x11c   :  { %v268_v60 = vor.u32 1.1754944e-38, %v267_v57  ;;  %vm266_vm11 = vcmp.eq.f32.partialorder %v265_v58, 8.507059e+37 }
 0x11d   :  { %v275_v44 = vadd.f32 %v2385_v36, %v274_v41 }
 0x11f   :  { %v279_v48 = vsel %vm278_vm5, %v2385_v36, %v275_v44 }
 0x120   :  { %v2389_v43 = vpop.eup %2388  ;;  %v284_v51 = vsel %vm281_vm6, %v283_v49, %v279_v48 }
 0x121   :  { %v257_v47 = vmul.f32 %v2389_v43, %v254_v39  ;;  %vm262_vm8 = vweird.f32 %v2389_v43  ;;  %v289_v7 = vmul.f32 0.0, %v284_v51 }
 0x122   :  { %vm263_vm10 = vmor %vm261_vm9, %vm262_vm8 }
 0x123   :  { %v258_v52 = vsub.f32 1.0, %v257_v47 }
 0x125   :  { %v259_v54 = vmul.f32 %v2389_v43, %v258_v52 }
 0x127   :  { %v260_v56 = vadd.f32 %v2389_v43, %v259_v54 }
 0x129   :  { %v264_v59 = vsel %vm263_vm10, %v2389_v43, %v260_v56 }
 0x12a   :  { %v269_v62 = vsel %vm266_vm11, %v268_v60, %v264_v59  ;;  %v2786_v59 = vld [vmem:[#allocation2 + $0x20] sm:$0xff]  ;;  %vm565_vm11 = vcmask 1042434  }
 0x12b   :  { %v288_v4 = vmul.f32 0.0, %v269_v62  ;;  %350 = vmatpush.msrb.mxu3 %v2786_v59 }
 0x12d   :  { %589 = vmatpush.msra.mxu3 %v2732_v27 }
 0x12f   :  { %590 = vmatpush.msra.mxu3 %v2734_v28 }
 0x131   :  { %591 = vmatpush.msra.mxu3 %v2737_v29 }
 0x133   :  { %592 = vmatpush.msra.mxu3 %v2740_v30 }
 0x135   :  { %593 = vmatpush.msra.mxu3 %v2743_v31 }
 0x137   :  { %594 = vmatpush.msra.mxu3 %v2786_v59 }
 0x15f   :  { %v153_v42 = vpop.permute.xlu2 %152 }
 0x167   :  { %v295_v50 = vpop.permute.xlu2 %294 }
 0x168   :  { %v299_v53 = vmul.f32 %v295_v50, %v284_v51 }
 0x16a   :  { %304 = vrot.lane.b32.xlu1 %v299_v53, %s2652_s1 }
 0x16f   :  { %v151_v55 = vpop.permute.xlu1 %150 }
 0x170   :  { %2296 = vmatmul.msk.f32.vlgmr.msra.gmra.mxu1 %vm154_vm7, %v151_v55 }
 0x176   :  { %v293_v61 = vpop.permute.xlu0 %292 }
 0x177   :  { %v298_v63 = vmul.f32 %v293_v61, %v269_v62 }
 0x178   :  { %2297 = vmatmul.msk.f32.gmra.mxu1 %vm154_vm7, %v153_v42 }
 0x179   :  { %302 = vrot.lane.b32.xlu2 %v298_v63, %s2652_s1 }
 0x1d3   :  { %v303_v5 = vpop.permute.xlu2 %302 }
 0x1d4   :  { %v2717_v6 = vadd.f32 %v303_v5, %v288_v4 }
 0x1d6   :  { %2390 = vtanh.f32 %v2717_v6 }
 0x1dc   :  { %v2391_v8 = vpop.eup %2390  ;;  %v305_v9 = vpop.permute.xlu1 %304 }
 0x1dd   :  { %v2721_v10 = vadd.f32 %v305_v9, %v289_v7  ;;  %314 = vrot.lane.b32.xlu1 %v2391_v8, %s2653_s28 }
 0x1df   :  { %2392 = vtanh.f32 %v2721_v10 }
 0x1e5   :  { %v2393_v11 = vpop.eup %2392 }
 0x1e6   :  { %316 = vrot.lane.b32.xlu0 %v2393_v11, %s2653_s28 }
 0x1ed   :  { %v176_v13 = vpop.f32.mrf.mxu1 }
 0x1ee   :  { %v177_v14 = vadd.f32 %v2371_v12, %v176_v13 }
 0x1f0   :  { %v182_v15 = vmax.f32 %v177_v14, 0.0 }
 0x1f2   :  { %2298 = vmatmul.msk.f32.vlgmr.msra.gmra.mxu2 %vm154_vm7, %v182_v15 }
 0x1f3   :  { %714 = vmatpush.msra.mxu2 %v2684_v1 }
 0x1f5   :  { %v179_v16 = vpop.f32.mrf.mxu1  ;;  %715 = vmatpush.msra.mxu2 %v2688_v2 }
 0x1f6   :  { %v180_v17 = vadd.f32 %v2371_v12, %v179_v16 }
 0x1f8   :  { %v183_v19 = vmax.f32 %v180_v17, 0.0 }
 0x1fa   :  { %2299 = vmatmul.msk.f32.gmra.mxu2 %vm154_vm7, %v183_v19 }
 0x24f   :  { %v315_v20 = vpop.permute.xlu1 %314 }
 0x250   :  { %v320_v23 = vmul.f32 %v315_v20, %v269_v62  ;;  %v2798_v62 = vld [vmem:[#allocation2 + $0x172] ss:$0 sm:$0xff] }
 0x258   :  { %v317_v21 = vpop.permute.xlu0 %316 }
 0x259   :  { %v321_v22 = vmul.f32 %v317_v21, %v284_v51 }
 0x25b   :  { %v324_v25 = vrot.slane %v321_v22, 7 }
 0x25d   :  { %v326_v26 = vsel %vm325_vm12, %v324_v25, %v320_v23 }
 0x25e   :  { %327 = vrot.lane.b32.xlu2 %v326_v26, %s2654_s29 }
 0x275   :  { %v208_v33 = vpop.f32.mrf.mxu2 }
 0x276   :  { %v209_v34 = vadd.f32 %v2372_v32, %v208_v33 }
 0x278   :  { %v2747_v35 = vmax.f32 %v209_v34, 0.0 }
 0x27a   :  { %v885_v39 = vrot.slane %v2747_v35, 2  ;;  %v1132_v40 = vrot.slane %v2747_v35, 3  ;;  %v1379_v41 = vrot.slane %v2747_v35, 4  ;;  %v1626_v42 = vrot.slane %v2747_v35, 5 }
 0x27b   :  { %v1873_v43 = vrot.slane %v2747_v35, 6  ;;  %v2126_v47 = vrot.slane %v2747_v35, 7 }
 0x27d   :  { %v211_v36 = vpop.f32.mrf.mxu2 }
 0x27e   :  { %v212_v37 = vadd.f32 %v2372_v32, %v211_v36 }
 0x280   :  { %v2749_v38 = vmax.f32 %v212_v37, 0.0 }
 0x282   :  { %v398_v44 = vrot.slane %v2749_v38, 7  ;;  %v886_v45 = vrot.slane %v2749_v38, 1  ;;  %v1133_v46 = vrot.slane %v2749_v38, 2  ;;  %v1380_v48 = vrot.slane %v2749_v38, 3 }
 0x283   :  { %v1627_v49 = vrot.slane %v2749_v38, 4  ;;  %v1874_v50 = vrot.slane %v2749_v38, 5  ;;  %v2127_v51 = vrot.slane %v2749_v38, 6 }
 0x284   :  { %v2766_v52 = vsel %vm325_vm12, %v398_v44, %v2747_v35  ;;  %v2769_v53 = vsel %vm325_vm12, %v886_v45, %v885_v39  ;;  %v2772_v54 = vsel %vm325_vm12, %v1133_v46, %v1132_v40  ;;  %v2775_v55 = vsel %vm325_vm12, %v1380_v48, %v1379_v41 }
 0x285   :  { %v2778_v56 = vsel %vm325_vm12, %v1627_v49, %v1626_v42  ;;  %v2781_v57 = vsel %vm325_vm12, %v1874_v50, %v1873_v43  ;;  %v2784_v58 = vsel %vm325_vm12, %v2127_v51, %v2126_v47 }
 0x2b8   :  { %v328_v60 = vpop.permute.xlu2 %327 }
 0x2b9   :  { %v330_v61 = vsel %vm154_vm7, %v328_v60, 0.0  ;;  %2306 = vmatmul.msk.f32.vlgmr.msrb.gmra.mxu2 %vm154_vm7, %v328_v60 }
 0x2ba   :  { %2302 = vmatmul.msk.f32.vlgmr.msrb.gmra.mxu3 %vm331_vm13, %v330_v61 }
 0x33c   :  { %v473_v63 = vpop.f32.mrf.mxu2 }
 0x33d   :  { %v477_v0 = vrot.slane %v473_v63, 7  ;;  %v481_v3 = vadd.f32 %v473_v63, %v2706_v24  ;;  %v352_v4 = vpop.f32.mrf.mxu3 }
 0x33e   :  { %v353_v5 = vadd.f32 %v2798_v62, %v352_v4 }
 0x33f   :  { %v480_v7 = vadd.f32 %v477_v0, %v2702_v18  ;;  %2394 = vtanh.f32 %v481_v3  ;;  %v2308_v15 = vmul.f32 -1.442695, %v481_v3 }
 0x340   :  { %2396 = vtanh.f32 %v353_v5  ;;  %v2303_v16 = vmul.f32 -1.442695, %v353_v5 }
 0x341   :  { %2398 = vtanh.f32 %v480_v7  ;;  %v2307_v12 = vmul.f32 -1.442695, %v480_v7 }
 0x343   :  { %2400 = vpow2.f32 %v2307_v12 }
 0x345   :  { %v2395_v8 = vpop.eup %2394 }
 0x346   :  { %v2397_v9 = vpop.eup %2396  ;;  %534 = vrot.lane.b32.xlu0 %v2395_v8, %s2651_s0 }
 0x347   :  { %377 = vrot.lane.b32.xlu1 %v2397_v9, %s2650_s23  ;;  %v2399_v11 = vpop.eup %2398 }
 0x348   :  { %532 = vrot.lane.b32.xlu2 %v2399_v11, %s2651_s0 }
 0x349   :  { %v2401_v13 = vpop.eup %2400 }
 0x34a   :  { %v488_v14 = vadd.f32 1.0, %v2401_v13 }
 0x34c   :  { %2402 = vrcp.f32 %v488_v14  ;;  %v501_v33 = vand.u32 2147483648, %v488_v14  ;;  %vm495_vm15 = vweird.f32 %v488_v14  ;;  %v499_v34 = vand.u32 2147483647, %v488_v14 }
 0x34d   :  { %2404 = vpow2.f32 %v2308_v15  ;;  %v524_v15 = vrot.slane %v2717_v6, 7 }
 0x34e   :  { %2406 = vpow2.f32 %v2303_v16  ;;  %v502_v37 = vor.u32 1.1754944e-38, %v501_v33  ;;  %vm500_vm1 = vcmp.eq.f32.partialorder %v499_v34, 8.507059e+37 }
 0x352   :  { %v2403_v17 = vpop.eup %2402 }
 0x353   :  { %v491_v19 = vmul.f32 %v2403_v17, %v488_v14  ;;  %v2405_v21 = vpop.eup %2404  ;;  %vm496_vm14 = vweird.f32 %v2403_v17 }
 0x354   :  { %v2407_v22 = vpop.eup %2406  ;;  %v489_v23 = vadd.f32 1.0, %v2405_v21  ;;  %vm497_vm0 = vmor %vm495_vm15, %vm496_vm14  ;;  %v525_v21 = vrot.slane %v2721_v10, 7 }
 0x355   :  { %v492_v20 = vsub.f32 1.0, %v491_v19  ;;  %v358_v26 = vadd.f32 1.0, %v2407_v22 }
 0x356   :  { %2408 = vrcp.f32 %v489_v23  ;;  %v516_v51 = vand.u32 2147483648, %v489_v23  ;;  %vm510_vm4 = vweird.f32 %v489_v23  ;;  %v514_v61 = vand.u32 2147483647, %v489_v23 }
 0x357   :  { %v493_v25 = vmul.f32 %v2403_v17, %v492_v20  ;;  %2410 = vrcp.f32 %v358_v26  ;;  %v370_v63 = vand.u32 2147483648, %v358_v26  ;;  %vm364_vm6 = vweird.f32 %v358_v26 }
 0x358   :  { %v368_v0 = vand.u32 2147483647, %v358_v26  ;;  %v517_v4 = vor.u32 1.1754944e-38, %v516_v51  ;;  %vm515_vm9 = vcmp.eq.f32.partialorder %v514_v61, 8.507059e+37 }
 0x359   :  { %v494_v32 = vadd.f32 %v2403_v17, %v493_v25  ;;  %v371_v7 = vor.u32 1.1754944e-38, %v370_v63 }
 0x35a   :  { %vm369_vm10 = vcmp.eq.f32.partialorder %v368_v0, 8.507059e+37  ;;  %v640_v0 = vrot.slane %v2747_v35, 1 }
 0x35b   :  { %v498_v36 = vsel %vm497_vm0, %v2403_v17, %v494_v32 }
 0x35c   :  { %v2409_v39 = vpop.eup %2408  ;;  %v503_v42 = vsel %vm500_vm1, %v502_v37, %v498_v36 }
 0x35d   :  { %v2411_v40 = vpop.eup %2410  ;;  %v506_v44 = vmul.f32 %v2409_v39, %v489_v23  ;;  %vm511_vm2 = vweird.f32 %v2409_v39  ;;  %v528_v16 = vmul.f32 %v524_v15, %v503_v42 }
 0x35e   :  { %v360_v45 = vmul.f32 %v2411_v40, %v358_v26  ;;  %vm365_vm3 = vweird.f32 %v2411_v40  ;;  %vm512_vm5 = vmor %vm510_vm4, %vm511_vm2  ;;  %vm403_vm2 = vcmask 261120  }
 0x35f   :  { %v507_v46 = vsub.f32 1.0, %v506_v44  ;;  %vm366_vm8 = vmor %vm364_vm6, %vm365_vm3  ;;  %vm405_vm3 = vcmask 523264  }
 0x360   :  { %v361_v47 = vsub.f32 1.0, %v360_v45 }
 0x361   :  { %v508_v48 = vmul.f32 %v2409_v39, %v507_v46 }
 0x362   :  { %v362_v49 = vmul.f32 %v2411_v40, %v361_v47 }
 0x363   :  { %v509_v50 = vadd.f32 %v2409_v39, %v508_v48 }
 0x364   :  { %v363_v60 = vadd.f32 %v2411_v40, %v362_v49 }
 0x365   :  { %v513_v3 = vsel %vm512_vm5, %v2409_v39, %v509_v50 }
 0x366   :  { %v367_v5 = vsel %vm366_vm8, %v2411_v40, %v363_v60  ;;  %v518_v9 = vsel %vm515_vm9, %v517_v4, %v513_v3  ;;  %v641_v3 = vsel %vm325_vm12, %v2749_v38, %v640_v0  ;;  %v2843_v38 = vld [vmem:[#allocation2 + $0x98] sm:$0xff] }
 0x367   :  { %v372_v13 = vsel %vm369_vm10, %v371_v7, %v367_v5  ;;  %v529_v22 = vmul.f32 %v525_v21, %v518_v9 }
 0x368   :  { %v375_v25 = vmul.f32 0.0, %v372_v13 }
 0x3a2   :  { %v533_v41 = vpop.permute.xlu2 %532 }
 0x3a3   :  { %v538_v43 = vmul.f32 %v533_v41, %v503_v42 }
 0x3a5   :  { %542 = vrot.lane.b32.xlu2 %v538_v43, %s2652_s1 }
 0x3b8   :  { %v535_v8 = vpop.permute.xlu0 %534 }
 0x3b9   :  { %v539_v11 = vmul.f32 %v535_v8, %v518_v9  ;;  %v378_v12 = vpop.permute.xlu1 %377 }
 0x3ba   :  { %v380_v14 = vmul.f32 %v378_v12, %v372_v13  ;;  %v2837_v12 = vld [vmem:[#allocation2 + $0xa8] sm:$0xff] }
 0x3bb   :  { %544 = vrot.lane.b32.xlu0 %v539_v11, %s2652_s1  ;;  %417 = vmatpush.msrb.mxu0 %v2837_v12 }
 0x3bc   :  { %382 = vrot.lane.b32.xlu1 %v380_v14, %s2653_s28  ;;  %903 = vmatpush.msrb.mxu2 %v2837_v12 }
 0x3ff   :  { %v543_v17 = vpop.permute.xlu2 %542 }
 0x400   :  { %v2810_v19 = vadd.f32 %v543_v17, %v528_v16 }
 0x402   :  { %2412 = vtanh.f32 %v2810_v19 }
 0x408   :  { %v2413_v20 = vpop.eup %2412 }
 0x409   :  { %554 = vrot.lane.b32.xlu2 %v2413_v20, %s2653_s28 }
 0x42d   :  { %v545_v23 = vpop.permute.xlu0 %544 }
 0x42e   :  { %v2815_v26 = vadd.f32 %v545_v23, %v529_v22  ;;  %v383_v32 = vpop.permute.xlu1 %382 }
 0x42f   :  { %v2817_v33 = vadd.f32 %v383_v32, %v375_v25 }
 0x430   :  { %2414 = vtanh.f32 %v2815_v26 }
 0x431   :  { %2416 = vtanh.f32 %v2817_v33 }
 0x436   :  { %v2415_v6 = vpop.eup %2414 }
 0x437   :  { %v2417_v34 = vpop.eup %2416  ;;  %556 = vrot.lane.b32.xlu0 %v2415_v6, %s2653_s28 }
 0x438   :  { %388 = vrot.lane.b32.xlu1 %v2417_v34, %s2650_s23 }
 0x463   :  { %v555_v36 = vpop.permute.xlu2 %554 }
 0x464   :  { %v560_v10 = vmul.f32 %v555_v36, %v503_v42 }
 0x466   :  { %v694_v39 = vrot.slane %v560_v10, 1 }
 0x4a9   :  { %v557_v37 = vpop.permute.xlu0 %556 }
 0x4aa   :  { %v561_v40 = vmul.f32 %v557_v37, %v518_v9  ;;  %v389_v41 = vpop.permute.xlu1 %388  ;;  %v2862_v37 = vld [vmem:[#allocation2 + $0x88] sm:$0xff] }
 0x4ab   :  { %v391_v43 = vmul.f32 %v389_v41, %v372_v13  ;;  %v2839_v13 = vld [vmem:[#allocation2 + $0xa0] sm:$0xff] }
 0x4ac   :  { %v564_v44 = vrot.slane %v561_v40, 7  ;;  %v695_v45 = vsel %vm325_vm12, %v561_v40, %v694_v39  ;;  %418 = vmatpush.msrb.mxu0 %v2839_v13  ;;  %904 = vmatpush.msrb.mxu2 %v2839_v13  ;;  %v2866_v39 = vld [vmem:[#allocation2 + $0x80] sm:$0xff]  ;;  %v2874_v40 = vld [vmem:[#allocation2 + $0x70] sm:$0xff] }
 0x4ad   :  { %v570_v46 = vrot.slane %v391_v43, 7  ;;  %696 = vrot.lane.b32.xlu2 %v695_v45, %s2654_s29 }
 0x4ae   :  { %v566_v47 = vsel %vm565_vm11, %v564_v44, %v560_v10  ;;  %419 = vmatpush.msrb.mxu0 %v2843_v38  ;;  %905 = vmatpush.msrb.mxu2 %v2843_v38  ;;  %v2860_v10 = vld [vmem:[#allocation2 + $0x90] sm:$0xff] }
 0x4af   :  { %567 = vrot.lane.b32.xlu0 %v566_v47, %s2654_s29  ;;  %571 = vrot.lane.b32.xlu1 %v570_v46, %s2655_s30 }
 0x4b0   :  { %420 = vmatpush.msrb.mxu0 %v2860_v10  ;;  %906 = vmatpush.msrb.mxu2 %v2860_v10 }
 0x4b2   :  { %421 = vmatpush.msrb.mxu0 %v2862_v37  ;;  %907 = vmatpush.msrb.mxu2 %v2862_v37 }
 0x4b4   :  { %422 = vmatpush.msrb.mxu0 %v2866_v39  ;;  %908 = vmatpush.msrb.mxu2 %v2866_v39 }
 0x507   :  { %v697_v48 = vpop.permute.xlu2 %696 }
 0x508   :  { %2313 = vmatmul.msk.f32.vlgmr.msra.gmra.mxu2 %vm154_vm7, %v697_v48 }
 0x521   :  { %v568_v42 = vpop.permute.xlu0 %567  ;;  %v572_v49 = vpop.permute.xlu1 %571 }
 0x522   :  { %v574_v50 = vsel %vm154_vm7, %v568_v42, %v572_v49 }
 0x523   :  { %v576_v51 = vrot.slane %v574_v50, 1 }
 0x525   :  { %2309 = vmatmul.msk.f32.vlgmr.msra.gmra.mxu3 %vm331_vm13, %v576_v51 }
 0x58b   :  { %v2851_v23 = vpop.f32.mrf.mxu2 }
 0x58c   :  { %v722_v32 = vrot.slane %v2851_v23, 7 }
 0x58e   :  { %v726_v6 = vadd.f32 %v722_v32, %v2706_v24 }
 0x590   :  { %v2315_v36 = vmul.f32 -1.442695, %v726_v6 }
 0x5a8   :  { %v596_v60 = vpop.f32.mrf.mxu3 }
 0x5a9   :  { %v597_v61 = vadd.f32 %v2798_v62, %v596_v60 }
 0x5ab   :  { %2418 = vtanh.f32 %v597_v61  ;;  %v2310_v4 = vmul.f32 -1.442695, %v597_v61 }
 0x5ad   :  { %2420 = vpow2.f32 %v2310_v4 }
 0x5b1   :  { %v2419_v63 = vpop.eup %2418 }
 0x5b2   :  { %621 = vrot.lane.b32.xlu0 %v2419_v63, %s2650_s23 }
 0x5b3   :  { %v2421_v5 = vpop.eup %2420 }
 0x5b4   :  { %v602_v7 = vadd.f32 1.0, %v2421_v5 }
 0x5b6   :  { %2422 = vrcp.f32 %v602_v7  ;;  %v614_v15 = vand.u32 2147483648, %v602_v7  ;;  %vm608_vm15 = vweird.f32 %v602_v7  ;;  %v612_v16 = vand.u32 2147483647, %v602_v7 }
 0x5b7   :  { %2424 = vtanh.f32 %v726_v6 }
 0x5b8   :  { %v615_v20 = vor.u32 1.1754944e-38, %v614_v15  ;;  %vm613_vm1 = vcmp.eq.f32.partialorder %v612_v16, 8.507059e+37  ;;  %2426 = vpow2.f32 %v2315_v36  ;;  %v2915_v15 = vld [vmem:[#allocation2 + $0xb8] sm:$0xff]  ;;  %v2918_v16 = vld [vmem:[#allocation2 + $0xb0] sm:$0xff] }
 0x5ba   :  { %393 = vrot.lane.b32.xlu0 %v391_v43, %s2653_s28 }
 0x5bc   :  { %v2423_v8 = vpop.eup %2422 }
 0x5bd   :  { %v604_v9 = vmul.f32 %v2423_v8, %v602_v7  ;;  %vm609_vm14 = vweird.f32 %v2423_v8  ;;  %v2425_v34 = vpop.eup %2424 }
 0x5be   :  { %vm610_vm0 = vmor %vm608_vm15, %vm609_vm14  ;;  %v2427_v41 = vpop.eup %2426  ;;  %vm810_vm15 = vcmask 1043459  }
 0x5bf   :  { %v605_v11 = vsub.f32 1.0, %v604_v9  ;;  %v734_v43 = vadd.f32 1.0, %v2427_v41  ;;  %v2904_v9 = vld [vmem:[#allocation2 + $0xc8] sm:$0xff] }
 0x5c0   :  { %445 = vmatpush.msrb.mxu1 %v2904_v9  ;;  %931 = vmatpush.msrb.mxu3 %v2904_v9 }
 0x5c1   :  { %v606_v35 = vmul.f32 %v2423_v8, %v605_v11  ;;  %2428 = vrcp.f32 %v734_v43  ;;  %vm755_vm5 = vweird.f32 %v734_v43  ;;  %v759_v0 = vand.u32 2147483647, %v734_v43 }
 0x5c2   :  { %642 = vrot.lane.b32.xlu0 %v641_v3, %s2653_s28 }
 0x5c3   :  { %v607_v14 = vadd.f32 %v2423_v8, %v606_v35  ;;  %vm760_vm8 = vcmp.eq.f32.partialorder %v759_v0, 8.507059e+37 }
 0x5c5   :  { %v611_v17 = vsel %vm610_vm0, %v2423_v8, %v607_v14  ;;  %v2912_v14 = vld [vmem:[#allocation2 + $0xc0] sm:$0xff] }
 0x5c6   :  { %v2849_v22 = vsel %vm613_vm1, %v615_v20, %v611_v17  ;;  %446 = vmatpush.msrb.mxu1 %v2912_v14  ;;  %932 = vmatpush.msrb.mxu3 %v2912_v14 }
 0x5c7   :  { %v2429_v44 = vpop.eup %2428  ;;  %v619_v46 = vmul.f32 %v2849_v22, %v2817_v33  ;;  %v761_v33 = vand.u32 2147483648, %v734_v43 }
 0x5c8   :  { %v751_v45 = vmul.f32 %v2429_v44, %v734_v43  ;;  %vm756_vm4 = vweird.f32 %v2429_v44  ;;  %447 = vmatpush.msrb.mxu1 %v2915_v15  ;;  %933 = vmatpush.msrb.mxu3 %v2915_v15 }
 0x5c9   :  { %vm757_vm6 = vmor %vm755_vm5, %vm756_vm4  ;;  %v762_v4 = vor.u32 1.1754944e-38, %v761_v33  ;;  %v769_v33 = vrot.slane %v2810_v19, 7 }
 0x5ca   :  { %v752_v42 = vsub.f32 1.0, %v751_v45  ;;  %448 = vmatpush.msrb.mxu1 %v2918_v16  ;;  %934 = vmatpush.msrb.mxu3 %v2918_v16 }
 0x5cc   :  { %v753_v49 = vmul.f32 %v2429_v44, %v752_v42  ;;  %685 = vmatpush.msra.mxu1 %v2904_v9  ;;  %1081 = vmatpush.msra.mxu3 %v2732_v27 }
 0x5ce   :  { %v754_v63 = vadd.f32 %v2429_v44, %v753_v49  ;;  %686 = vmatpush.msra.mxu1 %v2912_v14  ;;  %1082 = vmatpush.msra.mxu3 %v2734_v28 }
 0x5d0   :  { %v758_v3 = vsel %vm757_vm6, %v2429_v44, %v754_v63  ;;  %687 = vmatpush.msra.mxu1 %v2915_v15  ;;  %1083 = vmatpush.msra.mxu3 %v2737_v29 }
 0x5d1   :  { %v2900_v5 = vsel %vm760_vm8, %v762_v4, %v758_v3 }
 0x5d2   :  { %688 = vmatpush.msra.mxu1 %v2918_v16  ;;  %1084 = vmatpush.msra.mxu3 %v2740_v30 }
 0x5d4   :  { %1085 = vmatpush.msra.mxu3 %v2743_v31 }
 0x5d6   :  { %1086 = vmatpush.msra.mxu3 %v2786_v59 }
 0x624   :  { %v622_v21 = vpop.permute.xlu0 %621 }
 0x625   :  { %v624_v25 = vmul.f32 %v622_v21, %v2849_v22  ;;  %v770_v21 = vrot.slane %v2815_v26, 7 }
 0x627   :  { %626 = vrot.lane.b32.xlu1 %v624_v25, %s2653_s28 }
 0x62c   :  { %v394_v50 = vpop.permute.xlu0 %393 }
 0x62f   :  { %400 = vrot.lane.b32.xlu1 %v2766_v52, %s2653_s28  ;;  %v2870_v52 = vld [vmem:[#allocation2 + $0x78] sm:$0xff] }
 0x630   :  { %423 = vmatpush.msrb.mxu0 %v2870_v52  ;;  %909 = vmatpush.msrb.mxu2 %v2870_v52 }
 0x632   :  { %424 = vmatpush.msrb.mxu0 %v2874_v40  ;;  %910 = vmatpush.msrb.mxu2 %v2874_v40 }
 0x634   :  { %657 = vmatpush.msra.mxu0 %v2837_v12  ;;  %1208 = vmatpush.msra.mxu2 %v2684_v1  ;;  %v643_v20 = vpop.permute.xlu0 %642 }
 0x636   :  { %658 = vmatpush.msra.mxu0 %v2839_v13  ;;  %1209 = vmatpush.msra.mxu2 %v2688_v2 }
 0x637   :  { %779 = vrot.lane.b32.xlu1 %v2425_v34, %s2651_s0 }
 0x638   :  { %659 = vmatpush.msra.mxu0 %v2843_v38 }
 0x63a   :  { %660 = vmatpush.msra.mxu0 %v2860_v10 }
 0x63c   :  { %661 = vmatpush.msra.mxu0 %v2862_v37 }
 0x63e   :  { %662 = vmatpush.msra.mxu0 %v2866_v39 }
 0x640   :  { %663 = vmatpush.msra.mxu0 %v2870_v52 }
 0x642   :  { %664 = vmatpush.msra.mxu0 %v2874_v40 }
 0x699   :  { %v627_v47 = vpop.permute.xlu1 %626 }
 0x69a   :  { %v2892_v48 = vadd.f32 %v627_v47, %v619_v46 }
 0x69c   :  { %2430 = vtanh.f32 %v2892_v48 }
 0x6a1   :  { %v401_v51 = vpop.permute.xlu1 %400 }
 0x6a2   :  { %v2431_v60 = vpop.eup %2430  ;;  %v404_v61 = vsel %vm403_vm2, %v394_v50, %v401_v51 }
 0x6a3   :  { %2304 = vmatmul.msk.f32.vlgmr.msrb.gmra.mxu0 %vm405_vm3, %v404_v61  ;;  %632 = vrot.lane.b32.xlu2 %v2431_v60, %s2650_s23 }
 0x6a4   :  { %961 = vmatpush.msrb.mxu0 %v2684_v1  ;;  %v721_v1 = vrot.slane %v2851_v23, 6  ;;  %v2937_v23 = vld [vmem:[#allocation2 + $0x175] ss:$0 sm:$0xff] }
 0x6a6   :  { %962 = vmatpush.msrb.mxu0 %v2688_v2  ;;  %v725_v11 = vadd.f32 %v721_v1, %v2702_v18 }
 0x6a8   :  { %2432 = vtanh.f32 %v725_v11  ;;  %v2314_v43 = vmul.f32 -1.442695, %v725_v11 }
 0x6a9   :  { %v780_v7 = vpop.permute.xlu1 %779 }
 0x6aa   :  { %v784_v8 = vmul.f32 %v780_v7, %v2900_v5 }
 0x6ac   :  { %789 = vrot.lane.b32.xlu0 %v784_v8, %s2652_s1 }
 0x6ae   :  { %v2433_v17 = vpop.eup %2432 }
 0x6fd   :  { %v633_v2 = vpop.permute.xlu2 %632 }
 0x6fe   :  { %v635_v35 = vmul.f32 %v633_v2, %v2849_v22  ;;  %v774_v22 = vmul.f32 %v770_v21, %v2900_v5 }
 0x700   :  { %637 = vrot.lane.b32.xlu2 %v635_v35, %s2653_s28  ;;  %v815_v26 = vrot.slane %v635_v35, 6 }
 0x708   :  { %777 = vrot.lane.b32.xlu2 %v2433_v17, %s2651_s0 }
 0x71e   :  { %v790_v25 = vpop.permute.xlu0 %789 }
 0x71f   :  { %v2939_v32 = vadd.f32 %v790_v25, %v774_v22 }
 0x720   :  { %v426_v6 = vpop.f32.mrf.mxu0 }
 0x721   :  { %2434 = vtanh.f32 %v2939_v32  ;;  %v427_v34 = vadd.f32 %v2937_v23, %v426_v6 }
 0x722   :  { %2436 = vpow2.f32 %v2314_v43 }
 0x723   :  { %v429_v36 = vmax.f32 %v427_v34, 0.0 }
 0x725   :  { %2305 = vmatmul.msk.f32.vlgmr.msrb.gmra.mxu1 %vm403_vm2, %v429_v36 }
 0x726   :  { %834 = vmatpush.msrb.mxu1 %v2732_v27 }
 0x727   :  { %v2435_v41 = vpop.eup %2434 }
 0x728   :  { %801 = vrot.lane.b32.xlu2 %v2435_v41, %s2653_s28  ;;  %835 = vmatpush.msrb.mxu1 %v2734_v28  ;;  %v2437_v44 = vpop.eup %2436 }
 0x729   :  { %v733_v27 = vadd.f32 1.0, %v2437_v44  ;;  %v2986_v44 = vld [vmem:[#allocation2 + $0x10] sm:$0xff] }
 0x72a   :  { %836 = vmatpush.msrb.mxu1 %v2737_v29 }
 0x72b   :  { %2438 = vrcp.f32 %v733_v27  ;;  %vm740_vm10 = vweird.f32 %v733_v27  ;;  %v744_v49 = vand.u32 2147483647, %v733_v27 }
 0x72c   :  { %837 = vmatpush.msrb.mxu1 %v2740_v30 }
 0x72d   :  { %vm745_vm14 = vcmp.eq.f32.partialorder %v744_v49, 8.507059e+37 }
 0x72e   :  { %838 = vmatpush.msrb.mxu1 %v2743_v31  ;;  %v746_v31 = vand.u32 2147483648, %v733_v27 }
 0x730   :  { %816 = vrot.lane.b32.xlu2 %v815_v26, %s2655_s30  ;;  %839 = vmatpush.msrb.mxu1 %v2786_v59  ;;  %v747_v51 = vor.u32 1.1754944e-38, %v746_v31 }
 0x731   :  { %v2439_v45 = vpop.eup %2438 }
 0x732   :  { %v736_v46 = vmul.f32 %v2439_v45, %v733_v27  ;;  %vm741_vm9 = vweird.f32 %v2439_v45 }
 0x733   :  { %vm742_vm11 = vmor %vm740_vm10, %vm741_vm9 }
 0x734   :  { %v737_v47 = vsub.f32 1.0, %v736_v46 }
 0x736   :  { %v738_v28 = vmul.f32 %v2439_v45, %v737_v47 }
 0x738   :  { %v739_v30 = vadd.f32 %v2439_v45, %v738_v28 }
 0x73a   :  { %v743_v50 = vsel %vm742_vm11, %v2439_v45, %v739_v30 }
 0x73b   :  { %v748_v60 = vsel %vm745_vm14, %v747_v51, %v743_v50 }
 0x73c   :  { %v773_v0 = vmul.f32 %v769_v33, %v748_v60 }
 0x75a   :  { %v638_v42 = vpop.permute.xlu2 %637 }
 0x75b   :  { %v645_v29 = vsel %vm403_vm2, %v638_v42, %v643_v20 }
 0x75c   :  { %2311 = vmatmul.msk.f32.vlgmr.msra.gmra.mxu0 %vm405_vm3, %v645_v29 }
 0x75d   :  { %1178 = vmatpush.msra.mxu0 %v2904_v9 }
 0x75f   :  { %1179 = vmatpush.msra.mxu0 %v2912_v14 }
 0x761   :  { %1180 = vmatpush.msra.mxu0 %v2915_v15 }
 0x762   :  { %v778_v61 = vpop.permute.xlu2 %777 }
 0x763   :  { %v783_v63 = vmul.f32 %v778_v61, %v748_v60  ;;  %1181 = vmatpush.msra.mxu0 %v2918_v16 }
 0x765   :  { %787 = vrot.lane.b32.xlu1 %v783_v63, %s2652_s1 }
 0x782   :  { %v802_v19 = vpop.permute.xlu2 %801 }
 0x783   :  { %v806_v2 = vmul.f32 %v802_v19, %v2900_v5  ;;  %v2982_v5 = vld [vmem:[#allocation2 + $0x18] sm:$0xff] }
 0x785   :  { %v809_v17 = vrot.slane %v806_v2, 7  ;;  %v941_v21 = vrot.slane %v806_v2, 1 }
 0x78a   :  { %v817_v34 = vpop.permute.xlu2 %816 }
 0x7a2   :  { %v2995_v27 = vpop.f32.mrf.mxu1 }
 0x7d7   :  { %v788_v3 = vpop.permute.xlu1 %787 }
 0x7d8   :  { %v2960_v4 = vadd.f32 %v788_v3, %v773_v0 }
 0x7d9   :  { %v666_v7 = vpop.f32.mrf.mxu0 }
 0x7da   :  { %2440 = vtanh.f32 %v2960_v4  ;;  %v667_v8 = vadd.f32 %v2937_v23, %v666_v7 }
 0x7dc   :  { %v669_v1 = vmax.f32 %v667_v8, 0.0 }
 0x7de   :  { %2312 = vmatmul.msk.f32.vlgmr.msra.gmra.mxu1 %vm403_vm2, %v669_v1 }
 0x7df   :  { %1150 = vmatpush.msra.mxu1 %v2837_v12 }
 0x7e0   :  { %v2441_v11 = vpop.eup %2440 }
 0x7e1   :  { %799 = vrot.lane.b32.xlu0 %v2441_v11, %s2653_s28  ;;  %1151 = vmatpush.msra.mxu1 %v2839_v13 }
 0x7e3   :  { %1152 = vmatpush.msra.mxu1 %v2843_v38 }
 0x7e5   :  { %1153 = vmatpush.msra.mxu1 %v2860_v10 }
 0x7e7   :  { %1154 = vmatpush.msra.mxu1 %v2862_v37 }
 0x7e9   :  { %1155 = vmatpush.msra.mxu1 %v2866_v39 }
 0x7eb   :  { %1156 = vmatpush.msra.mxu1 %v2870_v52 }
 0x7ed   :  { %1157 = vmatpush.msra.mxu1 %v2874_v40 }
 0x853   :  { %v800_v35 = vpop.permute.xlu0 %799 }
 0x854   :  { %v805_v20 = vmul.f32 %v800_v35, %v748_v60 }
 0x856   :  { %v940_v22 = vrot.slane %v805_v20, 2  ;;  %v811_v25 = vsel %vm810_vm15, %v809_v17, %v805_v20 }
 0x857   :  { %812 = vrot.lane.b32.xlu1 %v811_v25, %s2654_s29 }
 0x858   :  { %v942_v6 = vsel %vm325_vm12, %v941_v21, %v940_v22 }
 0x859   :  { %943 = vrot.lane.b32.xlu0 %v942_v6, %s2654_s29 }
 0x85b   :  { %v2997_v45 = vpop.f32.mrf.mxu1 }
 0x8c9   :  { %v813_v36 = vpop.permute.xlu1 %812 }
 0x8ca   :  { %v819_v41 = vsel %vm154_vm7, %v813_v36, %v817_v34 }
 0x8cb   :  { %v821_v26 = vrot.slane %v819_v41, 2  ;;  %v944_v43 = vpop.permute.xlu0 %943 }
 0x8cc   :  { %2320 = vmatmul.msk.f32.vlgmr.msrb.gmra.mxu0 %vm154_vm7, %v944_v43 }
 0x8cd   :  { %2316 = vmatmul.msk.f32.vlgmr.msrb.gmra.mxu1 %vm331_vm13, %v821_v26  ;;  %1397 = vmatpush.msrb.mxu0 %v2837_v12 }
 0x8ce   :  { %1455 = vmatpush.msrb.mxu1 %v2982_v5 }
 0x8cf   :  { %1398 = vmatpush.msrb.mxu0 %v2839_v13 }
 0x8d0   :  { %1456 = vmatpush.msrb.mxu1 %v2986_v44 }
 0x8d1   :  { %1399 = vmatpush.msrb.mxu0 %v2843_v38 }
 0x8d3   :  { %1400 = vmatpush.msrb.mxu0 %v2860_v10 }
 0x8d5   :  { %1401 = vmatpush.msrb.mxu0 %v2862_v37 }
 0x8d7   :  { %1402 = vmatpush.msrb.mxu0 %v2866_v39 }
 0x8d9   :  { %1403 = vmatpush.msrb.mxu0 %v2870_v52 }
 0x8db   :  { %1404 = vmatpush.msrb.mxu0 %v2874_v40 }
 0x949   :  { %v964_v1 = vpop.f32.mrf.mxu0 }
 0x94a   :  { %v841_v46 = vpop.f32.mrf.mxu1  ;;  %v968_v2 = vrot.slane %v964_v1, 5  ;;  %v969_v34 = vrot.slane %v964_v1, 6 }
 0x94b   :  { %v842_v47 = vadd.f32 %v2798_v62, %v841_v46 }
 0x94c   :  { %v972_v35 = vadd.f32 %v968_v2, %v2702_v18  ;;  %v973_v41 = vadd.f32 %v969_v34, %v2706_v24 }
 0x94d   :  { %2442 = vtanh.f32 %v842_v47  ;;  %v2317_v42 = vmul.f32 -1.442695, %v842_v47 }
 0x94e   :  { %v2321_v21 = vmul.f32 -1.442695, %v972_v35 }
 0x94f   :  { %2444 = vpow2.f32 %v2317_v42 }
 0x953   :  { %v2443_v28 = vpop.eup %2442 }
 0x954   :  { %866 = vrot.lane.b32.xlu1 %v2443_v28, %s2650_s23 }
 0x955   :  { %v2445_v29 = vpop.eup %2444 }
 0x956   :  { %v847_v30 = vadd.f32 1.0, %v2445_v29 }
 0x958   :  { %2446 = vrcp.f32 %v847_v30  ;;  %v859_v61 = vand.u32 2147483648, %v847_v30  ;;  %vm853_vm1 = vweird.f32 %v847_v30  ;;  %v857_v63 = vand.u32 2147483647, %v847_v30 }
 0x95a   :  { %v860_v33 = vor.u32 1.1754944e-38, %v859_v61  ;;  %vm858_vm5 = vcmp.eq.f32.partialorder %v857_v63, 8.507059e+37 }
 0x95e   :  { %v2447_v31 = vpop.eup %2446 }
 0x95f   :  { %v849_v49 = vmul.f32 %v2447_v31, %v847_v30  ;;  %vm854_vm0 = vweird.f32 %v2447_v31 }
 0x960   :  { %vm855_vm4 = vmor %vm853_vm1, %vm854_vm0  ;;  %vm1057_vm1 = vcmask 1044484  }
 0x961   :  { %v850_v50 = vsub.f32 1.0, %v849_v49 }
 0x963   :  { %v851_v51 = vmul.f32 %v2447_v31, %v850_v50 }
 0x965   :  { %v852_v60 = vadd.f32 %v2447_v31, %v851_v51  ;;  %v2322_v51 = vmul.f32 -1.442695, %v973_v41 }
 0x967   :  { %v856_v62 = vsel %vm855_vm4, %v2447_v31, %v852_v60 }
 0x968   :  { %v861_v3 = vsel %vm858_vm5, %v860_v33, %v856_v62  ;;  %v1016_v62 = vrot.slane %v2960_v4, 7 }
 0x969   :  { %v864_v8 = vmul.f32 %v861_v3, %v2892_v48 }
 0x9c6   :  { %v867_v0 = vpop.permute.xlu1 %866 }
 0x9c7   :  { %v869_v7 = vmul.f32 %v867_v0, %v861_v3 }
 0x9c9   :  { %871 = vrot.lane.b32.xlu2 %v869_v7, %s2653_s28 }
 0x9d1   :  { %888 = vrot.lane.b32.xlu2 %v2769_v53, %s2653_s28 }
 0xa23   :  { %v872_v11 = vpop.permute.xlu2 %871 }
 0xa24   :  { %v3005_v19 = vadd.f32 %v872_v11, %v864_v8 }
 0xa26   :  { %2448 = vtanh.f32 %v3005_v19 }
 0xa27   :  { %2450 = vtanh.f32 %v972_v35 }
 0xa28   :  { %2452 = vpow2.f32 %v2321_v21 }
 0xa2b   :  { %v889_v63 = vpop.permute.xlu2 %888 }
 0xa2c   :  { %v2449_v17 = vpop.eup %2448 }
 0xa2d   :  { %877 = vrot.lane.b32.xlu0 %v2449_v17, %s2650_s23  ;;  %v2451_v20 = vpop.eup %2450 }
 0xa2e   :  { %v2453_v53 = vpop.eup %2452 }
 0xa2f   :  { %v980_v48 = vadd.f32 1.0, %v2453_v53 }
 0xa31   :  { %2454 = vrcp.f32 %v980_v48  ;;  %v993_v47 = vand.u32 2147483648, %v980_v48  ;;  %vm987_vm8 = vweird.f32 %v980_v48  ;;  %v991_v28 = vand.u32 2147483647, %v980_v48 }
 0xa32   :  { %2456 = vtanh.f32 %v973_v41 }
 0xa33   :  { %v994_v29 = vor.u32 1.1754944e-38, %v993_v47  ;;  %vm992_vm10 = vcmp.eq.f32.partialorder %v991_v28, 8.507059e+37  ;;  %2458 = vpow2.f32 %v2322_v51 }
 0xa35   :  { %1024 = vrot.lane.b32.xlu0 %v2451_v20, %s2651_s0 }
 0xa37   :  { %v2455_v22 = vpop.eup %2454 }
 0xa38   :  { %v983_v25 = vmul.f32 %v2455_v22, %v980_v48  ;;  %vm988_vm6 = vweird.f32 %v2455_v22  ;;  %v2457_v50 = vpop.eup %2456 }
 0xa39   :  { %vm989_vm9 = vmor %vm987_vm8, %vm988_vm6  ;;  %v2459_v60 = vpop.eup %2458 }
 0xa3a   :  { %v984_v6 = vsub.f32 1.0, %v983_v25  ;;  %v981_v61 = vadd.f32 1.0, %v2459_v60 }
 0xa3c   :  { %v985_v36 = vmul.f32 %v2455_v22, %v984_v6  ;;  %2460 = vrcp.f32 %v981_v61  ;;  %v1008_v4 = vand.u32 2147483648, %v981_v61  ;;  %vm1002_vm14 = vweird.f32 %v981_v61 }
 0xa3d   :  { %v1006_v53 = vand.u32 2147483647, %v981_v61 }
 0xa3e   :  { %v986_v46 = vadd.f32 %v2455_v22, %v985_v36  ;;  %v1017_v36 = vrot.slane %v2939_v32, 7  ;;  %v3042_v32 = vld [vmem:[#allocation2 + $0x40] sm:$0xff] }
 0xa3f   :  { %vm1007_vm0 = vcmp.eq.f32.partialorder %v1006_v53, 8.507059e+37 }
 0xa40   :  { %v990_v42 = vsel %vm989_vm9, %v2455_v22, %v986_v46  ;;  %v1009_v22 = vor.u32 1.1754944e-38, %v1008_v4 }
 0xa41   :  { %v3013_v30 = vsel %vm992_vm10, %v994_v29, %v990_v42  ;;  %v3039_v29 = vld [vmem:[#allocation2 + $0x48] sm:$0xff] }
 0xa42   :  { %v1020_v33 = vmul.f32 %v1016_v62, %v3013_v30  ;;  %v2461_v7 = vpop.eup %2460 }
 0xa43   :  { %v998_v8 = vmul.f32 %v2461_v7, %v981_v61  ;;  %vm1003_vm11 = vweird.f32 %v2461_v7 }
 0xa44   :  { %vm1004_vm15 = vmor %vm1002_vm14, %vm1003_vm11 }
 0xa45   :  { %v999_v11 = vsub.f32 1.0, %v998_v8 }
 0xa47   :  { %v1000_v2 = vmul.f32 %v2461_v7, %v999_v11 }
 0xa49   :  { %v1001_v21 = vadd.f32 %v2461_v7, %v1000_v2 }
 0xa4b   :  { %v1005_v48 = vsel %vm1004_vm15, %v2461_v7, %v1001_v21 }
 0xa4c   :  { %v1010_v25 = vsel %vm1007_vm0, %v1009_v22, %v1005_v48 }
 0xa4d   :  { %v1021_v41 = vmul.f32 %v1017_v36, %v1010_v25 }
 0xa9f   :  { %v878_v26 = vpop.permute.xlu0 %877 }
 0xaa0   :  { %v880_v43 = vmul.f32 %v878_v26, %v861_v3 }
 0xaa2   :  { %882 = vrot.lane.b32.xlu1 %v880_v43, %s2653_s28  ;;  %v1062_v35 = vrot.slane %v880_v43, 5 }
 0xaa7   :  { %v1025_v31 = vpop.permute.xlu0 %1024 }
 0xaa8   :  { %v1030_v49 = vmul.f32 %v1025_v31, %v3013_v30  ;;  %v3045_v31 = vld [vmem:[#allocation2 + $0x38] sm:$0xff] }
 0xaaa   :  { %1026 = vrot.lane.b32.xlu1 %v2457_v50, %s2651_s0  ;;  %1034 = vrot.lane.b32.xlu2 %v1030_v49, %s2652_s1  ;;  %v3048_v49 = vld [vmem:[#allocation2 + $0x30] sm:$0xff]  ;;  %v3051_v50 = vld [vmem:[#allocation2 + $0x28] sm:$0xff] }
 0xb04   :  { %v1035_v0 = vpop.permute.xlu2 %1034 }
 0xb05   :  { %v3020_v3 = vadd.f32 %v1035_v0, %v1020_v33 }
 0xb07   :  { %2462 = vtanh.f32 %v3020_v3 }
 0xb0d   :  { %v2463_v1 = vpop.eup %2462 }
 0xb0e   :  { %1046 = vrot.lane.b32.xlu1 %v2463_v1, %s2653_s28 }
 0xb14   :  { %v883_v17 = vpop.permute.xlu1 %882 }
 0xb15   :  { %v891_v20 = vsel %vm403_vm2, %v883_v17, %v889_v63 }
 0xb16   :  { %2318 = vmatmul.msk.f32.vlgmr.msrb.gmra.mxu2 %vm405_vm3, %v891_v20  ;;  %1063 = vrot.lane.b32.xlu1 %v1062_v35, %s2655_s30 }
 0xb17   :  { %1425 = vmatpush.msrb.mxu2 %v2904_v9 }
 0xb19   :  { %1426 = vmatpush.msrb.mxu2 %v2912_v14 }
 0xb1b   :  { %1427 = vmatpush.msrb.mxu2 %v2915_v15 }
 0xb1c   :  { %v1027_v6 = vpop.permute.xlu1 %1026 }
 0xb1d   :  { %v1031_v34 = vmul.f32 %v1027_v6, %v1010_v25  ;;  %1428 = vmatpush.msrb.mxu2 %v2918_v16 }
 0xb1f   :  { %1036 = vrot.lane.b32.xlu0 %v1031_v34, %s2652_s1 }
 0xb80   :  { %v1047_v51 = vpop.permute.xlu1 %1046 }
 0xb81   :  { %v1052_v60 = vmul.f32 %v1047_v51, %v3013_v30 }
 0xb83   :  { %v1187_v62 = vrot.slane %v1052_v60, 3 }
 0xb91   :  { %v1037_v26 = vpop.permute.xlu0 %1036 }
 0xb92   :  { %v3033_v43 = vadd.f32 %v1037_v26, %v1021_v41 }
 0xb94   :  { %2464 = vtanh.f32 %v3033_v43 }
 0xb99   :  { %v912_v46 = vpop.f32.mrf.mxu2 }
 0xb9a   :  { %v2465_v47 = vpop.eup %2464  ;;  %v913_v28 = vadd.f32 %v2937_v23, %v912_v46 }
 0xb9b   :  { %1048 = vrot.lane.b32.xlu2 %v2465_v47, %s2653_s28 }
 0xb9c   :  { %v915_v42 = vmax.f32 %v913_v28, 0.0 }
 0xb9e   :  { %2319 = vmatmul.msk.f32.vlgmr.msrb.gmra.mxu3 %vm403_vm2, %v915_v42 }
 0xb9f   :  { %1328 = vmatpush.msrb.mxu3 %v3039_v29 }
 0xba1   :  { %1329 = vmatpush.msrb.mxu3 %v3042_v32 }
 0xba3   :  { %1330 = vmatpush.msrb.mxu3 %v3045_v31 }
 0xba5   :  { %1331 = vmatpush.msrb.mxu3 %v3048_v49 }
 0xba7   :  { %1332 = vmatpush.msrb.mxu3 %v3051_v50 }
 0xba9   :  { %1333 = vmatpush.msrb.mxu3 %v2786_v59  ;;  %v1064_v59 = vpop.permute.xlu1 %1063 }
 0xbf5   :  { %v1049_v61 = vpop.permute.xlu2 %1048 }
 0xbf6   :  { %v1053_v63 = vmul.f32 %v1049_v61, %v1010_v25 }
 0xbf8   :  { %v1056_v33 = vrot.slane %v1053_v63, 7  ;;  %v1188_v0 = vrot.slane %v1053_v63, 2 }
 0xbfa   :  { %v1189_v7 = vsel %vm325_vm12, %v1188_v0, %v1187_v62  ;;  %v1058_v8 = vsel %vm1057_vm1, %v1056_v33, %v1052_v60 }
 0xbfb   :  { %1190 = vrot.lane.b32.xlu2 %v1189_v7, %s2654_s29  ;;  %1059 = vrot.lane.b32.xlu0 %v1058_v8, %s2654_s29 }
 0xc55   :  { %v1191_v1 = vpop.permute.xlu2 %1190 }
 0xc56   :  { %2327 = vmatmul.msk.f32.vlgmr.msra.gmra.mxu2 %vm154_vm7, %v1191_v1 }
 0xc57   :  { %1891 = vmatpush.msra.mxu2 %v2837_v12 }
 0xc59   :  { %1892 = vmatpush.msra.mxu2 %v2839_v13 }
 0xc5b   :  { %1893 = vmatpush.msra.mxu2 %v2843_v38 }
 0xc5d   :  { %1894 = vmatpush.msra.mxu2 %v2860_v10 }
 0xc5f   :  { %1895 = vmatpush.msra.mxu2 %v2862_v37 }
 0xc61   :  { %1896 = vmatpush.msra.mxu2 %v2866_v39 }
 0xc63   :  { %1897 = vmatpush.msra.mxu2 %v2870_v52 }
 0xc65   :  { %1898 = vmatpush.msra.mxu2 %v2874_v40 }
 0xc6d   :  { %v1060_v30 = vpop.permute.xlu0 %1059 }
 0xc6e   :  { %v1066_v11 = vsel %vm154_vm7, %v1060_v30, %v1064_v59 }
 0xc6f   :  { %v1068_v2 = vrot.slane %v1066_v11, 3 }
 0xc71   :  { %2323 = vmatmul.msk.f32.vlgmr.msra.gmra.mxu3 %vm331_vm13, %v1068_v2 }
 0xc72   :  { %1644 = vmatpush.msra.mxu3 %v2837_v12 }
 0xc74   :  { %1645 = vmatpush.msra.mxu3 %v2839_v13 }
 0xc76   :  { %1646 = vmatpush.msra.mxu3 %v2843_v38 }
 0xc78   :  { %1647 = vmatpush.msra.mxu3 %v2860_v10  ;;  %v3082_v10 = vpop.f32.mrf.mxu3 }
 0xc7a   :  { %1648 = vmatpush.msra.mxu3 %v2862_v37 }
 0xc7c   :  { %1649 = vmatpush.msra.mxu3 %v2866_v39  ;;  %v3084_v39 = vld [vmem:[#allocation2 + $0x172] ss:$0 sm:$0xff] }
 0xc7e   :  { %1650 = vmatpush.msra.mxu3 %v2870_v52 }
 0xc80   :  { %1651 = vmatpush.msra.mxu3 %v2874_v40 }
 0xcd9   :  { %v1211_v35 = vpop.f32.mrf.mxu2 }
 0xcda   :  { %v1215_v17 = vrot.slane %v1211_v35, 4  ;;  %v1216_v20 = vrot.slane %v1211_v35, 5 }
 0xcdc   :  { %v1219_v21 = vadd.f32 %v1215_v17, %v2702_v18  ;;  %v1220_v12 = vadd.f32 %v1216_v20, %v2706_v24 }
 0xcde   :  { %2466 = vtanh.f32 %v1219_v21  ;;  %v2328_v4 = vmul.f32 -1.442695, %v1219_v21  ;;  %v2329_v25 = vmul.f32 -1.442695, %v1220_v12 }
 0xcdf   :  { %2468 = vtanh.f32 %v1220_v12 }
 0xce4   :  { %v2467_v13 = vpop.eup %2466 }
 0xce5   :  { %v2469_v38 = vpop.eup %2468  ;;  %1271 = vrot.lane.b32.xlu2 %v2467_v13, %s2651_s0 }
 0xce6   :  { %1273 = vrot.lane.b32.xlu0 %v2469_v38, %s2651_s0 }
 0xcf4   :  { %v1088_v37 = vpop.f32.mrf.mxu3 }
 0xcf5   :  { %v1089_v52 = vadd.f32 %v3084_v39, %v1088_v37 }
 0xcf7   :  { %2470 = vtanh.f32 %v1089_v52  ;;  %v2324_v33 = vmul.f32 -1.442695, %v1089_v52 }
 0xcf8   :  { %2472 = vpow2.f32 %v2328_v4 }
 0xcfd   :  { %v2471_v40 = vpop.eup %2470 }
 0xcfe   :  { %1113 = vrot.lane.b32.xlu1 %v2471_v40, %s2650_s23  ;;  %v2473_v53 = vpop.eup %2472 }
 0xcff   :  { %v1227_v48 = vadd.f32 1.0, %v2473_v53 }
 0xd01   :  { %2474 = vrcp.f32 %v1227_v48  ;;  %v1240_v47 = vand.u32 2147483648, %v1227_v48  ;;  %vm1234_vm5 = vweird.f32 %v1227_v48  ;;  %v1238_v28 = vand.u32 2147483647, %v1227_v48 }
 0xd02   :  { %2476 = vpow2.f32 %v2329_v25 }
 0xd03   :  { %v1241_v51 = vor.u32 1.1754944e-38, %v1240_v47  ;;  %vm1239_vm8 = vcmp.eq.f32.partialorder %v1238_v28, 8.507059e+37  ;;  %v1264_v28 = vrot.slane %v3033_v43, 7 }
 0xd07   :  { %v2475_v22 = vpop.eup %2474 }
 0xd08   :  { %v1230_v6 = vmul.f32 %v2475_v22, %v1227_v48  ;;  %v2477_v41 = vpop.eup %2476  ;;  %vm1235_vm4 = vweird.f32 %v2475_v22 }
 0xd09   :  { %v1228_v26 = vadd.f32 1.0, %v2477_v41  ;;  %vm1236_vm6 = vmor %vm1234_vm5, %vm1235_vm4  ;;  %vm1304_vm5 = vcmask 1045509  }
 0xd0a   :  { %v1231_v34 = vsub.f32 1.0, %v1230_v6 }
 0xd0b   :  { %2478 = vrcp.f32 %v1228_v26  ;;  %v1255_v11 = vand.u32 2147483648, %v1228_v26  ;;  %vm1249_vm10 = vweird.f32 %v1228_v26  ;;  %v1253_v2 = vand.u32 2147483647, %v1228_v26 }
 0xd0c   :  { %v1232_v36 = vmul.f32 %v2475_v22, %v1231_v34  ;;  %2480 = vpow2.f32 %v2324_v33 }
 0xd0d   :  { %v1256_v17 = vor.u32 1.1754944e-38, %v1255_v11  ;;  %vm1254_vm14 = vcmp.eq.f32.partialorder %v1253_v2, 8.507059e+37 }
 0xd0e   :  { %v1233_v46 = vadd.f32 %v2475_v22, %v1232_v36  ;;  %v1263_v36 = vrot.slane %v3020_v3, 7 }
 0xd10   :  { %v1237_v42 = vsel %vm1236_vm6, %v2475_v22, %v1233_v46 }
 0xd11   :  { %v3088_v61 = vsel %vm1239_vm8, %v1241_v51, %v1237_v42  ;;  %v2479_v62 = vpop.eup %2478 }
 0xd12   :  { %v1245_v0 = vmul.f32 %v2479_v62, %v1228_v26  ;;  %v2481_v8 = vpop.eup %2480  ;;  %vm1250_vm9 = vweird.f32 %v2479_v62  ;;  %v1267_v41 = vmul.f32 %v1263_v36, %v3088_v61 }
 0xd13   :  { %v1094_v59 = vadd.f32 1.0, %v2481_v8  ;;  %vm1251_vm11 = vmor %vm1249_vm10, %vm1250_vm9 }
 0xd14   :  { %v1246_v7 = vsub.f32 1.0, %v1245_v0 }
 0xd15   :  { %2482 = vrcp.f32 %v1094_v59  ;;  %v1106_v4 = vand.u32 2147483648, %v1094_v59  ;;  %vm1100_vm0 = vweird.f32 %v1094_v59  ;;  %v1104_v53 = vand.u32 2147483647, %v1094_v59 }
 0xd16   :  { %v1247_v1 = vmul.f32 %v2479_v62, %v1246_v7 }
 0xd17   :  { %v1107_v22 = vor.u32 1.1754944e-38, %v1106_v4  ;;  %vm1105_vm4 = vcmp.eq.f32.partialorder %v1104_v53, 8.507059e+37 }
 0xd18   :  { %v1248_v30 = vadd.f32 %v2479_v62, %v1247_v1 }
 0xd1a   :  { %v1252_v35 = vsel %vm1251_vm11, %v2479_v62, %v1248_v30 }
 0xd1b   :  { %v1257_v20 = vsel %vm1254_vm14, %v1256_v17, %v1252_v35  ;;  %v2483_v13 = vpop.eup %2482 }
 0xd1c   :  { %v1096_v38 = vmul.f32 %v2483_v13, %v1094_v59  ;;  %vm1101_vm15 = vweird.f32 %v2483_v13  ;;  %v1268_v42 = vmul.f32 %v1264_v28, %v1257_v20 }
 0xd1d   :  { %vm1102_vm1 = vmor %vm1100_vm0, %vm1101_vm15 }
 0xd1e   :  { %v1097_v37 = vsub.f32 1.0, %v1096_v38 }
 0xd20   :  { %v1098_v52 = vmul.f32 %v2483_v13, %v1097_v37 }
 0xd22   :  { %v1099_v40 = vadd.f32 %v2483_v13, %v1098_v52 }
 0xd24   :  { %v1103_v48 = vsel %vm1102_vm1, %v2483_v13, %v1099_v40 }
 0xd25   :  { %v1108_v6 = vsel %vm1105_vm4, %v1107_v22, %v1103_v48 }
 0xd26   :  { %v1111_v3 = vmul.f32 %v1108_v6, %v3005_v19 }
 0xd3f   :  { %v1272_v60 = vpop.permute.xlu2 %1271 }
 0xd40   :  { %v1277_v63 = vmul.f32 %v1272_v60, %v3088_v61 }
 0xd42   :  { %1281 = vrot.lane.b32.xlu2 %v1277_v63, %s2652_s1 }
 0xd58   :  { %v1274_v21 = vpop.permute.xlu0 %1273 }
 0xd59   :  { %v1278_v12 = vmul.f32 %v1274_v21, %v1257_v20 }
 0xd5b   :  { %1283 = vrot.lane.b32.xlu0 %v1278_v12, %s2652_s1 }
 0xd70   :  { %v1114_v25 = vpop.permute.xlu1 %1113 }
 0xd71   :  { %v1116_v34 = vmul.f32 %v1114_v25, %v1108_v6 }
 0xd73   :  { %1118 = vrot.lane.b32.xlu1 %v1116_v34, %s2653_s28 }
 0xd9c   :  { %v1282_v26 = vpop.permute.xlu2 %1281 }
 0xd9d   :  { %v3096_v46 = vadd.f32 %v1282_v26, %v1267_v41 }
 0xd9f   :  { %2484 = vtanh.f32 %v3096_v46 }
 0xda5   :  { %v2485_v47 = vpop.eup %2484 }
 0xda6   :  { %1293 = vrot.lane.b32.xlu2 %v2485_v47, %s2653_s28 }
 0xdcd   :  { %v1284_v51 = vpop.permute.xlu0 %1283 }
 0xdce   :  { %v3101_v60 = vadd.f32 %v1284_v51, %v1268_v42 }
 0xdd0   :  { %2486 = vtanh.f32 %v3101_v60 }
 0xdd6   :  { %v2487_v63 = vpop.eup %2486 }
 0xdd7   :  { %1295 = vrot.lane.b32.xlu0 %v2487_v63, %s2653_s28 }
 0xde5   :  { %v1119_v62 = vpop.permute.xlu1 %1118 }
 0xde6   :  { %v3106_v33 = vadd.f32 %v1119_v62, %v1111_v3 }
 0xde8   :  { %2488 = vtanh.f32 %v3106_v33 }
 0xdee   :  { %v2489_v0 = vpop.eup %2488 }
 0xdef   :  { %1124 = vrot.lane.b32.xlu1 %v2489_v0, %s2650_s23 }
 0xe00   :  { %v1294_v43 = vpop.permute.xlu2 %1293 }
 0xe01   :  { %v1299_v1 = vmul.f32 %v1294_v43, %v3088_v61 }
 0xe03   :  { %v1434_v17 = vrot.slane %v1299_v1, 4 }
 0xe49   :  { %v1296_v7 = vpop.permute.xlu0 %1295 }
 0xe4a   :  { %v1300_v8 = vmul.f32 %v1296_v7, %v1257_v20 }
 0xe4c   :  { %v1303_v59 = vrot.slane %v1300_v8, 7  ;;  %v1435_v35 = vrot.slane %v1300_v8, 3 }
 0xe4e   :  { %v1305_v30 = vsel %vm1304_vm5, %v1303_v59, %v1299_v1  ;;  %v1436_v20 = vsel %vm325_vm12, %v1435_v35, %v1434_v17 }
 0xe4f   :  { %1306 = vrot.lane.b32.xlu0 %v1305_v30, %s2654_s29 }
 0xe57   :  { %1135 = vrot.lane.b32.xlu0 %v2772_v54, %s2653_s28 }
 0xe61   :  { %v1125_v19 = vpop.permute.xlu1 %1124 }
 0xe62   :  { %v1127_v11 = vmul.f32 %v1125_v19, %v1108_v6 }
 0xe64   :  { %v1309_v2 = vrot.slane %v1127_v11, 4  ;;  %1129 = vrot.lane.b32.xlu2 %v1127_v11, %s2653_s28 }
 0xe66   :  { %1310 = vrot.lane.b32.xlu1 %v1309_v2, %s2655_s30 }
 0xe6e   :  { %1437 = vrot.lane.b32.xlu1 %v1436_v20, %s2654_s29 }
 0xebe   :  { %v1130_v21 = vpop.permute.xlu2 %1129 }
 0xec1   :  { %v1307_v61 = vpop.permute.xlu0 %1306 }
 0xec9   :  { %v1136_v12 = vpop.permute.xlu0 %1135 }
 0xeca   :  { %v1138_v13 = vsel %vm403_vm2, %v1130_v21, %v1136_v12 }
 0xecb   :  { %2325 = vmatmul.msk.f32.vlgmr.msra.gmra.mxu1 %vm405_vm3, %v1138_v13 }
 0xecc   :  { %1672 = vmatpush.msra.mxu1 %v2904_v9  ;;  %v3134_v9 = vld [vmem:[#allocation2 + $0x20] sm:$0xff] }
 0xece   :  { %1673 = vmatpush.msra.mxu1 %v2912_v14 }
 0xed0   :  { %1674 = vmatpush.msra.mxu1 %v2915_v15 }
 0xed2   :  { %1675 = vmatpush.msra.mxu1 %v2918_v16 }
 0xed8   :  { %v1311_v54 = vpop.permute.xlu1 %1310 }
 0xed9   :  { %v1313_v38 = vsel %vm154_vm7, %v1307_v61, %v1311_v54 }
 0xeda   :  { %v1315_v37 = vrot.slane %v1313_v38, 4 }
 0xedc   :  { %2330 = vmatmul.msk.f32.vlgmr.msrb.gmra.mxu3 %vm331_vm13, %v1315_v37 }
 0xedd   :  { %1949 = vmatpush.msrb.mxu3 %v2982_v5 }
 0xedf   :  { %1950 = vmatpush.msrb.mxu3 %v2986_v44 }
 0xee0   :  { %v1438_v52 = vpop.permute.xlu1 %1437 }
 0xee1   :  { %2334 = vmatmul.msk.f32.vlgmr.msrb.gmra.mxu1 %vm154_vm7, %v1438_v52 }
 0xee2   :  { %1822 = vmatpush.msrb.mxu1 %v3039_v29 }
 0xee4   :  { %1823 = vmatpush.msrb.mxu1 %v3042_v32 }
 0xee6   :  { %1824 = vmatpush.msrb.mxu1 %v3045_v31 }
 0xee8   :  { %1825 = vmatpush.msrb.mxu1 %v3048_v49 }
 0xeea   :  { %1826 = vmatpush.msrb.mxu1 %v3051_v50 }
 0xeec   :  { %1827 = vmatpush.msrb.mxu1 %v3134_v9 }
 0xf48   :  { %v1159_v14 = vpop.f32.mrf.mxu1 }
 0xf49   :  { %v1160_v15 = vadd.f32 %v2937_v23, %v1159_v14 }
 0xf4b   :  { %v1162_v16 = vmax.f32 %v1160_v15, 0.0 }
 0xf4d   :  { %2326 = vmatmul.msk.f32.vlgmr.msra.gmra.mxu0 %vm403_vm2, %v1162_v16 }
 0xf4e   :  { %1575 = vmatpush.msra.mxu0 %v3039_v29 }
 0xf50   :  { %1576 = vmatpush.msra.mxu0 %v3042_v32 }
 0xf52   :  { %1577 = vmatpush.msra.mxu0 %v3045_v31 }
 0xf54   :  { %1578 = vmatpush.msra.mxu0 %v3048_v49 }
 0xf56   :  { %1579 = vmatpush.msra.mxu0 %v3051_v50 }
 0xf58   :  { %1580 = vmatpush.msra.mxu0 %v3134_v9 }
 0xf5e   :  { %v1458_v40 = vpop.f32.mrf.mxu1 }
 0xf5f   :  { %v1462_v4 = vrot.slane %v1458_v40, 3  ;;  %v1463_v53 = vrot.slane %v1458_v40, 4  ;;  %v1335_v48 = vpop.f32.mrf.mxu3 }
 0xf60   :  { %v1336_v23 = vadd.f32 %v3084_v39, %v1335_v48 }
 0xf61   :  { %v1466_v22 = vadd.f32 %v1462_v4, %v2702_v18  ;;  %v1467_v25 = vadd.f32 %v1463_v53, %v2706_v24 }
 0xf62   :  { %2490 = vtanh.f32 %v1336_v23  ;;  %v2331_v41 = vmul.f32 -1.442695, %v1336_v23 }
 0xf63   :  { %2492 = vtanh.f32 %v1466_v22  ;;  %v2335_v42 = vmul.f32 -1.442695, %v1466_v22  ;;  %v2336_v51 = vmul.f32 -1.442695, %v1467_v25 }
 0xf64   :  { %2494 = vtanh.f32 %v1467_v25 }
 0xf65   :  { %2496 = vpow2.f32 %v2331_v41 }
 0xf68   :  { %v2491_v6 = vpop.eup %2490 }
 0xf69   :  { %v2493_v34 = vpop.eup %2492  ;;  %1360 = vrot.lane.b32.xlu2 %v2491_v6, %s2650_s23 }
 0xf6a   :  { %v2495_v36 = vpop.eup %2494  ;;  %1518 = vrot.lane.b32.xlu1 %v2493_v34, %s2651_s0 }
 0xf6b   :  { %1520 = vrot.lane.b32.xlu0 %v2495_v36, %s2651_s0  ;;  %v2497_v26 = vpop.eup %2496 }
 0xf6c   :  { %v1341_v47 = vadd.f32 1.0, %v2497_v26 }
 0xf6e   :  { %2498 = vrcp.f32 %v1341_v47  ;;  %v1353_v59 = vand.u32 2147483648, %v1341_v47  ;;  %vm1347_vm8 = vweird.f32 %v1341_v47  ;;  %v1351_v30 = vand.u32 2147483647, %v1341_v47 }
 0xf6f   :  { %2500 = vpow2.f32 %v2335_v42 }
 0xf70   :  { %2502 = vpow2.f32 %v2336_v51  ;;  %v1354_v11 = vor.u32 1.1754944e-38, %v1353_v59  ;;  %vm1352_vm10 = vcmp.eq.f32.partialorder %v1351_v30, 8.507059e+37 }
 0xf74   :  { %v2499_v28 = vpop.eup %2498 }
 0xf75   :  { %v1343_v63 = vmul.f32 %v2499_v28, %v1341_v47  ;;  %v2501_v0 = vpop.eup %2500  ;;  %vm1348_vm6 = vweird.f32 %v2499_v28 }
 0xf76   :  { %v2503_v43 = vpop.eup %2502  ;;  %v1474_v7 = vadd.f32 1.0, %v2501_v0  ;;  %vm1349_vm9 = vmor %vm1347_vm8, %vm1348_vm6  ;;  %vm1551_vm8 = vcmask 1046534  }
 0xf77   :  { %v1344_v3 = vsub.f32 1.0, %v1343_v63  ;;  %v1475_v1 = vadd.f32 1.0, %v2503_v43  ;;  %v1510_v63 = vrot.slane %v3096_v46, 7 }
 0xf78   :  { %2504 = vrcp.f32 %v1474_v7  ;;  %v1487_v15 = vand.u32 2147483648, %v1474_v7  ;;  %vm1481_vm15 = vweird.f32 %v1474_v7  ;;  %v1485_v40 = vand.u32 2147483647, %v1474_v7 }
 0xf79   :  { %v1345_v62 = vmul.f32 %v2499_v28, %v1344_v3  ;;  %2506 = vrcp.f32 %v1475_v1  ;;  %v1502_v16 = vand.u32 2147483648, %v1475_v1  ;;  %vm1496_vm0 = vweird.f32 %v1475_v1 }
 0xf7a   :  { %v1500_v4 = vand.u32 2147483647, %v1475_v1  ;;  %v1488_v23 = vor.u32 1.1754944e-38, %v1487_v15  ;;  %vm1486_vm5 = vcmp.eq.f32.partialorder %v1485_v40, 8.507059e+37  ;;  %v1511_v3 = vrot.slane %v3101_v60, 7  ;;  %v3182_v15 = vld [vmem:[#allocation2 + $0xc8] sm:$0xff] }
 0xf7b   :  { %v1346_v8 = vadd.f32 %v2499_v28, %v1345_v62  ;;  %v1503_v22 = vor.u32 1.1754944e-38, %v1502_v16  ;;  %v3185_v16 = vld [vmem:[#allocation2 + $0xc0] sm:$0xff]  ;;  %v3188_v40 = vld [vmem:[#allocation2 + $0xb8] sm:$0xff] }
 0xf7c   :  { %vm1501_vm6 = vcmp.eq.f32.partialorder %v1500_v4, 8.507059e+37 }
 0xf7d   :  { %v1350_v19 = vsel %vm1349_vm9, %v2499_v28, %v1346_v8 }
 0xf7e   :  { %v1355_v35 = vsel %vm1352_vm10, %v1354_v11, %v1350_v19  ;;  %v2505_v20 = vpop.eup %2504 }
 0xf7f   :  { %v2507_v61 = vpop.eup %2506  ;;  %v1477_v21 = vmul.f32 %v2505_v20, %v1474_v7  ;;  %vm1482_vm11 = vweird.f32 %v2505_v20  ;;  %v1358_v47 = vmul.f32 %v1355_v35, %v3106_v33 }
 0xf80   :  { %v1492_v12 = vmul.f32 %v2507_v61, %v1475_v1  ;;  %vm1497_vm14 = vweird.f32 %v2507_v61  ;;  %vm1483_vm1 = vmor %vm1481_vm15, %vm1482_vm11 }
 0xf81   :  { %v1478_v13 = vsub.f32 1.0, %v1477_v21  ;;  %vm1498_vm4 = vmor %vm1496_vm0, %vm1497_vm14 }
 0xf82   :  { %v1493_v54 = vsub.f32 1.0, %v1492_v12 }
 0xf83   :  { %v1479_v38 = vmul.f32 %v2505_v20, %v1478_v13 }
 0xf84   :  { %v1494_v37 = vmul.f32 %v2507_v61, %v1493_v54 }
 0xf85   :  { %v1480_v52 = vadd.f32 %v2505_v20, %v1479_v38 }
 0xf86   :  { %v1495_v14 = vadd.f32 %v2507_v61, %v1494_v37 }
 0xf87   :  { %v1484_v53 = vsel %vm1483_vm1, %v2505_v20, %v1480_v52 }
 0xf88   :  { %v1499_v48 = vsel %vm1498_vm4, %v2507_v61, %v1495_v14  ;;  %v1489_v6 = vsel %vm1486_vm5, %v1488_v23, %v1484_v53 }
 0xf89   :  { %v1504_v36 = vsel %vm1501_vm6, %v1503_v22, %v1499_v48  ;;  %v1514_v62 = vmul.f32 %v1510_v63, %v1489_v6  ;;  %v3203_v48 = vld [vmem:[#allocation2 + $0x175] ss:$0 sm:$0xff] }
 0xf8a   :  { %v1515_v0 = vmul.f32 %v1511_v3, %v1504_v36 }
 0xfc3   :  { %v1361_v2 = vpop.permute.xlu2 %1360 }
 0xfc4   :  { %v1363_v17 = vmul.f32 %v1361_v2, %v1355_v35 }
 0xfc6   :  { %1365 = vrot.lane.b32.xlu2 %v1363_v17, %s2653_s28 }
 0xfca   :  { %v3198_v4 = vpop.f32.mrf.mxu0 }
 0xfdc   :  { %v1519_v25 = vpop.permute.xlu1 %1518 }
 0xfdd   :  { %v1521_v34 = vpop.permute.xlu0 %1520  ;;  %v1524_v41 = vmul.f32 %v1519_v25, %v1489_v6 }
 0xfde   :  { %v1525_v26 = vmul.f32 %v1521_v34, %v1504_v36 }
 0xfdf   :  { %1528 = vrot.lane.b32.xlu1 %v1524_v41, %s2652_s1 }
 0xfe0   :  { %1530 = vrot.lane.b32.xlu0 %v1525_v26, %s2652_s1 }
0x1020   :  { %v1366_v28 = vpop.permute.xlu2 %1365 }
0x1021   :  { %v3155_v42 = vadd.f32 %v1366_v28, %v1358_v47 }
0x1023   :  { %2508 = vtanh.f32 %v3155_v42 }
0x1029   :  { %v2509_v51 = vpop.eup %2508 }
0x102a   :  { %1371 = vrot.lane.b32.xlu2 %v2509_v51, %s2650_s23 }
0x1051   :  { %v1529_v43 = vpop.permute.xlu1 %1528 }
0x1052   :  { %v1531_v7 = vpop.permute.xlu0 %1530  ;;  %v3161_v8 = vadd.f32 %v1529_v43, %v1514_v62 }
0x1053   :  { %v3163_v1 = vadd.f32 %v1531_v7, %v1515_v0 }
0x1054   :  { %2510 = vtanh.f32 %v3161_v8 }
0x1055   :  { %2512 = vtanh.f32 %v3163_v1 }
0x105a   :  { %v2511_v33 = vpop.eup %2510 }
0x105b   :  { %v2513_v59 = vpop.eup %2512  ;;  %1540 = vrot.lane.b32.xlu1 %v2511_v33, %s2653_s28 }
0x105c   :  { %1542 = vrot.lane.b32.xlu0 %v2513_v59, %s2653_s28 }
0x1064   :  { %1382 = vrot.lane.b32.xlu0 %v2775_v55, %s2653_s28 }
0x1084   :  { %v1372_v46 = vpop.permute.xlu2 %1371 }
0x1085   :  { %v1374_v60 = vmul.f32 %v1372_v46, %v1355_v35 }
0x1087   :  { %1376 = vrot.lane.b32.xlu2 %v1374_v60, %s2653_s28  ;;  %v1556_v30 = vrot.slane %v1374_v60, 3 }
0x108f   :  { %1557 = vrot.lane.b32.xlu2 %v1556_v30, %s2655_s30 }
0x10cd   :  { %v1541_v19 = vpop.permute.xlu1 %1540 }
0x10ce   :  { %v1543_v11 = vpop.permute.xlu0 %1542  ;;  %v1546_v2 = vmul.f32 %v1541_v19, %v1489_v6 }
0x10cf   :  { %v1547_v17 = vmul.f32 %v1543_v11, %v1504_v36 }
0x10d0   :  { %v1681_v20 = vrot.slane %v1546_v2, 5 }
0x10d1   :  { %v1550_v61 = vrot.slane %v1547_v17, 7  ;;  %v1682_v21 = vrot.slane %v1547_v17, 4 }
0x10d3   :  { %v1683_v12 = vsel %vm325_vm12, %v1682_v21, %v1681_v20  ;;  %v1552_v13 = vsel %vm1551_vm8, %v1550_v61, %v1546_v2 }
0x10d4   :  { %1684 = vrot.lane.b32.xlu0 %v1683_v12, %s2654_s29  ;;  %1553 = vrot.lane.b32.xlu1 %v1552_v13, %s2654_s29 }
0x10d6   :  { %v1383_v55 = vpop.permute.xlu0 %1382 }
0x10e1   :  { %v1377_v35 = vpop.permute.xlu2 %1376 }
0x10e2   :  { %v1385_v54 = vsel %vm403_vm2, %v1377_v35, %v1383_v55 }
0x10e3   :  { %2332 = vmatmul.msk.f32.vlgmr.msrb.gmra.mxu0 %vm405_vm3, %v1385_v54 }
0x10e4   :  { %1702 = vmatpush.msrb.mxu0 %v2982_v5 }
0x10e6   :  { %1703 = vmatpush.msrb.mxu0 %v2986_v44  ;;  %v3191_v44 = vld [vmem:[#allocation2 + $0xb0] sm:$0xff] }
0x10e9   :  { %v1558_v38 = vpop.permute.xlu2 %1557 }
0x1146   :  { %v1554_v37 = vpop.permute.xlu1 %1553  ;;  %v1685_v5 = vpop.permute.xlu0 %1684 }
0x1147   :  { %v1560_v52 = vsel %vm154_vm7, %v1554_v37, %v1558_v38 }
0x1148   :  { %v1562_v14 = vrot.slane %v1560_v52, 5 }
0x114a   :  { %2337 = vmatmul.msk.f32.vlgmr.msra.gmra.mxu0 %vm331_vm13, %v1562_v14 }
0x114b   :  { %1919 = vmatpush.msra.mxu0 %v3182_v15 }
0x114d   :  { %1920 = vmatpush.msra.mxu0 %v3185_v16 }
0x114f   :  { %1921 = vmatpush.msra.mxu0 %v3188_v40 }
0x1151   :  { %1922 = vmatpush.msra.mxu0 %v3191_v44 }
0x1152   :  { %2341 = vmatmul.msk.f32.vlgmr.msrb.gmra.mxu0 %vm154_vm7, %v1685_v5 }
0x1153   :  { %2075 = vmatpush.msrb.mxu0 %v3039_v29 }
0x1155   :  { %2076 = vmatpush.msrb.mxu0 %v3042_v32 }
0x1157   :  { %2077 = vmatpush.msrb.mxu0 %v3045_v31 }
0x1159   :  { %2078 = vmatpush.msrb.mxu0 %v3048_v49 }
0x115b   :  { %2079 = vmatpush.msrb.mxu0 %v3051_v50 }
0x115d   :  { %2080 = vmatpush.msrb.mxu0 %v3134_v9 }
0x1160   :  { %v1406_v53 = vpop.f32.mrf.mxu0 }
0x1161   :  { %v1407_v23 = vadd.f32 %v3203_v48, %v1406_v53 }
0x1163   :  { %v1409_v22 = vmax.f32 %v1407_v23, 0.0 }
0x1165   :  { %2333 = vmatmul.msk.f32.vlgmr.msrb.gmra.mxu2 %vm403_vm2, %v1409_v22 }
0x11c7   :  { %v1582_v29 = vpop.f32.mrf.mxu0 }
0x11c8   :  { %v1583_v32 = vadd.f32 %v3084_v39, %v1582_v29 }
0x11ca   :  { %2514 = vtanh.f32 %v1583_v32  ;;  %v2338_v49 = vmul.f32 -1.442695, %v1583_v32 }
0x11cc   :  { %2516 = vpow2.f32 %v2338_v49 }
0x11cf   :  { %v1705_v43 = vpop.f32.mrf.mxu0 }
0x11d0   :  { %v2515_v31 = vpop.eup %2514  ;;  %v1710_v59 = vrot.slane %v1705_v43, 3  ;;  %v1709_v20 = vrot.slane %v1705_v43, 2 }
0x11d1   :  { %1607 = vrot.lane.b32.xlu1 %v2515_v31, %s2650_s23  ;;  %v1758_v31 = vrot.slane %v3163_v1, 7 }
0x11d2   :  { %v2517_v50 = vpop.eup %2516  ;;  %v1714_v46 = vadd.f32 %v1710_v59, %v2706_v24  ;;  %v1713_v21 = vadd.f32 %v1709_v20, %v2702_v18  ;;  %v1757_v59 = vrot.slane %v3161_v8, 7  ;;  %v2586_v8 = vld [vmem:[#allocation2 + $0x98] sm:$0xff]  ;;  %v2591_v20 = vld [vmem:[#allocation2 + $0x70] sm:$0xff] }
0x11d3   :  { %v1588_v25 = vadd.f32 1.0, %v2517_v50 }
0x11d4   :  { %v2343_v19 = vmul.f32 -1.442695, %v1714_v46  ;;  %v2342_v23 = vmul.f32 -1.442695, %v1713_v21 }
0x11d5   :  { %2518 = vrcp.f32 %v1588_v25  ;;  %v1600_v26 = vand.u32 2147483648, %v1588_v25  ;;  %vm1594_vm10 = vweird.f32 %v1588_v25  ;;  %v1598_v47 = vand.u32 2147483647, %v1588_v25 }
0x11d7   :  { %v1601_v51 = vor.u32 1.1754944e-38, %v1600_v26  ;;  %vm1599_vm14 = vcmp.eq.f32.partialorder %v1598_v47, 8.507059e+37 }
0x11db   :  { %v2519_v9 = vpop.eup %2518 }
0x11dc   :  { %v1590_v6 = vmul.f32 %v2519_v9, %v1588_v25  ;;  %vm1595_vm9 = vweird.f32 %v2519_v9 }
0x11dd   :  { %vm1596_vm11 = vmor %vm1594_vm10, %vm1595_vm9  ;;  %vm1798_vm10 = vcmask 1047559  }
0x11de   :  { %v1591_v34 = vsub.f32 1.0, %v1590_v6 }
0x11e0   :  { %v1592_v36 = vmul.f32 %v2519_v9, %v1591_v34 }
0x11e2   :  { %v1593_v41 = vadd.f32 %v2519_v9, %v1592_v36 }
0x11e4   :  { %v1597_v28 = vsel %vm1596_vm11, %v2519_v9, %v1593_v41 }
0x11e5   :  { %v1602_v3 = vsel %vm1599_vm14, %v1601_v51, %v1597_v28 }
0x11e6   :  { %v1605_v0 = vmul.f32 %v1602_v3, %v3155_v42 }
0x1243   :  { %v1608_v63 = vpop.permute.xlu1 %1607 }
0x1244   :  { %v1610_v62 = vmul.f32 %v1608_v63, %v1602_v3 }
0x1246   :  { %1612 = vrot.lane.b32.xlu2 %v1610_v62, %s2653_s28 }
0x124e   :  { %1629 = vrot.lane.b32.xlu2 %v2778_v56, %s2653_s28 }
0x12a0   :  { %v1613_v7 = vpop.permute.xlu2 %1612 }
0x12a1   :  { %v3213_v33 = vadd.f32 %v1613_v7, %v1605_v0 }
0x12a3   :  { %2520 = vtanh.f32 %v3213_v33 }
0x12a4   :  { %2522 = vtanh.f32 %v1714_v46 }
0x12a5   :  { %2524 = vpow2.f32 %v2343_v19 }
0x12a8   :  { %v1630_v32 = vpop.permute.xlu2 %1629 }
0x12a9   :  { %v2521_v60 = vpop.eup %2520 }
0x12aa   :  { %1618 = vrot.lane.b32.xlu0 %v2521_v60, %s2650_s23  ;;  %v2523_v30 = vpop.eup %2522 }
0x12ab   :  { %v2525_v56 = vpop.eup %2524 }
0x12ac   :  { %v1722_v42 = vadd.f32 1.0, %v2525_v56  ;;  %v2585_v56 = vld [vmem:[#allocation2 + $0xa0] sm:$0xff] }
0x12ae   :  { %2526 = vrcp.f32 %v1722_v42  ;;  %v1749_v35 = vand.u32 2147483648, %v1722_v42  ;;  %vm1743_vm0 = vweird.f32 %v1722_v42  ;;  %v1747_v54 = vand.u32 2147483647, %v1722_v42 }
0x12af   :  { %2528 = vtanh.f32 %v1713_v21 }
0x12b0   :  { %v1750_v37 = vor.u32 1.1754944e-38, %v1749_v35  ;;  %vm1748_vm4 = vcmp.eq.f32.partialorder %v1747_v54, 8.507059e+37  ;;  %2530 = vpow2.f32 %v2342_v23 }
0x12b2   :  { %1767 = vrot.lane.b32.xlu0 %v2523_v30, %s2651_s0 }
0x12b4   :  { %v2527_v11 = vpop.eup %2526 }
0x12b5   :  { %v1739_v2 = vmul.f32 %v2527_v11, %v1722_v42  ;;  %vm1744_vm15 = vweird.f32 %v2527_v11  ;;  %v2529_v53 = vpop.eup %2528  ;;  %v2587_v42 = vld [vmem:[#allocation2 + $0x90] sm:$0xff] }
0x12b6   :  { %vm1745_vm1 = vmor %vm1743_vm0, %vm1744_vm15  ;;  %v2531_v22 = vpop.eup %2530 }
0x12b7   :  { %v1740_v17 = vsub.f32 1.0, %v1739_v2  ;;  %v1721_v29 = vadd.f32 1.0, %v2531_v22  ;;  %v2589_v2 = vld [vmem:[#allocation2 + $0x80] sm:$0xff] }
0x12b9   :  { %v1741_v61 = vmul.f32 %v2527_v11, %v1740_v17  ;;  %2532 = vrcp.f32 %v1721_v29  ;;  %v1734_v1 = vand.u32 2147483648, %v1721_v29  ;;  %vm1728_vm6 = vweird.f32 %v1721_v29  ;;  %v2590_v17 = vld [vmem:[#allocation2 + $0x78] sm:$0xff] }
0x12ba   :  { %v1732_v63 = vand.u32 2147483647, %v1721_v29 }
0x12bb   :  { %v1742_v55 = vadd.f32 %v2527_v11, %v1741_v61  ;;  %v1735_v62 = vor.u32 1.1754944e-38, %v1734_v1 }
0x12bc   :  { %vm1733_vm9 = vcmp.eq.f32.partialorder %v1732_v63, 8.507059e+37 }
0x12bd   :  { %v1746_v38 = vsel %vm1745_vm1, %v2527_v11, %v1742_v55  ;;  %v2588_v11 = vld [vmem:[#allocation2 + $0x88] sm:$0xff] }
0x12be   :  { %v3221_v52 = vsel %vm1748_vm4, %v1750_v37, %v1746_v38 }
0x12bf   :  { %v1762_v49 = vmul.f32 %v1758_v31, %v3221_v52  ;;  %v2533_v9 = vpop.eup %2532 }
0x12c0   :  { %v1724_v6 = vmul.f32 %v2533_v9, %v1721_v29  ;;  %vm1729_vm5 = vweird.f32 %v2533_v9 }
0x12c1   :  { %vm1730_vm8 = vmor %vm1728_vm6, %vm1729_vm5 }
0x12c2   :  { %v1725_v36 = vsub.f32 1.0, %v1724_v6 }
0x12c4   :  { %v1726_v41 = vmul.f32 %v2533_v9, %v1725_v36 }
0x12c6   :  { %v1727_v51 = vadd.f32 %v2533_v9, %v1726_v41 }
0x131c   :  { %v1619_v12 = vpop.permute.xlu0 %1618 }
0x131d   :  { %v1621_v13 = vmul.f32 %v1619_v12, %v1602_v3  ;;  %v1731_v3 = vsel %vm1730_vm8, %v2533_v9, %v1727_v51 }
0x131e   :  { %v1736_v0 = vsel %vm1733_vm9, %v1735_v62, %v1731_v3 }
0x131f   :  { %1623 = vrot.lane.b32.xlu1 %v1621_v13, %s2653_s28  ;;  %v1803_v26 = vrot.slane %v1621_v13, 2  ;;  %v1761_v46 = vmul.f32 %v1757_v59, %v1736_v0 }
0x1324   :  { %v1768_v14 = vpop.permute.xlu0 %1767 }
0x1325   :  { %v1772_v5 = vmul.f32 %v1768_v14, %v3221_v52 }
0x1327   :  { %1765 = vrot.lane.b32.xlu1 %v2529_v53, %s2651_s0  ;;  %1777 = vrot.lane.b32.xlu2 %v1772_v5, %s2652_s1 }
0x1381   :  { %v1778_v50 = vpop.permute.xlu2 %1777 }
0x1382   :  { %v3228_v25 = vadd.f32 %v1778_v50, %v1762_v49 }
0x1384   :  { %2534 = vtanh.f32 %v3228_v25 }
0x138a   :  { %v2535_v34 = vpop.eup %2534 }
0x138b   :  { %1789 = vrot.lane.b32.xlu1 %v2535_v34, %s2653_s28 }
0x1391   :  { %v1624_v47 = vpop.permute.xlu1 %1623 }
0x1392   :  { %v1632_v28 = vsel %vm403_vm2, %v1624_v47, %v1630_v32 }
0x1393   :  { %2339 = vmatmul.msk.f32.vlgmr.msra.gmra.mxu3 %vm405_vm3, %v1632_v28  ;;  %1804 = vrot.lane.b32.xlu1 %v1803_v26, %s2655_s30 }
0x1394   :  { %2172 = vmatpush.msra.mxu3 %v3182_v15 }
0x1396   :  { %2173 = vmatpush.msra.mxu3 %v3185_v16 }
0x1398   :  { %2174 = vmatpush.msra.mxu3 %v3188_v40 }
0x1399   :  { %v1766_v43 = vpop.permute.xlu1 %1765 }
0x139a   :  { %v1771_v7 = vmul.f32 %v1766_v43, %v1736_v0  ;;  %2175 = vmatpush.msra.mxu3 %v3191_v44  ;;  %v2584_v44 = vld [vmem:[#allocation2 + $0xa8] sm:$0xff] }
0x139c   :  { %1775 = vrot.lane.b32.xlu0 %v1771_v7, %s2652_s1 }
0x13fd   :  { %v1790_v61 = vpop.permute.xlu1 %1789 }
0x13fe   :  { %v1794_v21 = vmul.f32 %v1790_v61, %v3221_v52 }
0x1400   :  { %v1797_v13 = vrot.slane %v1794_v21, 7  ;;  %v1929_v35 = vrot.slane %v1794_v21, 5 }
0x1405   :  { %v1805_v5 = vpop.permute.xlu1 %1804 }
0x140e   :  { %v1776_v60 = vpop.permute.xlu0 %1775 }
0x140f   :  { %v3241_v15 = vadd.f32 %v1776_v60, %v1761_v46 }
0x1411   :  { %2536 = vtanh.f32 %v3241_v15 }
0x1416   :  { %v1653_v16 = vpop.f32.mrf.mxu3 }
0x1417   :  { %v2537_v30 = vpop.eup %2536  ;;  %v1654_v19 = vadd.f32 %v3203_v48, %v1653_v16 }
0x1418   :  { %1787 = vrot.lane.b32.xlu2 %v2537_v30, %s2653_s28 }
0x1419   :  { %v1656_v40 = vmax.f32 %v1654_v19, 0.0 }
0x141b   :  { %2340 = vmatmul.msk.f32.vlgmr.msra.gmra.mxu1 %vm403_vm2, %v1656_v40 }
0x141c   :  { %2144 = vmatpush.msra.mxu1 %v2584_v44 }
0x141e   :  { %2145 = vmatpush.msra.mxu1 %v2585_v56 }
0x1420   :  { %2146 = vmatpush.msra.mxu1 %v2586_v8 }
0x1422   :  { %2147 = vmatpush.msra.mxu1 %v2587_v42 }
0x1424   :  { %2148 = vmatpush.msra.mxu1 %v2588_v11 }
0x1426   :  { %2149 = vmatpush.msra.mxu1 %v2589_v2 }
0x1428   :  { %2150 = vmatpush.msra.mxu1 %v2590_v17 }
0x142a   :  { %2151 = vmatpush.msra.mxu1 %v2591_v20 }
0x1472   :  { %v1788_v12 = vpop.permute.xlu2 %1787 }
0x1473   :  { %v1793_v55 = vmul.f32 %v1788_v12, %v1736_v0 }
0x1475   :  { %v1928_v54 = vrot.slane %v1793_v55, 6  ;;  %v1799_v38 = vsel %vm1798_vm10, %v1797_v13, %v1793_v55 }
0x1476   :  { %1800 = vrot.lane.b32.xlu0 %v1799_v38, %s2654_s29 }
0x1477   :  { %v1930_v37 = vsel %vm325_vm12, %v1929_v35, %v1928_v54 }
0x1478   :  { %1931 = vrot.lane.b32.xlu2 %v1930_v37, %s2654_s29 }
0x1498   :  { %v3254_v22 = vpop.f32.mrf.mxu1 }
0x14d2   :  { %v1932_v14 = vpop.permute.xlu2 %1931 }
0x14d3   :  { %2348 = vmatmul.msk.f32.vlgmr.msrb.gmra.mxu3 %vm154_vm7, %v1932_v14 }
0x14e8   :  { %v1801_v53 = vpop.permute.xlu0 %1800 }
0x14e9   :  { %v1807_v52 = vsel %vm154_vm7, %v1801_v53, %v1805_v5 }
0x14ea   :  { %v1809_v23 = vrot.slane %v1807_v52, 6 }
0x14ec   :  { %2344 = vmatmul.msk.f32.vlgmr.msrb.gmra.mxu1 %vm331_vm13, %v1809_v23 }
0x1556   :  { %v1952_v0 = vpop.f32.mrf.mxu3 }
0x1557   :  { %v1957_v59 = vrot.slane %v1952_v0, 2  ;;  %v1956_v56 = vrot.slane %v1952_v0, 1  ;;  %v3280_v0 = vpop.f32.mrf.mxu2 }
0x1559   :  { %v1961_v46 = vadd.f32 %v1957_v59, %v2706_v24  ;;  %v1960_v42 = vadd.f32 %v1956_v56, %v2702_v18 }
0x155b   :  { %v2350_v30 = vmul.f32 -1.442695, %v1961_v46  ;;  %v2349_v18 = vmul.f32 -1.442695, %v1960_v42 }
0x1569   :  { %v1829_v29 = vpop.f32.mrf.mxu1 }
0x156a   :  { %v1830_v32 = vadd.f32 %v3084_v39, %v1829_v29 }
0x156c   :  { %2538 = vtanh.f32 %v1830_v32  ;;  %v2345_v49 = vmul.f32 -1.442695, %v1830_v32 }
0x156e   :  { %2540 = vpow2.f32 %v2345_v49 }
0x1572   :  { %v2539_v31 = vpop.eup %2538 }
0x1573   :  { %1854 = vrot.lane.b32.xlu0 %v2539_v31, %s2650_s23 }
0x1574   :  { %v2541_v50 = vpop.eup %2540 }
0x1575   :  { %v1835_v9 = vadd.f32 1.0, %v2541_v50  ;;  %v2005_v50 = vrot.slane %v3228_v25, 7 }
0x1577   :  { %2542 = vrcp.f32 %v1835_v9  ;;  %v1847_v47 = vand.u32 2147483648, %v1835_v9  ;;  %vm1841_vm11 = vweird.f32 %v1835_v9  ;;  %v1845_v28 = vand.u32 2147483647, %v1835_v9 }
0x1579   :  { %v1848_v51 = vor.u32 1.1754944e-38, %v1847_v47  ;;  %vm1846_vm15 = vcmp.eq.f32.partialorder %v1845_v28, 8.507059e+37 }
0x157d   :  { %v2543_v6 = vpop.eup %2542 }
0x157e   :  { %v1837_v34 = vmul.f32 %v2543_v6, %v1835_v9  ;;  %vm1842_vm12 = vweird.f32 %v2543_v6 }
0x157f   :  { %vm1843_vm14 = vmor %vm1841_vm11, %vm1842_vm12  ;;  %vm2059_vm12 = vcmask 1040384  }
0x1580   :  { %v1838_v36 = vsub.f32 1.0, %v1837_v34 }
0x1582   :  { %v1839_v41 = vmul.f32 %v2543_v6, %v1838_v36 }
0x1584   :  { %v1840_v26 = vadd.f32 %v2543_v6, %v1839_v41 }
0x1586   :  { %v1844_v39 = vsel %vm1843_vm14, %v2543_v6, %v1840_v26 }
0x1587   :  { %v1849_v63 = vsel %vm1846_vm15, %v1848_v51, %v1844_v39  ;;  %v2004_v51 = vrot.slane %v3241_v15, 7 }
0x1588   :  { %v1852_v62 = vmul.f32 %v1849_v63, %v3213_v33 }
0x15e5   :  { %v1855_v1 = vpop.permute.xlu0 %1854 }
0x15e6   :  { %v1857_v3 = vmul.f32 %v1855_v1, %v1849_v63 }
0x15e8   :  { %1859 = vrot.lane.b32.xlu1 %v1857_v3, %s2653_s28 }
0x15f0   :  { %1876 = vrot.lane.b32.xlu1 %v2781_v57, %s2653_s28 }
0x165a   :  { %v1860_v43 = vpop.permute.xlu1 %1859 }
0x165b   :  { %v3262_v7 = vadd.f32 %v1860_v43, %v1852_v62 }
0x165d   :  { %2544 = vtanh.f32 %v3262_v7 }
0x165e   :  { %2546 = vtanh.f32 %v1961_v46 }
0x165f   :  { %2548 = vpow2.f32 %v2350_v30 }
0x1662   :  { %v1877_v52 = vpop.permute.xlu1 %1876 }
0x1663   :  { %v2545_v60 = vpop.eup %2544 }
0x1664   :  { %1865 = vrot.lane.b32.xlu2 %v2545_v60, %s2650_s23  ;;  %v2547_v16 = vpop.eup %2546 }
0x1665   :  { %v2549_v57 = vpop.eup %2548 }
0x1666   :  { %v1969_v33 = vadd.f32 1.0, %v2549_v57 }
0x1668   :  { %2550 = vrcp.f32 %v1969_v33  ;;  %v1996_v17 = vand.u32 2147483648, %v1969_v33  ;;  %vm1990_vm1 = vweird.f32 %v1969_v33  ;;  %v1994_v20 = vand.u32 2147483647, %v1969_v33 }
0x1669   :  { %2552 = vtanh.f32 %v1960_v42 }
0x166a   :  { %v1997_v21 = vor.u32 1.1754944e-38, %v1996_v17  ;;  %vm1995_vm5 = vcmp.eq.f32.partialorder %v1994_v20, 8.507059e+37  ;;  %2554 = vpow2.f32 %v2349_v18  ;;  %v2592_v17 = vld [vmem:[#allocation2 + $0x172] ss:$0 sm:$0xff] }
0x166c   :  { %2014 = vrot.lane.b32.xlu2 %v2547_v16, %s2651_s0 }
0x166e   :  { %v2551_v19 = vpop.eup %2550 }
0x166f   :  { %v1986_v40 = vmul.f32 %v2551_v19, %v1969_v33  ;;  %vm1991_vm0 = vweird.f32 %v2551_v19  ;;  %v2553_v35 = vpop.eup %2552 }
0x1670   :  { %vm1992_vm4 = vmor %vm1990_vm1, %vm1991_vm0  ;;  %v2555_v54 = vpop.eup %2554  ;;  %vm2213_vm1 = vcmask 654336  }
0x1671   :  { %v1987_v44 = vsub.f32 1.0, %v1986_v40  ;;  %v1968_v38 = vadd.f32 1.0, %v2555_v54 }
0x1673   :  { %v1988_v8 = vmul.f32 %v2551_v19, %v1987_v44  ;;  %2556 = vrcp.f32 %v1968_v38  ;;  %v1981_v31 = vand.u32 2147483648, %v1968_v38  ;;  %vm1975_vm8 = vweird.f32 %v1968_v38 }
0x1674   :  { %v1979_v49 = vand.u32 2147483647, %v1968_v38 }
0x1675   :  { %v1989_v2 = vadd.f32 %v2551_v19, %v1988_v8  ;;  %v1982_v6 = vor.u32 1.1754944e-38, %v1981_v31 }
0x1676   :  { %vm1980_vm10 = vcmp.eq.f32.partialorder %v1979_v49, 8.507059e+37 }
0x1677   :  { %v1993_v61 = vsel %vm1992_vm4, %v2551_v19, %v1989_v2  ;;  %vm2215_vm4 = vcmask 785408  }
0x1678   :  { %v1998_v12 = vsel %vm1995_vm5, %v1997_v21, %v1993_v61  ;;  %vm2217_vm5 = vcmask 916480  }
0x1679   :  { %v2557_v37 = vpop.eup %2556  ;;  %v2009_v34 = vmul.f32 %v2005_v50, %v1998_v12 }
0x167a   :  { %v1971_v14 = vmul.f32 %v2557_v37, %v1968_v38  ;;  %vm1976_vm6 = vweird.f32 %v2557_v37 }
0x167b   :  { %vm1977_vm9 = vmor %vm1975_vm8, %vm1976_vm6 }
0x167c   :  { %v1972_v5 = vsub.f32 1.0, %v1971_v14 }
0x167e   :  { %v1973_v53 = vmul.f32 %v2557_v37, %v1972_v5 }
0x1680   :  { %v1974_v32 = vadd.f32 %v2557_v37, %v1973_v53 }
0x1682   :  { %v1978_v9 = vsel %vm1977_vm9, %v2557_v37, %v1974_v32  ;;  %v3291_v32 = vld [vmem:[#allocation2 + $0x176] ss:$0 sm:$0xff] }
0x1683   :  { %v1983_v36 = vsel %vm1980_vm10, %v1982_v6, %v1978_v9  ;;  %v1184_v31 = vadd.f32 %v3291_v32, %v3198_v4 }
0x1684   :  { %v2008_v1 = vmul.f32 %v2004_v51, %v1983_v36 }
0x1685   :  { %v1186_v49 = vmax.f32 %v1184_v31, 0.0 }
0x16be   :  { %v1866_v24 = vpop.permute.xlu2 %1865 }
0x16bf   :  { %v1868_v11 = vmul.f32 %v1866_v24, %v1849_v63 }
0x16c1   :  { %1870 = vrot.lane.b32.xlu0 %v1868_v11, %s2653_s28  ;;  %v2051_v62 = vrot.slane %v1868_v11, 1 }
0x16c6   :  { %v2015_v13 = vpop.permute.xlu2 %2014 }
0x16c7   :  { %v2019_v55 = vmul.f32 %v2015_v13, %v1998_v12 }
0x16c9   :  { %2012 = vrot.lane.b32.xlu0 %v2553_v35, %s2651_s0  ;;  %2024 = vrot.lane.b32.xlu1 %v2019_v55, %s2652_s1 }
0x1733   :  { %v1871_v23 = vpop.permute.xlu0 %1870 }
0x1734   :  { %v1879_v29 = vsel %vm403_vm2, %v1871_v23, %v1877_v52 }
0x1735   :  { %2346 = vmatmul.msk.f32.vlgmr.msra.gmra.mxu2 %vm405_vm3, %v1879_v29 }
0x173b   :  { %v2013_v41 = vpop.permute.xlu0 %2012  ;;  %v2025_v26 = vpop.permute.xlu1 %2024 }
0x173c   :  { %v2018_v47 = vmul.f32 %v2013_v41, %v1983_v36  ;;  %v2029_v28 = vadd.f32 %v2025_v26, %v2009_v34  ;;  %v1431_v26 = vadd.f32 %v3291_v32, %v3280_v0 }
0x173e   :  { %2558 = vtanh.f32 %v2029_v28  ;;  %2022 = vrot.lane.b32.xlu2 %v2018_v47, %s2652_s1  ;;  %v1433_v47 = vmax.f32 %v1431_v26, 0.0 }
0x1744   :  { %v2559_v39 = vpop.eup %2558 }
0x1745   :  { %2036 = vrot.lane.b32.xlu0 %v2559_v39, %s2653_s28  ;;  %v937_v39 = vadd.f32 %v3291_v32, %v3082_v10  ;;  %v72_v10 = vld [vmem:[#allocation2 + $0x148] sm:$0xff] }
0x1746   :  { %2220 = vmatpush.msrb.mxu2 %v72_v10 }
0x1747   :  { %v939_v51 = vmax.f32 %v937_v39, 0.0 }
0x1798   :  { %v2023_v63 = vpop.permute.xlu2 %2022 }
0x1799   :  { %v2028_v25 = vadd.f32 %v2023_v63, %v2008_v1 }
0x179b   :  { %2560 = vtanh.f32 %v2028_v25 }
0x17a1   :  { %v2561_v3 = vpop.eup %2560 }
0x17a2   :  { %2034 = vrot.lane.b32.xlu1 %v2561_v3, %s2653_s28 }
0x17aa   :  { %2052 = vrot.lane.b32.xlu1 %v2051_v62, %s2655_s30 }
0x17b7   :  { %v2037_v43 = vpop.permute.xlu0 %2036 }
0x17b8   :  { %v2041_v59 = vmul.f32 %v2037_v43, %v1998_v12  ;;  %v1900_v46 = vpop.f32.mrf.mxu2 }
0x17b9   :  { %v1901_v60 = vadd.f32 %v3203_v48, %v1900_v46  ;;  %v70_v46 = vld [vmem:[#allocation2 + $0x138] sm:$0xff] }
0x17ba   :  { %v2044_v16 = vrot.slane %v2041_v59, 7  ;;  %v71_v59 = vld [vmem:[#allocation2 + $0x140] sm:$0xff] }
0x17bb   :  { %v1903_v30 = vmax.f32 %v1901_v60, 0.0  ;;  %2221 = vmatpush.msrb.mxu2 %v71_v59  ;;  %v68_v60 = vld [vmem:[#allocation2 + $0x128] sm:$0xff] }
0x17bc   :  { %2047 = vrot.lane.b32.xlu0 %v2044_v16, %s2654_s29  ;;  %v67_v16 = vld [vmem:[#allocation2 + $0x120] sm:$0xff] }
0x17bd   :  { %2347 = vmatmul.msk.f32.vlgmr.msra.gmra.mxu0 %vm403_vm2, %v1903_v30  ;;  %2222 = vmatpush.msrb.mxu2 %v70_v46  ;;  %v66_v30 = vld [vmem:[#allocation2 + $0x118] sm:$0xff] }
0x1814   :  { %v2035_v15 = vpop.permute.xlu1 %2034 }
0x1815   :  { %v2040_v57 = vmul.f32 %v2035_v15, %v1983_v36  ;;  %v65_v15 = vld [vmem:[#allocation2 + $0x110] sm:$0xff] }
0x1817   :  { %2045 = vrot.lane.b32.xlu2 %v2040_v57, %s2654_s29  ;;  %v64_v57 = vld [vmem:[#allocation2 + $0x108] sm:$0xff] }
0x181c   :  { %v2053_v19 = vpop.permute.xlu1 %2052 }
0x182e   :  { %v2048_v33 = vpop.permute.xlu0 %2047 }
0x182f   :  { %v2056_v40 = vsel %vm154_vm7, %v2048_v33, %v2053_v19  ;;  %v62_v33 = vld [vmem:[#allocation2 + $0xf8] sm:$0xff] }
0x1830   :  { %v2061_v8 = vrot.slane %v2056_v40, 7  ;;  %v60_v40 = vld [vmem:[#allocation2 + $0xe8] sm:$0xff] }
0x183a   :  { %v1924_v11 = vpop.f32.mrf.mxu0 }
0x183b   :  { %v1925_v50 = vadd.f32 %v3291_v32, %v1924_v11  ;;  %v57_v11 = vld [vmem:[#allocation2 + $0xd0] sm:$0xff] }
0x183d   :  { %v1927_v9 = vmax.f32 %v1925_v50, 0.0 }
0x1871   :  { %v2046_v44 = vpop.permute.xlu2 %2045 }
0x1872   :  { %v2055_v56 = vsel %vm154_vm7, %v2046_v44, %v2053_v19  ;;  %v61_v19 = vld [vmem:[#allocation2 + $0xf0] sm:$0xff]  ;;  %v59_v44 = vld [vmem:[#allocation2 + $0xe0] sm:$0xff] }
0x1873   :  { %v2060_v42 = vrot.slane %v2055_v56, 7  ;;  %v58_v56 = vld [vmem:[#allocation2 + $0xd8] sm:$0xff] }
0x1875   :  { %v2062_v24 = vsel %vm2059_vm12, %v2060_v42, %v2061_v8 }
0x1876   :  { %2351 = vmatmul.msk.f32.vlgmr.msrb.gmra.mxu0 %vm331_vm13, %v2062_v24 }
0x18f3   :  { %v2082_v2 = vpop.f32.mrf.mxu0 }
0x18f4   :  { %v2083_v20 = vadd.f32 %v2592_v17, %v2082_v2  ;;  %v76_v2 = vld [vmem:[#allocation2 + $0x168] sm:$0xff]  ;;  %v75_v17 = vld [vmem:[#allocation2 + $0x160] sm:$0xff] }
0x18f5   :  { %2257 = vmatpush.msrb.mxu3 %v76_v2 }
0x18f6   :  { %2562 = vtanh.f32 %v2083_v20  ;;  %v2352_v21 = vmul.f32 -1.442695, %v2083_v20 }
0x18f7   :  { %2258 = vmatpush.msrb.mxu3 %v75_v17 }
0x18f8   :  { %2564 = vpow2.f32 %v2352_v21 }
0x18fc   :  { %v2563_v61 = vpop.eup %2562 }
0x18fd   :  { %2107 = vrot.lane.b32.xlu2 %v2563_v61, %s2650_s23  ;;  %v451_v61 = vadd.f32 %v3291_v32, %v2995_v27 }
0x18fe   :  { %v2565_v12 = vpop.eup %2564 }
0x18ff   :  { %v2088_v13 = vadd.f32 1.0, %v2565_v12  ;;  %v453_v12 = vmax.f32 %v451_v61, 0.0 }
0x1901   :  { %2566 = vrcp.f32 %v2088_v13  ;;  %v2100_v37 = vand.u32 2147483648, %v2088_v13  ;;  %vm2094_vm14 = vweird.f32 %v2088_v13  ;;  %v2098_v14 = vand.u32 2147483647, %v2088_v13 }
0x1903   :  { %v2101_v53 = vor.u32 1.1754944e-38, %v2100_v37  ;;  %vm2099_vm0 = vcmp.eq.f32.partialorder %v2098_v14, 8.507059e+37 }
0x1907   :  { %v2567_v55 = vpop.eup %2566 }
0x1908   :  { %v2090_v35 = vmul.f32 %v2567_v55, %v2088_v13  ;;  %vm2095_vm11 = vweird.f32 %v2567_v55 }
0x1909   :  { %vm2096_vm15 = vmor %vm2094_vm14, %vm2095_vm11 }
0x190a   :  { %v2091_v18 = vsub.f32 1.0, %v2090_v35 }
0x190c   :  { %v2092_v54 = vmul.f32 %v2567_v55, %v2091_v18 }
0x190e   :  { %v2093_v38 = vadd.f32 %v2567_v55, %v2092_v54 }
0x1910   :  { %v2097_v5 = vsel %vm2096_vm15, %v2567_v55, %v2093_v38 }
0x1911   :  { %v2102_v23 = vsel %vm2099_vm0, %v2101_v53, %v2097_v5 }
0x1912   :  { %v2105_v6 = vmul.f32 %v2102_v23, %v3262_v7 }
0x1957   :  { %v2108_v52 = vpop.permute.xlu2 %2107 }
0x1958   :  { %v2110_v29 = vmul.f32 %v2108_v52, %v2102_v23 }
0x195a   :  { %2112 = vrot.lane.b32.xlu0 %v2110_v29, %s2653_s28  ;;  %v73_v29 = vld [vmem:[#allocation2 + $0x150] sm:$0xff] }
0x1962   :  { %2129 = vrot.lane.b32.xlu0 %v2784_v58, %s2653_s28  ;;  %v691_v58 = vadd.f32 %v3291_v32, %v2997_v45  ;;  %v1678_v45 = vadd.f32 %v3291_v32, %v3254_v22  ;;  %v69_v22 = vld [vmem:[#allocation2 + $0x130] sm:$0xff] }
0x1963   :  { %2223 = vmatpush.msrb.mxu2 %v69_v22 }
0x1964   :  { %v693_v4 = vmax.f32 %v691_v58, 0.0  ;;  %v1680_v1 = vmax.f32 %v1678_v45, 0.0 }
0x1965   :  { %2224 = vmatpush.msrb.mxu2 %v68_v60 }
0x1967   :  { %2225 = vmatpush.msrb.mxu2 %v67_v16 }
0x1969   :  { %2226 = vmatpush.msrb.mxu2 %v66_v30 }
0x196a   :  { %2190 = vrot.lane.b32.xlu0 %v1186_v49, %s2655_s30 }
0x196b   :  { %2227 = vmatpush.msrb.mxu2 %v65_v15 }
0x196d   :  { %2228 = vmatpush.msrb.mxu2 %v64_v57 }
0x1972   :  { %2202 = vrot.lane.b32.xlu0 %v1927_v9, %s2651_s0  ;;  %v2377_v9 = vld [vmem:[#allocation2 + $0x178] ss:$0 sm:$0xff] }
0x19cc   :  { %v2113_v34 = vpop.permute.xlu0 %2112 }
0x19cd   :  { %v2115_v36 = vadd.f32 %v2113_v34, %v2105_v6 }
0x19cf   :  { %2568 = vtanh.f32 %v2115_v36 }
0x19d4   :  { %v2130_v63 = vpop.permute.xlu0 %2129 }
0x19d5   :  { %v2569_v41 = vpop.eup %2568 }
0x19d6   :  { %2118 = vrot.lane.b32.xlu1 %v2569_v41, %s2650_s23 }
0x19dc   :  { %v2191_v13 = vpop.permute.xlu0 %2190 }
0x19de   :  { %2182 = vrot.lane.b32.xlu1 %v693_v4, %s2652_s1 }
0x19e4   :  { %v2203_v5 = vpop.permute.xlu0 %2202 }
0x19e6   :  { %2194 = vrot.lane.b32.xlu1 %v1433_v47, %s2650_s23 }
0x1a48   :  { %v2119_v28 = vpop.permute.xlu1 %2118 }
0x1a49   :  { %v2121_v7 = vmul.f32 %v2119_v28, %v2102_v23  ;;  %v74_v23 = vld [vmem:[#allocation2 + $0x158] sm:$0xff] }
0x1a4a   :  { %2259 = vmatpush.msrb.mxu3 %v74_v23 }
0x1a4b   :  { %2123 = vrot.lane.b32.xlu2 %v2121_v7, %s2653_s28 }
0x1a4c   :  { %2260 = vmatpush.msrb.mxu3 %v73_v29 }
0x1a50   :  { %v2183_v20 = vpop.permute.xlu1 %2182 }
0x1a51   :  { %v2209_v55 = vsel %vm154_vm7, %v453_v12, %v2183_v20  ;;  %vm2271_vm7 = vcmask 27648  }
0x1a53   :  { %2186 = vrot.lane.b32.xlu2 %v939_v51, %s2653_s28 }
0x1a58   :  { %v2195_v18 = vpop.permute.xlu1 %2194 }
0x1a5b   :  { %2198 = vrot.lane.b32.xlu2 %v1680_v1, %s2654_s29 }
0x1aa5   :  { %v2124_v25 = vpop.permute.xlu2 %2123 }
0x1aa6   :  { %v2132_v3 = vsel %vm403_vm2, %v2124_v25, %v2130_v63 }
0x1aa7   :  { %2353 = vmatmul.msk.f32.vlgmr.msra.gmra.mxu1 %vm405_vm3, %v2132_v3 }
0x1aad   :  { %v2187_v21 = vpop.permute.xlu2 %2186 }
0x1aae   :  { %v2210_v35 = vsel %vm403_vm2, %v2209_v55, %v2187_v21 }
0x1aaf   :  { %v2211_v54 = vsel %vm331_vm13, %v2210_v35, %v2191_v13 }
0x1ab0   :  { %v2212_v37 = vsel %vm405_vm3, %v2211_v54, %v2195_v18 }
0x1ab5   :  { %v2199_v38 = vpop.permute.xlu2 %2198 }
0x1ab6   :  { %v2214_v14 = vsel %vm2213_vm1, %v2212_v37, %v2199_v38 }
0x1ab7   :  { %v2216_v27 = vsel %vm2215_vm4, %v2214_v14, %v2203_v5 }
0x1b24   :  { %v2153_v62 = vpop.f32.mrf.mxu1 }
0x1b25   :  { %v2154_v0 = vadd.f32 %v3203_v48, %v2153_v62  ;;  %v63_v48 = vld [vmem:[#allocation2 + $0x100] sm:$0xff] }
0x1b26   :  { %2229 = vmatpush.msrb.mxu2 %v63_v48 }
0x1b27   :  { %v2156_v43 = vmax.f32 %v2154_v0, 0.0 }
0x1b28   :  { %2230 = vmatpush.msrb.mxu2 %v62_v33 }
0x1b29   :  { %2354 = vmatmul.msk.f32.vlgmr.msra.gmra.mxu3 %vm403_vm2, %v2156_v43 }
0x1b2a   :  { %2231 = vmatpush.msrb.mxu2 %v61_v19 }
0x1b2c   :  { %2232 = vmatpush.msrb.mxu2 %v60_v40 }
0x1b2e   :  { %2233 = vmatpush.msrb.mxu2 %v59_v44 }
0x1b30   :  { %2234 = vmatpush.msrb.mxu2 %v58_v56 }
0x1b32   :  { %2235 = vmatpush.msrb.mxu2 %v57_v11 }
0x1bac   :  { %v2177_v8 = vpop.f32.mrf.mxu3 }
0x1bad   :  { %v2178_v42 = vadd.f32 %v3291_v32, %v2177_v8  ;;  %v2376_v32 = vld [vmem:[#allocation2 + $0x177] ss:$0 sm:$0xff] }
0x1baf   :  { %v2180_v24 = vmax.f32 %v2178_v42, 0.0 }
0x1bb1   :  { %2206 = vrot.lane.b32.xlu1 %v2180_v24, %s2656_s4 }
0x1c23   :  { %v2207_v53 = vpop.permute.xlu1 %2206 }
0x1c24   :  { %v2218_v52 = vsel %vm2217_vm5, %v2216_v27, %v2207_v53 }
0x1c25   :  { %2236 = vmatmul.f32.vlgmr.msrb.gmra.mxu2 %v2218_v52 }
0x1ca8   :  { %v2237_v31 = vpop.f32.mrf.mxu2 }
0x1ca9   :  { %v2238_v49 = vadd.f32 %v2376_v32, %v2237_v31 }
0x1cab   :  { %v2240_v50 = vmax.f32 %v2238_v49, 0.0 }
0x1cad   :  { %2355 = vmatmul.msk.f32.vlgmr.msrb.gmra.mxu3 %vm403_vm2, %v2240_v50 }
0x1d30   :  { %v2262_v6 = vpop.f32.mrf.mxu3 }
0x1d31   :  { %v2263_v34 = vadd.f32 %v2377_v9, %v2262_v6 }
0x1d33   :  { %v2266_v36 = vrot.slane %v2263_v34, 1  ;;  %v2267_v41 = vperm.slane %v2263_v34, 0 }
0x1d35   :  { %v2268_v58 = vperm.slane %v2266_v36, 0  ;;  %2272 = vst.msk [vmem:[#allocation5] sm:$0xf] %vm2271_vm7, %v2267_v41 }
0x1d37   :  { %2273 = vst.msk [vmem:[#allocation5 + $0x4] sm:$0xf] %vm2271_vm7, %v2268_v58 }
0x1d38   :  { %2286 = dma.vmem_to_hbm [thread:$0]  %s2279_s6, 128, %s2281_s9, [#allocation4], %s2650_s23, %s2650_s23, %s2648_s21  }
0x1d39   :  { %2643 = dma.done.wait [#allocation4], 128  }
0x1d3a   :  { %2644 = vsyncadd [#allocation4], 4294967168 }
0x1d3b   :  { %2291 = vsyncpa [#allocation3], 1 }
0x1d3c   :  { %2292 = vsyncpa [#allocation4], 1 }

</bundles_post_ra>
